<compile_context>
chip_gen: v7x
topology: tpu7x:2x2x1
jax: 0.10.0
libtpu: 0.0.40
codegen_flags: <defaults>
</compile_context>

<pallas_src>
import jax
import jax.numpy as jnp
from jax.experimental import pallas as pl
from jax.experimental.pallas import tpu as pltpu

CIN = 3
CH = 15            # cnn_hidden_kernels
CHP = 16           # conv-1 output channels zero-padded to a full bf16 sublane group
COUT = 15          # cnn_out_kernels
K1 = 5
K2 = 4
H, W = 46, 50      # input spatial size implied by view(-1, 15*9*10)

OH1, OW1 = H - K1 + 1, W - K1 + 1        # 42, 46
PH1, PW1 = OH1 // 2, OW1 // 2            # 21, 23
OH2, OW2 = PH1 - K2 + 1, PW1 - K2 + 1    # 18, 20
PH2, PW2 = OH2 // 2, OW2 // 2            # 9, 10

P1 = OH1 * W                             # 2100 conv-1 positions (stride-W grid)
M1 = 2 * W * (PH1 - 1) + 2 * PW1 - 1     # 2045 columns of the layer-1 4-tap max
Y1 = PH1 * PW1                           # 483 pooled layer-1 positions
P2 = (OH2 - 1) * PW1 + OW2               # 411 conv-2 positions (stride-PW1 grid)
M2 = 2 * PW1 * (PH2 - 1) + 2 * PW2 - 1   # 387 columns of the layer-2 4-tap max
NPOS = PH2 * PW2                         # 90 final pooled positions


def _cnn_fused_kernel(x_ref, w1_ref, b1_ref, w2_ref, b2_ref, sel1_ref, sel2_ref,
                      out_ref, a1_scr, y1_scr, lhs2_scr):
    """Whole CNN forward for one batch element, everything resident in VMEM.

    Lane-major: channels in sublanes, spatial positions in lanes.
    x_ref    : (1, K1*K1*CIN, P1) bf16  conv-1 LHS^T, taps packed in the wrapper
    w1_ref   : (CHP, K1*K1*CIN)   bf16  conv-1 weights (rows 15 zero)
    b1_ref   : (CHP, 1)           f32   (row 15 zero)
    w2_ref   : (COUT, K2*K2*CHP)  bf16  conv-2 weights (padded cin columns zero)
    b2_ref   : (COUT, 1)          f32
    sel1_ref : (2*PW1-1, PW1)     bf16  0/1 "keep every 2nd column" matrix
    sel2_ref : (2*PW2-1, PW2)     f32
    out_ref  : (1, COUT, NPOS)    f32   channel-major pooled layer-2 output
    """
    f32 = jnp.float32

    # ---- layer 1: conv 5x5 as ONE MXU matmul (bf16 operands, f32 accumulation)
    z1 = jnp.dot(w1_ref[...], x_ref[0], preferred_element_type=f32)        # (16, 2100)

    # 2x2 max-pool (max part) via lane-shifted maxima on the stride-W position grid;
    # bias + ReLU once on the full map (they commute with the column selection below).
    m1 = jnp.maximum(jnp.maximum(z1[:, 0:M1], z1[:, 1:M1 + 1]),
                     jnp.maximum(z1[:, W:W + M1], z1[:, W + 1:W + 1 + M1]))
    a1_scr[...] = jnp.maximum(m1 + b1_ref[...], 0.0).astype(jnp.bfloat16)  # (16, 2045)

    # Decimate to the pooled (21, 23) grid (keep columns 2*W*i + 2*pw): one tiny
    # 0/1 selection matmul per pooled row; the padded channel row stays exactly 0.
    for i in range(PH1):
        blk = a1_scr[:, 2 * W * i: 2 * W * i + (2 * PW1 - 1)]              # (16, 45) bf16
        y1_scr[:, PW1 * i: PW1 * (i + 1)] = jnp.dot(
            blk, sel1_ref[...], preferred_element_type=f32).astype(jnp.bfloat16)

    # ---- conv-2 LHS: 16 lane-shifted copies of y1, each one aligned 16-row bf16 group
    for t in range(K2 * K2):
        kh, kw = t // K2, t % K2
        lhs2_scr[CHP * t: CHP * (t + 1), :] = \
            y1_scr[:, kh * PW1 + kw: kh * PW1 + kw + P2]

    # ---- layer 2: conv 4x4 as ONE MXU matmul
    z2 = jnp.dot(w2_ref[...], lhs2_scr[...], preferred_element_type=f32)   # (15, 411)

    m2 = jnp.maximum(jnp.maximum(z2[:, 0:M2], z2[:, 1:M2 + 1]),
                     jnp.maximum(z2[:, PW1:PW1 + M2], z2[:, PW1 + 1:PW1 + 1 + M2]))
    a2 = jnp.maximum(m2 + b2_ref[...], 0.0)                                # (15, 387) f32

    # Final decimation (keep columns 2*PW1*i + 2*pw), assembled lane-dense and stored
    # once, channel-major -> torch's view(-1, 15*9*10) order with a free reshape outside.
    pieces = [jnp.dot(a2[:, 2 * PW1 * i: 2 * PW1 * i + (2 * PW2 - 1)],
                      sel2_ref[...], preferred_element_type=f32)
              for i in range(PH2)]                                         # 9 x (15, 10)
    out_ref[0] = jnp.concatenate(pieces, axis=1)                           # (15, 90)


def cnn_forward(x, params):
    """x: (N, 3, 46, 50) NCHW float32.  Returns (N, 15*9*10), matching the torch view()."""
    w1, b1, w2, b2 = params
    n = x.shape[0]

    # conv-1 LHS^T, fully tap-packed in the wrapper (~0.3 MB/sample extra HBM):
    # rows ordered (kh, kw, cin), columns = stride-W position grid (oh*W + ow).
    # Trailing pad covers the wrapped reads of the last taps (never selected).
    x_flat = jnp.pad(x.reshape(n, CIN, H * W),
                     ((0, 0), (0, 0), (0, (K1 - 1) * (W + 1))))
    taps = [x_flat[:, :, s:s + P1]
            for s in (kh * W + kw for kh in range(K1) for kw in range(K1))]
    lhs1t = jnp.stack(taps, axis=1).reshape(n, K1 * K1 * CIN, P1).astype(jnp.bfloat16)

    # conv-1 weights/bias, output-channel dim zero-padded 15 -> 16.
    w1f = jnp.pad(jnp.transpose(w1, (0, 2, 3, 1)).reshape(CH, K1 * K1 * CIN),
                  ((0, CHP - CH), (0, 0))).astype(jnp.bfloat16)
    b1r = jnp.pad(b1.reshape(CH, 1), ((0, CHP - CH), (0, 0))).astype(jnp.float32)

    # conv-2 weights: input-channel dim padded 15 -> 16 to match the 16-row tap groups.
    w2f = jnp.pad(jnp.transpose(w2, (0, 2, 3, 1)),
                  ((0, 0), (0, 0), (0, 0), (0, CHP - CH))
                  ).reshape(COUT, K2 * K2 * CHP).astype(jnp.bfloat16)
    b2r = b2.reshape(COUT, 1).astype(jnp.float32)

    # 0/1 "keep every 2nd column" selection matrices, built once per call (not per step).
    def decimate(cols_in, cols_out, dtype):
        r = jax.lax.broadcasted_iota(jnp.int32, (cols_in, cols_out), 0)
        c = jax.lax.broadcasted_iota(jnp.int32, (cols_in, cols_out), 1)
        return (r == 2 * c).astype(dtype)

    sel1 = decimate(2 * PW1 - 1, PW1, jnp.bfloat16)   # (45, 23)
    sel2 = decimate(2 * PW2 - 1, PW2, jnp.float32)    # (19, 10)

    out = pl.pallas_call(
        _cnn_fused_kernel,
        out_shape=jax.ShapeDtypeStruct((n, COUT, NPOS), jnp.float32),
        grid=(n,),
        in_specs=[
            pl.BlockSpec((1, K1 * K1 * CIN, P1), lambda i: (i, 0, 0)),
            pl.BlockSpec((CHP, K1 * K1 * CIN), lambda i: (0, 0)),
            pl.BlockSpec((CHP, 1), lambda i: (0, 0)),
            pl.BlockSpec((COUT, K2 * K2 * CHP), lambda i: (0, 0)),
            pl.BlockSpec((COUT, 1), lambda i: (0, 0)),
            pl.BlockSpec((2 * PW1 - 1, PW1), lambda i: (0, 0)),
            pl.BlockSpec((2 * PW2 - 1, PW2), lambda i: (0, 0)),
        ],
        out_specs=pl.BlockSpec((1, COUT, NPOS), lambda i: (i, 0, 0)),
        scratch_shapes=[
            pltpu.VMEM((CHP, M1), jnp.bfloat16),            # relu(conv1+b1) 4-tap max map
            pltpu.VMEM((CHP, Y1), jnp.bfloat16),            # pooled layer-1 activations
            pltpu.VMEM((K2 * K2 * CHP, P2), jnp.bfloat16),  # conv-2 LHS (tap-packed)
        ],
        compiler_params=pltpu.CompilerParams(dimension_semantics=("parallel",)),
    )(lhs1t, w1f, b1r, w2f, b2r, sel1, sel2)                # (N, 15, 90) channel-major

    # Free reshape: (cout, ph, pw) is already contiguous in the torch view() order.
    return out.reshape(n, COUT * NPOS)
    # TODO(synk): the print(x.size()) debug statements of the torch module are
    # host-side side effects and are intentionally omitted.


def reference_forward(x, params):
    """Pure-JAX/XLA reference (mirrors the PyTorch forward) for validation."""
    w1, b1, w2, b2 = params

    def conv(x, w, b):
        y = jax.lax.conv_general_dilated(
            x, w, window_strides=(1, 1), padding='VALID',
            dimension_numbers=('NCHW', 'OIHW', 'NCHW'))
        return y + b[None, :, None, None]

    def pool(x):
        return jax.lax.reduce_window(x, -jnp.inf, jax.lax.max,
                                     (1, 1, 2, 2), (1, 1, 2, 2), 'VALID')

    y = pool(jax.nn.relu(conv(x, w1, b1)))
    y = pool(jax.nn.relu(conv(y, w2, b2)))
    return y.reshape(y.shape[0], -1)


def init_params(key):
    k1, k2, k3, k4 = jax.random.split(key, 4)
    fan1 = CIN * K1 * K1
    fan2 = CH * K2 * K2
    w1 = jax.random.uniform(k1, (CH, CIN, K1, K1), jnp.float32, -1.0, 1.0) / jnp.sqrt(fan1)
    b1 = jax.random.uniform(k2, (CH,), jnp.float32, -1.0, 1.0) / jnp.sqrt(fan1)
    w2 = jax.random.uniform(k3, (COUT, CH, K2, K2), jnp.float32, -1.0, 1.0) / jnp.sqrt(fan2)
    b2 = jax.random.uniform(k4, (COUT,), jnp.float32, -1.0, 1.0) / jnp.sqrt(fan2)
    return (w1, b1, w2, b2)


if __name__ == "__main__":
    key = jax.random.PRNGKey(0)
    pkey, xkey = jax.random.split(key)
    params = init_params(pkey)

    # Input spatial size fixed by the module's view(-1, 15*9*10):
    # 46x50 -> conv5 -> 42x46 -> pool -> 21x23 -> conv4 -> 18x20 -> pool -> 9x10
    x = jax.random.normal(xkey, (2, CIN, H, W), jnp.float32)

    out = jax.block_until_ready(jax.jit(cnn_forward)(x, params))
    assert out.shape == (2, COUT * PH2 * PW2), out.shape

    ref = jax.block_until_ready(reference_forward(x, params))
    max_err = float(jnp.max(jnp.abs(out - ref)))
    assert jnp.allclose(out, ref, atol=5e-2, rtol=5e-2), max_err

    print("KERNEL_OK")
</pallas_src>

<mosaic_0001>
module attributes {stable_mosaic.version = 11 : i64} {
  func.func @_cnn_fused_kernel(%arg0: i32, %arg1: memref<1x75x2100xbf16, #tpu.memory_space<vmem>>, %arg2: memref<16x75xbf16, #tpu.memory_space<vmem>>, %arg3: memref<16x1xf32, #tpu.memory_space<vmem>>, %arg4: memref<15x256xbf16, #tpu.memory_space<vmem>>, %arg5: memref<15x1xf32, #tpu.memory_space<vmem>>, %arg6: memref<45x23xbf16, #tpu.memory_space<vmem>>, %arg7: memref<19x10xf32, #tpu.memory_space<vmem>>, %arg8: memref<1x15x90xf32, #tpu.memory_space<vmem>>, %arg9: memref<16x2045xbf16, #tpu.memory_space<vmem>>, %arg10: memref<16x483xbf16, #tpu.memory_space<vmem>>, %arg11: memref<256x411xbf16, #tpu.memory_space<vmem>>) attributes {dimension_semantics = [#tpu.dimension_semantics<parallel>], iteration_bounds = array<i64: 2>, scalar_prefetch = 0 : i64, scratch_operands = 3 : i64, tpu.core_type = #tpu.core_type<tc>, window_params = [{transform_indices = @transform_0, window_bounds = array<i64: 1, 75, 2100>}, {pipeline_mode = #tpu.pipeline_mode<synchronous>, transform_indices = @transform_1, window_bounds = array<i64: 16, 75>}, {pipeline_mode = #tpu.pipeline_mode<synchronous>, transform_indices = @transform_2, window_bounds = array<i64: 16, 1>}, {pipeline_mode = #tpu.pipeline_mode<synchronous>, transform_indices = @transform_3, window_bounds = array<i64: 15, 256>}, {pipeline_mode = #tpu.pipeline_mode<synchronous>, transform_indices = @transform_4, window_bounds = array<i64: 15, 1>}, {pipeline_mode = #tpu.pipeline_mode<synchronous>, transform_indices = @transform_5, window_bounds = array<i64: 45, 23>}, {pipeline_mode = #tpu.pipeline_mode<synchronous>, transform_indices = @transform_6, window_bounds = array<i64: 19, 10>}, {transform_indices = @transform_7, window_bounds = array<i64: 1, 15, 90>}]} {
    %c0 = arith.constant 0 : index
    %c0_0 = arith.constant 0 : index
    %0 = vector.load %arg2[%c0, %c0_0] : memref<16x75xbf16, #tpu.memory_space<vmem>>, vector<16x75xbf16>
    %c0_1 = arith.constant 0 : index
    %c0_2 = arith.constant 0 : index
    %c0_3 = arith.constant 0 : index
    %1 = vector.load %arg1[%c0_1, %c0_2, %c0_3] : memref<1x75x2100xbf16, #tpu.memory_space<vmem>>, vector<1x75x2100xbf16>
    %2 = vector.shape_cast %1 : vector<1x75x2100xbf16> to vector<75x2100xbf16>
    %cst = arith.constant dense<0.000000e+00> : vector<16x2100xf32>
    %3 = tpu.matmul %0, %2, %cst {dimension_numbers = #tpu.dot_dimension_numbers<[1], [0], [0], [1], [0, 0, 1, 1], [], []>} : vector<16x75xbf16>, vector<75x2100xbf16>, vector<16x2100xf32> -> vector<16x2100xf32>
    %4 = vector.extract_strided_slice %3 {offsets = [0, 0], sizes = [16, 2045], strides = [1, 1]} : vector<16x2100xf32> to vector<16x2045xf32>
    %5 = vector.extract_strided_slice %3 {offsets = [0, 1], sizes = [16, 2045], strides = [1, 1]} : vector<16x2100xf32> to vector<16x2045xf32>
    %6 = arith.maximumf %4, %5 : vector<16x2045xf32>
    %7 = vector.extract_strided_slice %3 {offsets = [0, 50], sizes = [16, 2045], strides = [1, 1]} : vector<16x2100xf32> to vector<16x2045xf32>
    %8 = vector.extract_strided_slice %3 {offsets = [0, 51], sizes = [16, 2045], strides = [1, 1]} : vector<16x2100xf32> to vector<16x2045xf32>
    %9 = arith.maximumf %7, %8 : vector<16x2045xf32>
    %10 = arith.maximumf %6, %9 : vector<16x2045xf32>
    %c0_4 = arith.constant 0 : index
    %c0_5 = arith.constant 0 : index
    %11 = vector.load %arg3[%c0_4, %c0_5] : memref<16x1xf32, #tpu.memory_space<vmem>>, vector<16x1xf32>
    %12 = vector.broadcast %11 : vector<16x1xf32> to vector<16x2045xf32>
    %13 = arith.addf %10, %12 : vector<16x2045xf32>
    %cst_6 = arith.constant 0.000000e+00 : f32
    %14 = vector.broadcast %cst_6 : f32 to vector<16x2045xf32>
    %15 = arith.maximumf %13, %14 : vector<16x2045xf32>
    %16 = arith.truncf %15 : vector<16x2045xf32> to vector<16x2045xbf16>
    %c0_7 = arith.constant 0 : index
    %c0_8 = arith.constant 0 : index
    %17 = vector.load %arg9[%c0_7, %c0_8] : memref<16x2045xbf16, #tpu.memory_space<vmem>>, vector<16x2045xbf16>
    tpu.vector_store %arg9[%c0_7, %c0_8], %16 {strides = array<i32>} : memref<16x2045xbf16, #tpu.memory_space<vmem>>, vector<16x2045xbf16>,
    %c0_9 = arith.constant 0 : index
    %c0_10 = arith.constant 0 : index
    %18 = vector.load %arg9[%c0_9, %c0_10] : memref<16x2045xbf16, #tpu.memory_space<vmem>>, vector<16x45xbf16>
    %c0_11 = arith.constant 0 : index
    %c0_12 = arith.constant 0 : index
    %19 = vector.load %arg6[%c0_11, %c0_12] : memref<45x23xbf16, #tpu.memory_space<vmem>>, vector<45x23xbf16>
    %cst_13 = arith.constant dense<0.000000e+00> : vector<16x23xf32>
    %20 = tpu.matmul %18, %19, %cst_13 {dimension_numbers = #tpu.dot_dimension_numbers<[1], [0], [0], [1], [0, 0, 1, 1], [], []>} : vector<16x45xbf16>, vector<45x23xbf16>, vector<16x23xf32> -> vector<16x23xf32>
    %21 = arith.truncf %20 : vector<16x23xf32> to vector<16x23xbf16>
    %c0_14 = arith.constant 0 : index
    %c0_15 = arith.constant 0 : index
    %22 = vector.load %arg10[%c0_14, %c0_15] : memref<16x483xbf16, #tpu.memory_space<vmem>>, vector<16x23xbf16>
    tpu.vector_store %arg10[%c0_14, %c0_15], %21 {strides = array<i32>} : memref<16x483xbf16, #tpu.memory_space<vmem>>, vector<16x23xbf16>,
    %c0_16 = arith.constant 0 : index
    %c100 = arith.constant 100 : index
    %23 = vector.load %arg9[%c0_16, %c100] : memref<16x2045xbf16, #tpu.memory_space<vmem>>, vector<16x45xbf16>
    %c0_17 = arith.constant 0 : index
    %c0_18 = arith.constant 0 : index
    %24 = vector.load %arg6[%c0_17, %c0_18] : memref<45x23xbf16, #tpu.memory_space<vmem>>, vector<45x23xbf16>
    %cst_19 = arith.constant dense<0.000000e+00> : vector<16x23xf32>
    %25 = tpu.matmul %23, %24, %cst_19 {dimension_numbers = #tpu.dot_dimension_numbers<[1], [0], [0], [1], [0, 0, 1, 1], [], []>} : vector<16x45xbf16>, vector<45x23xbf16>, vector<16x23xf32> -> vector<16x23xf32>
    %26 = arith.truncf %25 : vector<16x23xf32> to vector<16x23xbf16>
    %c0_20 = arith.constant 0 : index
    %c23 = arith.constant 23 : index
    %27 = vector.load %arg10[%c0_20, %c23] : memref<16x483xbf16, #tpu.memory_space<vmem>>, vector<16x23xbf16>
    tpu.vector_store %arg10[%c0_20, %c23], %26 {strides = array<i32>} : memref<16x483xbf16, #tpu.memory_space<vmem>>, vector<16x23xbf16>,
    %c0_21 = arith.constant 0 : index
    %c200 = arith.constant 200 : index
    %28 = vector.load %arg9[%c0_21, %c200] : memref<16x2045xbf16, #tpu.memory_space<vmem>>, vector<16x45xbf16>
    %c0_22 = arith.constant 0 : index
    %c0_23 = arith.constant 0 : index
    %29 = vector.load %arg6[%c0_22, %c0_23] : memref<45x23xbf16, #tpu.memory_space<vmem>>, vector<45x23xbf16>
    %cst_24 = arith.constant dense<0.000000e+00> : vector<16x23xf32>
    %30 = tpu.matmul %28, %29, %cst_24 {dimension_numbers = #tpu.dot_dimension_numbers<[1], [0], [0], [1], [0, 0, 1, 1], [], []>} : vector<16x45xbf16>, vector<45x23xbf16>, vector<16x23xf32> -> vector<16x23xf32>
    %31 = arith.truncf %30 : vector<16x23xf32> to vector<16x23xbf16>
    %c0_25 = arith.constant 0 : index
    %c46 = arith.constant 46 : index
    %32 = vector.load %arg10[%c0_25, %c46] : memref<16x483xbf16, #tpu.memory_space<vmem>>, vector<16x23xbf16>
    tpu.vector_store %arg10[%c0_25, %c46], %31 {strides = array<i32>} : memref<16x483xbf16, #tpu.memory_space<vmem>>, vector<16x23xbf16>,
    %c0_26 = arith.constant 0 : index
    %c300 = arith.constant 300 : index
    %33 = vector.load %arg9[%c0_26, %c300] : memref<16x2045xbf16, #tpu.memory_space<vmem>>, vector<16x45xbf16>
    %c0_27 = arith.constant 0 : index
    %c0_28 = arith.constant 0 : index
    %34 = vector.load %arg6[%c0_27, %c0_28] : memref<45x23xbf16, #tpu.memory_space<vmem>>, vector<45x23xbf16>
    %cst_29 = arith.constant dense<0.000000e+00> : vector<16x23xf32>
    %35 = tpu.matmul %33, %34, %cst_29 {dimension_numbers = #tpu.dot_dimension_numbers<[1], [0], [0], [1], [0, 0, 1, 1], [], []>} : vector<16x45xbf16>, vector<45x23xbf16>, vector<16x23xf32> -> vector<16x23xf32>
    %36 = arith.truncf %35 : vector<16x23xf32> to vector<16x23xbf16>
    %c0_30 = arith.constant 0 : index
    %c69 = arith.constant 69 : index
    %37 = vector.load %arg10[%c0_30, %c69] : memref<16x483xbf16, #tpu.memory_space<vmem>>, vector<16x23xbf16>
    tpu.vector_store %arg10[%c0_30, %c69], %36 {strides = array<i32>} : memref<16x483xbf16, #tpu.memory_space<vmem>>, vector<16x23xbf16>,
    %c0_31 = arith.constant 0 : index
    %c400 = arith.constant 400 : index
    %38 = vector.load %arg9[%c0_31, %c400] : memref<16x2045xbf16, #tpu.memory_space<vmem>>, vector<16x45xbf16>
    %c0_32 = arith.constant 0 : index
    %c0_33 = arith.constant 0 : index
    %39 = vector.load %arg6[%c0_32, %c0_33] : memref<45x23xbf16, #tpu.memory_space<vmem>>, vector<45x23xbf16>
    %cst_34 = arith.constant dense<0.000000e+00> : vector<16x23xf32>
    %40 = tpu.matmul %38, %39, %cst_34 {dimension_numbers = #tpu.dot_dimension_numbers<[1], [0], [0], [1], [0, 0, 1, 1], [], []>} : vector<16x45xbf16>, vector<45x23xbf16>, vector<16x23xf32> -> vector<16x23xf32>
    %41 = arith.truncf %40 : vector<16x23xf32> to vector<16x23xbf16>
    %c0_35 = arith.constant 0 : index
    %c92 = arith.constant 92 : index
    %42 = vector.load %arg10[%c0_35, %c92] : memref<16x483xbf16, #tpu.memory_space<vmem>>, vector<16x23xbf16>
    tpu.vector_store %arg10[%c0_35, %c92], %41 {strides = array<i32>} : memref<16x483xbf16, #tpu.memory_space<vmem>>, vector<16x23xbf16>,
    %c0_36 = arith.constant 0 : index
    %c500 = arith.constant 500 : index
    %43 = vector.load %arg9[%c0_36, %c500] : memref<16x2045xbf16, #tpu.memory_space<vmem>>, vector<16x45xbf16>
    %c0_37 = arith.constant 0 : index
    %c0_38 = arith.constant 0 : index
    %44 = vector.load %arg6[%c0_37, %c0_38] : memref<45x23xbf16, #tpu.memory_space<vmem>>, vector<45x23xbf16>
    %cst_39 = arith.constant dense<0.000000e+00> : vector<16x23xf32>
    %45 = tpu.matmul %43, %44, %cst_39 {dimension_numbers = #tpu.dot_dimension_numbers<[1], [0], [0], [1], [0, 0, 1, 1], [], []>} : vector<16x45xbf16>, vector<45x23xbf16>, vector<16x23xf32> -> vector<16x23xf32>
    %46 = arith.truncf %45 : vector<16x23xf32> to vector<16x23xbf16>
    %c0_40 = arith.constant 0 : index
    %c115 = arith.constant 115 : index
    %47 = vector.load %arg10[%c0_40, %c115] : memref<16x483xbf16, #tpu.memory_space<vmem>>, vector<16x23xbf16>
    tpu.vector_store %arg10[%c0_40, %c115], %46 {strides = array<i32>} : memref<16x483xbf16, #tpu.memory_space<vmem>>, vector<16x23xbf16>,
    %c0_41 = arith.constant 0 : index
    %c600 = arith.constant 600 : index
    %48 = vector.load %arg9[%c0_41, %c600] : memref<16x2045xbf16, #tpu.memory_space<vmem>>, vector<16x45xbf16>
    %c0_42 = arith.constant 0 : index
    %c0_43 = arith.constant 0 : index
    %49 = vector.load %arg6[%c0_42, %c0_43] : memref<45x23xbf16, #tpu.memory_space<vmem>>, vector<45x23xbf16>
    %cst_44 = arith.constant dense<0.000000e+00> : vector<16x23xf32>
    %50 = tpu.matmul %48, %49, %cst_44 {dimension_numbers = #tpu.dot_dimension_numbers<[1], [0], [0], [1], [0, 0, 1, 1], [], []>} : vector<16x45xbf16>, vector<45x23xbf16>, vector<16x23xf32> -> vector<16x23xf32>
    %51 = arith.truncf %50 : vector<16x23xf32> to vector<16x23xbf16>
    %c0_45 = arith.constant 0 : index
    %c138 = arith.constant 138 : index
    %52 = vector.load %arg10[%c0_45, %c138] : memref<16x483xbf16, #tpu.memory_space<vmem>>, vector<16x23xbf16>
    tpu.vector_store %arg10[%c0_45, %c138], %51 {strides = array<i32>} : memref<16x483xbf16, #tpu.memory_space<vmem>>, vector<16x23xbf16>,
    %c0_46 = arith.constant 0 : index
    %c700 = arith.constant 700 : index
    %53 = vector.load %arg9[%c0_46, %c700] : memref<16x2045xbf16, #tpu.memory_space<vmem>>, vector<16x45xbf16>
    %c0_47 = arith.constant 0 : index
    %c0_48 = arith.constant 0 : index
    %54 = vector.load %arg6[%c0_47, %c0_48] : memref<45x23xbf16, #tpu.memory_space<vmem>>, vector<45x23xbf16>
    %cst_49 = arith.constant dense<0.000000e+00> : vector<16x23xf32>
    %55 = tpu.matmul %53, %54, %cst_49 {dimension_numbers = #tpu.dot_dimension_numbers<[1], [0], [0], [1], [0, 0, 1, 1], [], []>} : vector<16x45xbf16>, vector<45x23xbf16>, vector<16x23xf32> -> vector<16x23xf32>
    %56 = arith.truncf %55 : vector<16x23xf32> to vector<16x23xbf16>
    %c0_50 = arith.constant 0 : index
    %c161 = arith.constant 161 : index
    %57 = vector.load %arg10[%c0_50, %c161] : memref<16x483xbf16, #tpu.memory_space<vmem>>, vector<16x23xbf16>
    tpu.vector_store %arg10[%c0_50, %c161], %56 {strides = array<i32>} : memref<16x483xbf16, #tpu.memory_space<vmem>>, vector<16x23xbf16>,
    %c0_51 = arith.constant 0 : index
    %c800 = arith.constant 800 : index
    %58 = vector.load %arg9[%c0_51, %c800] : memref<16x2045xbf16, #tpu.memory_space<vmem>>, vector<16x45xbf16>
    %c0_52 = arith.constant 0 : index
    %c0_53 = arith.constant 0 : index
    %59 = vector.load %arg6[%c0_52, %c0_53] : memref<45x23xbf16, #tpu.memory_space<vmem>>, vector<45x23xbf16>
    %cst_54 = arith.constant dense<0.000000e+00> : vector<16x23xf32>
    %60 = tpu.matmul %58, %59, %cst_54 {dimension_numbers = #tpu.dot_dimension_numbers<[1], [0], [0], [1], [0, 0, 1, 1], [], []>} : vector<16x45xbf16>, vector<45x23xbf16>, vector<16x23xf32> -> vector<16x23xf32>
    %61 = arith.truncf %60 : vector<16x23xf32> to vector<16x23xbf16>
    %c0_55 = arith.constant 0 : index
    %c184 = arith.constant 184 : index
    %62 = vector.load %arg10[%c0_55, %c184] : memref<16x483xbf16, #tpu.memory_space<vmem>>, vector<16x23xbf16>
    tpu.vector_store %arg10[%c0_55, %c184], %61 {strides = array<i32>} : memref<16x483xbf16, #tpu.memory_space<vmem>>, vector<16x23xbf16>,
    %c0_56 = arith.constant 0 : index
    %c900 = arith.constant 900 : index
    %63 = vector.load %arg9[%c0_56, %c900] : memref<16x2045xbf16, #tpu.memory_space<vmem>>, vector<16x45xbf16>
    %c0_57 = arith.constant 0 : index
    %c0_58 = arith.constant 0 : index
    %64 = vector.load %arg6[%c0_57, %c0_58] : memref<45x23xbf16, #tpu.memory_space<vmem>>, vector<45x23xbf16>
    %cst_59 = arith.constant dense<0.000000e+00> : vector<16x23xf32>
    %65 = tpu.matmul %63, %64, %cst_59 {dimension_numbers = #tpu.dot_dimension_numbers<[1], [0], [0], [1], [0, 0, 1, 1], [], []>} : vector<16x45xbf16>, vector<45x23xbf16>, vector<16x23xf32> -> vector<16x23xf32>
    %66 = arith.truncf %65 : vector<16x23xf32> to vector<16x23xbf16>
    %c0_60 = arith.constant 0 : index
    %c207 = arith.constant 207 : index
    %67 = vector.load %arg10[%c0_60, %c207] : memref<16x483xbf16, #tpu.memory_space<vmem>>, vector<16x23xbf16>
    tpu.vector_store %arg10[%c0_60, %c207], %66 {strides = array<i32>} : memref<16x483xbf16, #tpu.memory_space<vmem>>, vector<16x23xbf16>,
    %c0_61 = arith.constant 0 : index
    %c1000 = arith.constant 1000 : index
    %68 = vector.load %arg9[%c0_61, %c1000] : memref<16x2045xbf16, #tpu.memory_space<vmem>>, vector<16x45xbf16>
    %c0_62 = arith.constant 0 : index
    %c0_63 = arith.constant 0 : index
    %69 = vector.load %arg6[%c0_62, %c0_63] : memref<45x23xbf16, #tpu.memory_space<vmem>>, vector<45x23xbf16>
    %cst_64 = arith.constant dense<0.000000e+00> : vector<16x23xf32>
    %70 = tpu.matmul %68, %69, %cst_64 {dimension_numbers = #tpu.dot_dimension_numbers<[1], [0], [0], [1], [0, 0, 1, 1], [], []>} : vector<16x45xbf16>, vector<45x23xbf16>, vector<16x23xf32> -> vector<16x23xf32>
    %71 = arith.truncf %70 : vector<16x23xf32> to vector<16x23xbf16>
    %c0_65 = arith.constant 0 : index
    %c230 = arith.constant 230 : index
    %72 = vector.load %arg10[%c0_65, %c230] : memref<16x483xbf16, #tpu.memory_space<vmem>>, vector<16x23xbf16>
    tpu.vector_store %arg10[%c0_65, %c230], %71 {strides = array<i32>} : memref<16x483xbf16, #tpu.memory_space<vmem>>, vector<16x23xbf16>,
    %c0_66 = arith.constant 0 : index
    %c1100 = arith.constant 1100 : index
    %73 = vector.load %arg9[%c0_66, %c1100] : memref<16x2045xbf16, #tpu.memory_space<vmem>>, vector<16x45xbf16>
    %c0_67 = arith.constant 0 : index
    %c0_68 = arith.constant 0 : index
    %74 = vector.load %arg6[%c0_67, %c0_68] : memref<45x23xbf16, #tpu.memory_space<vmem>>, vector<45x23xbf16>
    %cst_69 = arith.constant dense<0.000000e+00> : vector<16x23xf32>
    %75 = tpu.matmul %73, %74, %cst_69 {dimension_numbers = #tpu.dot_dimension_numbers<[1], [0], [0], [1], [0, 0, 1, 1], [], []>} : vector<16x45xbf16>, vector<45x23xbf16>, vector<16x23xf32> -> vector<16x23xf32>
    %76 = arith.truncf %75 : vector<16x23xf32> to vector<16x23xbf16>
    %c0_70 = arith.constant 0 : index
    %c253 = arith.constant 253 : index
    %77 = vector.load %arg10[%c0_70, %c253] : memref<16x483xbf16, #tpu.memory_space<vmem>>, vector<16x23xbf16>
    tpu.vector_store %arg10[%c0_70, %c253], %76 {strides = array<i32>} : memref<16x483xbf16, #tpu.memory_space<vmem>>, vector<16x23xbf16>,
    %c0_71 = arith.constant 0 : index
    %c1200 = arith.constant 1200 : index
    %78 = vector.load %arg9[%c0_71, %c1200] : memref<16x2045xbf16, #tpu.memory_space<vmem>>, vector<16x45xbf16>
    %c0_72 = arith.constant 0 : index
    %c0_73 = arith.constant 0 : index
    %79 = vector.load %arg6[%c0_72, %c0_73] : memref<45x23xbf16, #tpu.memory_space<vmem>>, vector<45x23xbf16>
    %cst_74 = arith.constant dense<0.000000e+00> : vector<16x23xf32>
    %80 = tpu.matmul %78, %79, %cst_74 {dimension_numbers = #tpu.dot_dimension_numbers<[1], [0], [0], [1], [0, 0, 1, 1], [], []>} : vector<16x45xbf16>, vector<45x23xbf16>, vector<16x23xf32> -> vector<16x23xf32>
    %81 = arith.truncf %80 : vector<16x23xf32> to vector<16x23xbf16>
    %c0_75 = arith.constant 0 : index
    %c276 = arith.constant 276 : index
    %82 = vector.load %arg10[%c0_75, %c276] : memref<16x483xbf16, #tpu.memory_space<vmem>>, vector<16x23xbf16>
    tpu.vector_store %arg10[%c0_75, %c276], %81 {strides = array<i32>} : memref<16x483xbf16, #tpu.memory_space<vmem>>, vector<16x23xbf16>,
    %c0_76 = arith.constant 0 : index
    %c1300 = arith.constant 1300 : index
    %83 = vector.load %arg9[%c0_76, %c1300] : memref<16x2045xbf16, #tpu.memory_space<vmem>>, vector<16x45xbf16>
    %c0_77 = arith.constant 0 : index
    %c0_78 = arith.constant 0 : index
    %84 = vector.load %arg6[%c0_77, %c0_78] : memref<45x23xbf16, #tpu.memory_space<vmem>>, vector<45x23xbf16>
    %cst_79 = arith.constant dense<0.000000e+00> : vector<16x23xf32>
    %85 = tpu.matmul %83, %84, %cst_79 {dimension_numbers = #tpu.dot_dimension_numbers<[1], [0], [0], [1], [0, 0, 1, 1], [], []>} : vector<16x45xbf16>, vector<45x23xbf16>, vector<16x23xf32> -> vector<16x23xf32>
    %86 = arith.truncf %85 : vector<16x23xf32> to vector<16x23xbf16>
    %c0_80 = arith.constant 0 : index
    %c299 = arith.constant 299 : index
    %87 = vector.load %arg10[%c0_80, %c299] : memref<16x483xbf16, #tpu.memory_space<vmem>>, vector<16x23xbf16>
    tpu.vector_store %arg10[%c0_80, %c299], %86 {strides = array<i32>} : memref<16x483xbf16, #tpu.memory_space<vmem>>, vector<16x23xbf16>,
    %c0_81 = arith.constant 0 : index
    %c1400 = arith.constant 1400 : index
    %88 = vector.load %arg9[%c0_81, %c1400] : memref<16x2045xbf16, #tpu.memory_space<vmem>>, vector<16x45xbf16>
    %c0_82 = arith.constant 0 : index
    %c0_83 = arith.constant 0 : index
    %89 = vector.load %arg6[%c0_82, %c0_83] : memref<45x23xbf16, #tpu.memory_space<vmem>>, vector<45x23xbf16>
    %cst_84 = arith.constant dense<0.000000e+00> : vector<16x23xf32>
    %90 = tpu.matmul %88, %89, %cst_84 {dimension_numbers = #tpu.dot_dimension_numbers<[1], [0], [0], [1], [0, 0, 1, 1], [], []>} : vector<16x45xbf16>, vector<45x23xbf16>, vector<16x23xf32> -> vector<16x23xf32>
    %91 = arith.truncf %90 : vector<16x23xf32> to vector<16x23xbf16>
    %c0_85 = arith.constant 0 : index
    %c322 = arith.constant 322 : index
    %92 = vector.load %arg10[%c0_85, %c322] : memref<16x483xbf16, #tpu.memory_space<vmem>>, vector<16x23xbf16>
    tpu.vector_store %arg10[%c0_85, %c322], %91 {strides = array<i32>} : memref<16x483xbf16, #tpu.memory_space<vmem>>, vector<16x23xbf16>,
    %c0_86 = arith.constant 0 : index
    %c1500 = arith.constant 1500 : index
    %93 = vector.load %arg9[%c0_86, %c1500] : memref<16x2045xbf16, #tpu.memory_space<vmem>>, vector<16x45xbf16>
    %c0_87 = arith.constant 0 : index
    %c0_88 = arith.constant 0 : index
    %94 = vector.load %arg6[%c0_87, %c0_88] : memref<45x23xbf16, #tpu.memory_space<vmem>>, vector<45x23xbf16>
    %cst_89 = arith.constant dense<0.000000e+00> : vector<16x23xf32>
    %95 = tpu.matmul %93, %94, %cst_89 {dimension_numbers = #tpu.dot_dimension_numbers<[1], [0], [0], [1], [0, 0, 1, 1], [], []>} : vector<16x45xbf16>, vector<45x23xbf16>, vector<16x23xf32> -> vector<16x23xf32>
    %96 = arith.truncf %95 : vector<16x23xf32> to vector<16x23xbf16>
    %c0_90 = arith.constant 0 : index
    %c345 = arith.constant 345 : index
    %97 = vector.load %arg10[%c0_90, %c345] : memref<16x483xbf16, #tpu.memory_space<vmem>>, vector<16x23xbf16>
    tpu.vector_store %arg10[%c0_90, %c345], %96 {strides = array<i32>} : memref<16x483xbf16, #tpu.memory_space<vmem>>, vector<16x23xbf16>,
    %c0_91 = arith.constant 0 : index
    %c1600 = arith.constant 1600 : index
    %98 = vector.load %arg9[%c0_91, %c1600] : memref<16x2045xbf16, #tpu.memory_space<vmem>>, vector<16x45xbf16>
    %c0_92 = arith.constant 0 : index
    %c0_93 = arith.constant 0 : index
    %99 = vector.load %arg6[%c0_92, %c0_93] : memref<45x23xbf16, #tpu.memory_space<vmem>>, vector<45x23xbf16>
    %cst_94 = arith.constant dense<0.000000e+00> : vector<16x23xf32>
    %100 = tpu.matmul %98, %99, %cst_94 {dimension_numbers = #tpu.dot_dimension_numbers<[1], [0], [0], [1], [0, 0, 1, 1], [], []>} : vector<16x45xbf16>, vector<45x23xbf16>, vector<16x23xf32> -> vector<16x23xf32>
    %101 = arith.truncf %100 : vector<16x23xf32> to vector<16x23xbf16>
    %c0_95 = arith.constant 0 : index
    %c368 = arith.constant 368 : index
    %102 = vector.load %arg10[%c0_95, %c368] : memref<16x483xbf16, #tpu.memory_space<vmem>>, vector<16x23xbf16>
    tpu.vector_store %arg10[%c0_95, %c368], %101 {strides = array<i32>} : memref<16x483xbf16, #tpu.memory_space<vmem>>, vector<16x23xbf16>,
    %c0_96 = arith.constant 0 : index
    %c1700 = arith.constant 1700 : index
    %103 = vector.load %arg9[%c0_96, %c1700] : memref<16x2045xbf16, #tpu.memory_space<vmem>>, vector<16x45xbf16>
    %c0_97 = arith.constant 0 : index
    %c0_98 = arith.constant 0 : index
    %104 = vector.load %arg6[%c0_97, %c0_98] : memref<45x23xbf16, #tpu.memory_space<vmem>>, vector<45x23xbf16>
    %cst_99 = arith.constant dense<0.000000e+00> : vector<16x23xf32>
    %105 = tpu.matmul %103, %104, %cst_99 {dimension_numbers = #tpu.dot_dimension_numbers<[1], [0], [0], [1], [0, 0, 1, 1], [], []>} : vector<16x45xbf16>, vector<45x23xbf16>, vector<16x23xf32> -> vector<16x23xf32>
    %106 = arith.truncf %105 : vector<16x23xf32> to vector<16x23xbf16>
    %c0_100 = arith.constant 0 : index
    %c391 = arith.constant 391 : index
    %107 = vector.load %arg10[%c0_100, %c391] : memref<16x483xbf16, #tpu.memory_space<vmem>>, vector<16x23xbf16>
    tpu.vector_store %arg10[%c0_100, %c391], %106 {strides = array<i32>} : memref<16x483xbf16, #tpu.memory_space<vmem>>, vector<16x23xbf16>,
    %c0_101 = arith.constant 0 : index
    %c1800 = arith.constant 1800 : index
    %108 = vector.load %arg9[%c0_101, %c1800] : memref<16x2045xbf16, #tpu.memory_space<vmem>>, vector<16x45xbf16>
    %c0_102 = arith.constant 0 : index
    %c0_103 = arith.constant 0 : index
    %109 = vector.load %arg6[%c0_102, %c0_103] : memref<45x23xbf16, #tpu.memory_space<vmem>>, vector<45x23xbf16>
    %cst_104 = arith.constant dense<0.000000e+00> : vector<16x23xf32>
    %110 = tpu.matmul %108, %109, %cst_104 {dimension_numbers = #tpu.dot_dimension_numbers<[1], [0], [0], [1], [0, 0, 1, 1], [], []>} : vector<16x45xbf16>, vector<45x23xbf16>, vector<16x23xf32> -> vector<16x23xf32>
    %111 = arith.truncf %110 : vector<16x23xf32> to vector<16x23xbf16>
    %c0_105 = arith.constant 0 : index
    %c414 = arith.constant 414 : index
    %112 = vector.load %arg10[%c0_105, %c414] : memref<16x483xbf16, #tpu.memory_space<vmem>>, vector<16x23xbf16>
    tpu.vector_store %arg10[%c0_105, %c414], %111 {strides = array<i32>} : memref<16x483xbf16, #tpu.memory_space<vmem>>, vector<16x23xbf16>,
    %c0_106 = arith.constant 0 : index
    %c1900 = arith.constant 1900 : index
    %113 = vector.load %arg9[%c0_106, %c1900] : memref<16x2045xbf16, #tpu.memory_space<vmem>>, vector<16x45xbf16>
    %c0_107 = arith.constant 0 : index
    %c0_108 = arith.constant 0 : index
    %114 = vector.load %arg6[%c0_107, %c0_108] : memref<45x23xbf16, #tpu.memory_space<vmem>>, vector<45x23xbf16>
    %cst_109 = arith.constant dense<0.000000e+00> : vector<16x23xf32>
    %115 = tpu.matmul %113, %114, %cst_109 {dimension_numbers = #tpu.dot_dimension_numbers<[1], [0], [0], [1], [0, 0, 1, 1], [], []>} : vector<16x45xbf16>, vector<45x23xbf16>, vector<16x23xf32> -> vector<16x23xf32>
    %116 = arith.truncf %115 : vector<16x23xf32> to vector<16x23xbf16>
    %c0_110 = arith.constant 0 : index
    %c437 = arith.constant 437 : index
    %117 = vector.load %arg10[%c0_110, %c437] : memref<16x483xbf16, #tpu.memory_space<vmem>>, vector<16x23xbf16>
    tpu.vector_store %arg10[%c0_110, %c437], %116 {strides = array<i32>} : memref<16x483xbf16, #tpu.memory_space<vmem>>, vector<16x23xbf16>,
    %c0_111 = arith.constant 0 : index
    %c2000 = arith.constant 2000 : index
    %118 = vector.load %arg9[%c0_111, %c2000] : memref<16x2045xbf16, #tpu.memory_space<vmem>>, vector<16x45xbf16>
    %c0_112 = arith.constant 0 : index
    %c0_113 = arith.constant 0 : index
    %119 = vector.load %arg6[%c0_112, %c0_113] : memref<45x23xbf16, #tpu.memory_space<vmem>>, vector<45x23xbf16>
    %cst_114 = arith.constant dense<0.000000e+00> : vector<16x23xf32>
    %120 = tpu.matmul %118, %119, %cst_114 {dimension_numbers = #tpu.dot_dimension_numbers<[1], [0], [0], [1], [0, 0, 1, 1], [], []>} : vector<16x45xbf16>, vector<45x23xbf16>, vector<16x23xf32> -> vector<16x23xf32>
    %121 = arith.truncf %120 : vector<16x23xf32> to vector<16x23xbf16>
    %c0_115 = arith.constant 0 : index
    %c460 = arith.constant 460 : index
    %122 = vector.load %arg10[%c0_115, %c460] : memref<16x483xbf16, #tpu.memory_space<vmem>>, vector<16x23xbf16>
    tpu.vector_store %arg10[%c0_115, %c460], %121 {strides = array<i32>} : memref<16x483xbf16, #tpu.memory_space<vmem>>, vector<16x23xbf16>,
    %c0_116 = arith.constant 0 : index
    %c0_117 = arith.constant 0 : index
    %123 = vector.load %arg10[%c0_116, %c0_117] : memref<16x483xbf16, #tpu.memory_space<vmem>>, vector<16x411xbf16>
    %c0_118 = arith.constant 0 : index
    %c0_119 = arith.constant 0 : index
    %124 = vector.load %arg11[%c0_118, %c0_119] : memref<256x411xbf16, #tpu.memory_space<vmem>>, vector<16x411xbf16>
    tpu.vector_store %arg11[%c0_118, %c0_119], %123 {strides = array<i32>} : memref<256x411xbf16, #tpu.memory_space<vmem>>, vector<16x411xbf16>,
    %c0_120 = arith.constant 0 : index
    %c1 = arith.constant 1 : index
    %125 = vector.load %arg10[%c0_120, %c1] : memref<16x483xbf16, #tpu.memory_space<vmem>>, vector<16x411xbf16>
    %c16 = arith.constant 16 : index
    %c0_121 = arith.constant 0 : index
    %126 = vector.load %arg11[%c16, %c0_121] : memref<256x411xbf16, #tpu.memory_space<vmem>>, vector<16x411xbf16>
    tpu.vector_store %arg11[%c16, %c0_121], %125 {strides = array<i32>} : memref<256x411xbf16, #tpu.memory_space<vmem>>, vector<16x411xbf16>,
    %c0_122 = arith.constant 0 : index
    %c2 = arith.constant 2 : index
    %127 = vector.load %arg10[%c0_122, %c2] : memref<16x483xbf16, #tpu.memory_space<vmem>>, vector<16x411xbf16>
    %c32 = arith.constant 32 : index
    %c0_123 = arith.constant 0 : index
    %128 = vector.load %arg11[%c32, %c0_123] : memref<256x411xbf16, #tpu.memory_space<vmem>>, vector<16x411xbf16>
    tpu.vector_store %arg11[%c32, %c0_123], %127 {strides = array<i32>} : memref<256x411xbf16, #tpu.memory_space<vmem>>, vector<16x411xbf16>,
    %c0_124 = arith.constant 0 : index
    %c3 = arith.constant 3 : index
    %129 = vector.load %arg10[%c0_124, %c3] : memref<16x483xbf16, #tpu.memory_space<vmem>>, vector<16x411xbf16>
    %c48 = arith.constant 48 : index
    %c0_125 = arith.constant 0 : index
    %130 = vector.load %arg11[%c48, %c0_125] : memref<256x411xbf16, #tpu.memory_space<vmem>>, vector<16x411xbf16>
    tpu.vector_store %arg11[%c48, %c0_125], %129 {strides = array<i32>} : memref<256x411xbf16, #tpu.memory_space<vmem>>, vector<16x411xbf16>,
    %c0_126 = arith.constant 0 : index
    %c23_127 = arith.constant 23 : index
    %131 = vector.load %arg10[%c0_126, %c23_127] : memref<16x483xbf16, #tpu.memory_space<vmem>>, vector<16x411xbf16>
    %c64 = arith.constant 64 : index
    %c0_128 = arith.constant 0 : index
    %132 = vector.load %arg11[%c64, %c0_128] : memref<256x411xbf16, #tpu.memory_space<vmem>>, vector<16x411xbf16>
    tpu.vector_store %arg11[%c64, %c0_128], %131 {strides = array<i32>} : memref<256x411xbf16, #tpu.memory_space<vmem>>, vector<16x411xbf16>,
    %c0_129 = arith.constant 0 : index
    %c24 = arith.constant 24 : index
    %133 = vector.load %arg10[%c0_129, %c24] : memref<16x483xbf16, #tpu.memory_space<vmem>>, vector<16x411xbf16>
    %c80 = arith.constant 80 : index
    %c0_130 = arith.constant 0 : index
    %134 = vector.load %arg11[%c80, %c0_130] : memref<256x411xbf16, #tpu.memory_space<vmem>>, vector<16x411xbf16>
    tpu.vector_store %arg11[%c80, %c0_130], %133 {strides = array<i32>} : memref<256x411xbf16, #tpu.memory_space<vmem>>, vector<16x411xbf16>,
    %c0_131 = arith.constant 0 : index
    %c25 = arith.constant 25 : index
    %135 = vector.load %arg10[%c0_131, %c25] : memref<16x483xbf16, #tpu.memory_space<vmem>>, vector<16x411xbf16>
    %c96 = arith.constant 96 : index
    %c0_132 = arith.constant 0 : index
    %136 = vector.load %arg11[%c96, %c0_132] : memref<256x411xbf16, #tpu.memory_space<vmem>>, vector<16x411xbf16>
    tpu.vector_store %arg11[%c96, %c0_132], %135 {strides = array<i32>} : memref<256x411xbf16, #tpu.memory_space<vmem>>, vector<16x411xbf16>,
    %c0_133 = arith.constant 0 : index
    %c26 = arith.constant 26 : index
    %137 = vector.load %arg10[%c0_133, %c26] : memref<16x483xbf16, #tpu.memory_space<vmem>>, vector<16x411xbf16>
    %c112 = arith.constant 112 : index
    %c0_134 = arith.constant 0 : index
    %138 = vector.load %arg11[%c112, %c0_134] : memref<256x411xbf16, #tpu.memory_space<vmem>>, vector<16x411xbf16>
    tpu.vector_store %arg11[%c112, %c0_134], %137 {strides = array<i32>} : memref<256x411xbf16, #tpu.memory_space<vmem>>, vector<16x411xbf16>,
    %c0_135 = arith.constant 0 : index
    %c46_136 = arith.constant 46 : index
    %139 = vector.load %arg10[%c0_135, %c46_136] : memref<16x483xbf16, #tpu.memory_space<vmem>>, vector<16x411xbf16>
    %c128 = arith.constant 128 : index
    %c0_137 = arith.constant 0 : index
    %140 = vector.load %arg11[%c128, %c0_137] : memref<256x411xbf16, #tpu.memory_space<vmem>>, vector<16x411xbf16>
    tpu.vector_store %arg11[%c128, %c0_137], %139 {strides = array<i32>} : memref<256x411xbf16, #tpu.memory_space<vmem>>, vector<16x411xbf16>,
    %c0_138 = arith.constant 0 : index
    %c47 = arith.constant 47 : index
    %141 = vector.load %arg10[%c0_138, %c47] : memref<16x483xbf16, #tpu.memory_space<vmem>>, vector<16x411xbf16>
    %c144 = arith.constant 144 : index
    %c0_139 = arith.constant 0 : index
    %142 = vector.load %arg11[%c144, %c0_139] : memref<256x411xbf16, #tpu.memory_space<vmem>>, vector<16x411xbf16>
    tpu.vector_store %arg11[%c144, %c0_139], %141 {strides = array<i32>} : memref<256x411xbf16, #tpu.memory_space<vmem>>, vector<16x411xbf16>,
    %c0_140 = arith.constant 0 : index
    %c48_141 = arith.constant 48 : index
    %143 = vector.load %arg10[%c0_140, %c48_141] : memref<16x483xbf16, #tpu.memory_space<vmem>>, vector<16x411xbf16>
    %c160 = arith.constant 160 : index
    %c0_142 = arith.constant 0 : index
    %144 = vector.load %arg11[%c160, %c0_142] : memref<256x411xbf16, #tpu.memory_space<vmem>>, vector<16x411xbf16>
    tpu.vector_store %arg11[%c160, %c0_142], %143 {strides = array<i32>} : memref<256x411xbf16, #tpu.memory_space<vmem>>, vector<16x411xbf16>,
    %c0_143 = arith.constant 0 : index
    %c49 = arith.constant 49 : index
    %145 = vector.load %arg10[%c0_143, %c49] : memref<16x483xbf16, #tpu.memory_space<vmem>>, vector<16x411xbf16>
    %c176 = arith.constant 176 : index
    %c0_144 = arith.constant 0 : index
    %146 = vector.load %arg11[%c176, %c0_144] : memref<256x411xbf16, #tpu.memory_space<vmem>>, vector<16x411xbf16>
    tpu.vector_store %arg11[%c176, %c0_144], %145 {strides = array<i32>} : memref<256x411xbf16, #tpu.memory_space<vmem>>, vector<16x411xbf16>,
    %c0_145 = arith.constant 0 : index
    %c69_146 = arith.constant 69 : index
    %147 = vector.load %arg10[%c0_145, %c69_146] : memref<16x483xbf16, #tpu.memory_space<vmem>>, vector<16x411xbf16>
    %c192 = arith.constant 192 : index
    %c0_147 = arith.constant 0 : index
    %148 = vector.load %arg11[%c192, %c0_147] : memref<256x411xbf16, #tpu.memory_space<vmem>>, vector<16x411xbf16>
    tpu.vector_store %arg11[%c192, %c0_147], %147 {strides = array<i32>} : memref<256x411xbf16, #tpu.memory_space<vmem>>, vector<16x411xbf16>,
    %c0_148 = arith.constant 0 : index
    %c70 = arith.constant 70 : index
    %149 = vector.load %arg10[%c0_148, %c70] : memref<16x483xbf16, #tpu.memory_space<vmem>>, vector<16x411xbf16>
    %c208 = arith.constant 208 : index
    %c0_149 = arith.constant 0 : index
    %150 = vector.load %arg11[%c208, %c0_149] : memref<256x411xbf16, #tpu.memory_space<vmem>>, vector<16x411xbf16>
    tpu.vector_store %arg11[%c208, %c0_149], %149 {strides = array<i32>} : memref<256x411xbf16, #tpu.memory_space<vmem>>, vector<16x411xbf16>,
    %c0_150 = arith.constant 0 : index
    %c71 = arith.constant 71 : index
    %151 = vector.load %arg10[%c0_150, %c71] : memref<16x483xbf16, #tpu.memory_space<vmem>>, vector<16x411xbf16>
    %c224 = arith.constant 224 : index
    %c0_151 = arith.constant 0 : index
    %152 = vector.load %arg11[%c224, %c0_151] : memref<256x411xbf16, #tpu.memory_space<vmem>>, vector<16x411xbf16>
    tpu.vector_store %arg11[%c224, %c0_151], %151 {strides = array<i32>} : memref<256x411xbf16, #tpu.memory_space<vmem>>, vector<16x411xbf16>,
    %c0_152 = arith.constant 0 : index
    %c72 = arith.constant 72 : index
    %153 = vector.load %arg10[%c0_152, %c72] : memref<16x483xbf16, #tpu.memory_space<vmem>>, vector<16x411xbf16>
    %c240 = arith.constant 240 : index
    %c0_153 = arith.constant 0 : index
    %154 = vector.load %arg11[%c240, %c0_153] : memref<256x411xbf16, #tpu.memory_space<vmem>>, vector<16x411xbf16>
    tpu.vector_store %arg11[%c240, %c0_153], %153 {strides = array<i32>} : memref<256x411xbf16, #tpu.memory_space<vmem>>, vector<16x411xbf16>,
    %c0_154 = arith.constant 0 : index
    %c0_155 = arith.constant 0 : index
    %155 = vector.load %arg4[%c0_154, %c0_155] : memref<15x256xbf16, #tpu.memory_space<vmem>>, vector<15x256xbf16>
    %c0_156 = arith.constant 0 : index
    %c0_157 = arith.constant 0 : index
    %156 = vector.load %arg11[%c0_156, %c0_157] : memref<256x411xbf16, #tpu.memory_space<vmem>>, vector<256x411xbf16>
    %cst_158 = arith.constant dense<0.000000e+00> : vector<15x411xf32>
    %157 = tpu.matmul %155, %156, %cst_158 {dimension_numbers = #tpu.dot_dimension_numbers<[1], [0], [0], [1], [0, 0, 1, 1], [], []>} : vector<15x256xbf16>, vector<256x411xbf16>, vector<15x411xf32> -> vector<15x411xf32>
    %158 = vector.extract_strided_slice %157 {offsets = [0, 0], sizes = [15, 387], strides = [1, 1]} : vector<15x411xf32> to vector<15x387xf32>
    %159 = vector.extract_strided_slice %157 {offsets = [0, 1], sizes = [15, 387], strides = [1, 1]} : vector<15x411xf32> to vector<15x387xf32>
    %160 = arith.maximumf %158, %159 : vector<15x387xf32>
    %161 = vector.extract_strided_slice %157 {offsets = [0, 23], sizes = [15, 387], strides = [1, 1]} : vector<15x411xf32> to vector<15x387xf32>
    %162 = vector.extract_strided_slice %157 {offsets = [0, 24], sizes = [15, 387], strides = [1, 1]} : vector<15x411xf32> to vector<15x387xf32>
    %163 = arith.maximumf %161, %162 : vector<15x387xf32>
    %164 = arith.maximumf %160, %163 : vector<15x387xf32>
    %c0_159 = arith.constant 0 : index
    %c0_160 = arith.constant 0 : index
    %165 = vector.load %arg5[%c0_159, %c0_160] : memref<15x1xf32, #tpu.memory_space<vmem>>, vector<15x1xf32>
    %166 = vector.broadcast %165 : vector<15x1xf32> to vector<15x387xf32>
    %167 = arith.addf %164, %166 : vector<15x387xf32>
    %cst_161 = arith.constant 0.000000e+00 : f32
    %168 = vector.broadcast %cst_161 : f32 to vector<15x387xf32>
    %169 = arith.maximumf %167, %168 : vector<15x387xf32>
    %170 = vector.extract_strided_slice %169 {offsets = [0, 0], sizes = [15, 19], strides = [1, 1]} : vector<15x387xf32> to vector<15x19xf32>
    %c0_162 = arith.constant 0 : index
    %c0_163 = arith.constant 0 : index
    %171 = vector.load %arg7[%c0_162, %c0_163] : memref<19x10xf32, #tpu.memory_space<vmem>>, vector<19x10xf32>
    %cst_164 = arith.constant dense<0.000000e+00> : vector<15x10xf32>
    %172 = tpu.matmul %170, %171, %cst_164 {dimension_numbers = #tpu.dot_dimension_numbers<[1], [0], [0], [1], [0, 0, 1, 1], [], []>} : vector<15x19xf32>, vector<19x10xf32>, vector<15x10xf32> -> vector<15x10xf32>
    %173 = vector.extract_strided_slice %169 {offsets = [0, 46], sizes = [15, 19], strides = [1, 1]} : vector<15x387xf32> to vector<15x19xf32>
    %c0_165 = arith.constant 0 : index
    %c0_166 = arith.constant 0 : index
    %174 = vector.load %arg7[%c0_165, %c0_166] : memref<19x10xf32, #tpu.memory_space<vmem>>, vector<19x10xf32>
    %cst_167 = arith.constant dense<0.000000e+00> : vector<15x10xf32>
    %175 = tpu.matmul %173, %174, %cst_167 {dimension_numbers = #tpu.dot_dimension_numbers<[1], [0], [0], [1], [0, 0, 1, 1], [], []>} : vector<15x19xf32>, vector<19x10xf32>, vector<15x10xf32> -> vector<15x10xf32>
    %176 = vector.extract_strided_slice %169 {offsets = [0, 92], sizes = [15, 19], strides = [1, 1]} : vector<15x387xf32> to vector<15x19xf32>
    %c0_168 = arith.constant 0 : index
    %c0_169 = arith.constant 0 : index
    %177 = vector.load %arg7[%c0_168, %c0_169] : memref<19x10xf32, #tpu.memory_space<vmem>>, vector<19x10xf32>
    %cst_170 = arith.constant dense<0.000000e+00> : vector<15x10xf32>
    %178 = tpu.matmul %176, %177, %cst_170 {dimension_numbers = #tpu.dot_dimension_numbers<[1], [0], [0], [1], [0, 0, 1, 1], [], []>} : vector<15x19xf32>, vector<19x10xf32>, vector<15x10xf32> -> vector<15x10xf32>
    %179 = vector.extract_strided_slice %169 {offsets = [0, 138], sizes = [15, 19], strides = [1, 1]} : vector<15x387xf32> to vector<15x19xf32>
    %c0_171 = arith.constant 0 : index
    %c0_172 = arith.constant 0 : index
    %180 = vector.load %arg7[%c0_171, %c0_172] : memref<19x10xf32, #tpu.memory_space<vmem>>, vector<19x10xf32>
    %cst_173 = arith.constant dense<0.000000e+00> : vector<15x10xf32>
    %181 = tpu.matmul %179, %180, %cst_173 {dimension_numbers = #tpu.dot_dimension_numbers<[1], [0], [0], [1], [0, 0, 1, 1], [], []>} : vector<15x19xf32>, vector<19x10xf32>, vector<15x10xf32> -> vector<15x10xf32>
    %182 = vector.extract_strided_slice %169 {offsets = [0, 184], sizes = [15, 19], strides = [1, 1]} : vector<15x387xf32> to vector<15x19xf32>
    %c0_174 = arith.constant 0 : index
    %c0_175 = arith.constant 0 : index
    %183 = vector.load %arg7[%c0_174, %c0_175] : memref<19x10xf32, #tpu.memory_space<vmem>>, vector<19x10xf32>
    %cst_176 = arith.constant dense<0.000000e+00> : vector<15x10xf32>
    %184 = tpu.matmul %182, %183, %cst_176 {dimension_numbers = #tpu.dot_dimension_numbers<[1], [0], [0], [1], [0, 0, 1, 1], [], []>} : vector<15x19xf32>, vector<19x10xf32>, vector<15x10xf32> -> vector<15x10xf32>
    %185 = vector.extract_strided_slice %169 {offsets = [0, 230], sizes = [15, 19], strides = [1, 1]} : vector<15x387xf32> to vector<15x19xf32>
    %c0_177 = arith.constant 0 : index
    %c0_178 = arith.constant 0 : index
    %186 = vector.load %arg7[%c0_177, %c0_178] : memref<19x10xf32, #tpu.memory_space<vmem>>, vector<19x10xf32>
    %cst_179 = arith.constant dense<0.000000e+00> : vector<15x10xf32>
    %187 = tpu.matmul %185, %186, %cst_179 {dimension_numbers = #tpu.dot_dimension_numbers<[1], [0], [0], [1], [0, 0, 1, 1], [], []>} : vector<15x19xf32>, vector<19x10xf32>, vector<15x10xf32> -> vector<15x10xf32>
    %188 = vector.extract_strided_slice %169 {offsets = [0, 276], sizes = [15, 19], strides = [1, 1]} : vector<15x387xf32> to vector<15x19xf32>
    %c0_180 = arith.constant 0 : index
    %c0_181 = arith.constant 0 : index
    %189 = vector.load %arg7[%c0_180, %c0_181] : memref<19x10xf32, #tpu.memory_space<vmem>>, vector<19x10xf32>
    %cst_182 = arith.constant dense<0.000000e+00> : vector<15x10xf32>
    %190 = tpu.matmul %188, %189, %cst_182 {dimension_numbers = #tpu.dot_dimension_numbers<[1], [0], [0], [1], [0, 0, 1, 1], [], []>} : vector<15x19xf32>, vector<19x10xf32>, vector<15x10xf32> -> vector<15x10xf32>
    %191 = vector.extract_strided_slice %169 {offsets = [0, 322], sizes = [15, 19], strides = [1, 1]} : vector<15x387xf32> to vector<15x19xf32>
    %c0_183 = arith.constant 0 : index
    %c0_184 = arith.constant 0 : index
    %192 = vector.load %arg7[%c0_183, %c0_184] : memref<19x10xf32, #tpu.memory_space<vmem>>, vector<19x10xf32>
    %cst_185 = arith.constant dense<0.000000e+00> : vector<15x10xf32>
    %193 = tpu.matmul %191, %192, %cst_185 {dimension_numbers = #tpu.dot_dimension_numbers<[1], [0], [0], [1], [0, 0, 1, 1], [], []>} : vector<15x19xf32>, vector<19x10xf32>, vector<15x10xf32> -> vector<15x10xf32>
    %194 = vector.extract_strided_slice %169 {offsets = [0, 368], sizes = [15, 19], strides = [1, 1]} : vector<15x387xf32> to vector<15x19xf32>
    %c0_186 = arith.constant 0 : index
    %c0_187 = arith.constant 0 : index
    %195 = vector.load %arg7[%c0_186, %c0_187] : memref<19x10xf32, #tpu.memory_space<vmem>>, vector<19x10xf32>
    %cst_188 = arith.constant dense<0.000000e+00> : vector<15x10xf32>
    %196 = tpu.matmul %194, %195, %cst_188 {dimension_numbers = #tpu.dot_dimension_numbers<[1], [0], [0], [1], [0, 0, 1, 1], [], []>} : vector<15x19xf32>, vector<19x10xf32>, vector<15x10xf32> -> vector<15x10xf32>
    %197 = tpu.concatenate %172, %175, %178, %181, %184, %187, %190, %193, %196 in 1 : vector<15x10xf32>, vector<15x10xf32>, vector<15x10xf32>, vector<15x10xf32>, vector<15x10xf32>, vector<15x10xf32>, vector<15x10xf32>, vector<15x10xf32>, vector<15x10xf32> -> vector<15x90xf32>
    %c0_189 = arith.constant 0 : index
    %c0_190 = arith.constant 0 : index
    %c0_191 = arith.constant 0 : index
    %198 = vector.load %arg8[%c0_189, %c0_190, %c0_191] : memref<1x15x90xf32, #tpu.memory_space<vmem>>, vector<1x15x90xf32>
    %199 = vector.shape_cast %198 : vector<1x15x90xf32> to vector<15x90xf32>
    %200 = vector.shape_cast %197 : vector<15x90xf32> to vector<1x15x90xf32>
    tpu.vector_store %arg8[%c0_189, %c0_190, %c0_191], %200 {strides = array<i32>} : memref<1x15x90xf32, #tpu.memory_space<vmem>>, vector<1x15x90xf32>,
    return
  }
  func.func @transform_0(%arg0: i32) -> (i32, i32, i32) {
    %c0_i32 = arith.constant 0 : i32
    %c0_i32_0 = arith.constant 0 : i32
    %c0_i32_1 = arith.constant 0 : i32
    return %arg0, %c0_i32, %c0_i32_0 : i32, i32, i32
  }
  func.func @transform_1(%arg0: i32) -> (i32, i32) {
    %c0_i32 = arith.constant 0 : i32
    %c0_i32_0 = arith.constant 0 : i32
    %c0_i32_1 = arith.constant 0 : i32
    return %c0_i32, %c0_i32_0 : i32, i32
  }
  func.func @transform_2(%arg0: i32) -> (i32, i32) {
    %c0_i32 = arith.constant 0 : i32
    %c0_i32_0 = arith.constant 0 : i32
    %c0_i32_1 = arith.constant 0 : i32
    return %c0_i32, %c0_i32_0 : i32, i32
  }
  func.func @transform_3(%arg0: i32) -> (i32, i32) {
    %c0_i32 = arith.constant 0 : i32
    %c0_i32_0 = arith.constant 0 : i32
    %c0_i32_1 = arith.constant 0 : i32
    return %c0_i32, %c0_i32_0 : i32, i32
  }
  func.func @transform_4(%arg0: i32) -> (i32, i32) {
    %c0_i32 = arith.constant 0 : i32
    %c0_i32_0 = arith.constant 0 : i32
    %c0_i32_1 = arith.constant 0 : i32
    return %c0_i32, %c0_i32_0 : i32, i32
  }
  func.func @transform_5(%arg0: i32) -> (i32, i32) {
    %c0_i32 = arith.constant 0 : i32
    %c0_i32_0 = arith.constant 0 : i32
    %c0_i32_1 = arith.constant 0 : i32
    return %c0_i32, %c0_i32_0 : i32, i32
  }
  func.func @transform_6(%arg0: i32) -> (i32, i32) {
    %c0_i32 = arith.constant 0 : i32
    %c0_i32_0 = arith.constant 0 : i32
    %c0_i32_1 = arith.constant 0 : i32
    return %c0_i32, %c0_i32_0 : i32, i32
  }
  func.func @transform_7(%arg0: i32) -> (i32, i32, i32) {
    %c0_i32 = arith.constant 0 : i32
    %c0_i32_0 = arith.constant 0 : i32
    %c0_i32_1 = arith.constant 0 : i32
    return %arg0, %c0_i32, %c0_i32_0 : i32, i32, i32
  }
}

</mosaic_0001>

<bundles_post_ra>
// kernel: cnn_forward.1
= control target key start
LH: loop header
LB: loop body
LE: loop exit
PB: predicated region body
PF: predicated region fallthrough
CT: control target
= control target key end

     0   :  { %s6182_s24 = smov 0   ;;  %s7569_s0 = inlined_call_operand.vmem [shape: bf16[2,75,2100], index: 0, kind: input, shape index: {}]   ;;  %s7570_s1 = inlined_call_operand.vmem [shape: bf16[16,75], index: 1, kind: input, shape index: {}]   ;;  %s7571_s2 = inlined_call_operand.vmem [shape: f32[16,1], index: 2, kind: input, shape index: {}]   ;;  %s7572_s3 = inlined_call_operand.vmem [shape: bf16[15,256], index: 3, kind: input, shape index: {}]   ;;  %s7573_s4 = inlined_call_operand.vmem [shape: f32[15,1], index: 4, kind: input, shape index: {}]   ;;  %s7574_s5 = inlined_call_operand.vmem [shape: bf16[45,23], index: 5, kind: input, shape index: {}]   ;;  %s7575_s6 = inlined_call_operand.vmem [shape: f32[19,10], index: 6, kind: input, shape index: {}]   ;;  %s7576_s7 = inlined_call_operand.vmem [shape: f32[2,15,90], index: 7, kind: output, shape index: {}]  }
   0x1 LB: > { %s5118_s25 = sadd.s32 4294967295, %s6081_s24   ;;  %p5122_p0 = scmp.ge.s32.totalorder %s6081_s24, 1  ;;  %s6081_s24 = sphi %s6182_s24, %s17_s24  }
   0x2   : > { %p237_p1 = scmp.lt.s32.totalorder %s6081_s24, 3 }
   0x4   : > { %p238_p2 = pnand %p5122_p0, %p237_p1 }
   0x5   : > { %p269_p3 = scmp.lt.s32.totalorder (!%p238_p2), %s5118_s25, 1  ;;  %vm795_vm0 = vcmask (!%p238_p2), 1045504   ;;  %v6083_v0 = vmov (!%p238_p2), 65535   ;;  %v6084_v2 = vmov (!%p238_p2), 0   ;;  %vm794_vm1 = vcmask (!%p238_p2), 1044480   ;;  %v6236_v30 = vld [vmem:[%s7570_s1] sm:$0xff] (!%p238_p2)  }
   0x6   : > { %241 = sbr.rel (%p238_p2) target bundleno = 2286 (0x8ee), region = 48  ;;  %v6191_v1 = vsel (!%p238_p2), %vm795_vm0, 4294967295, %v6083_v0  ;;  %881 = vmatprep.mubr.bf16.mxu0 (!%p238_p2), %v6084_v2  ;;  %924 = vmatprep.mubr.bf16.mxu1 (!%p238_p2), %v6084_v2  ;;  %v796_v12 = vsel (!%p238_p2), %vm794_vm1, 4294967295, %v6083_v0  ;;  %vm790_vm2 = vcmask (!%p238_p2), 613376   ;;  %vm6086_vm3 = vmmov (!%p238_p2), 0   ;;  %s6087_s9 = smov (!%p238_p2), 127  }
   0x7   : > { %5881 = vset.pattern.permute.xlu0 (!%p238_p2), %v6084_v2  ;;  %5882 = vset.pattern.permute.xlu1 (!%p238_p2), %v6084_v2  ;;  %v6222_v20 = vsel (!%p238_p2), %vm795_vm0, %v796_v12, 0  ;;  %vm1777_vm4 = vcmask (!%p238_p2), 1046528   ;;  %vm1330_vm5 = vcmask (!%p238_p2), 1039360   ;;  %s6088_s20 = smov (!%p238_p2), 78   ;;  %vm1543_vm6 = vcmask (!%p238_p2), 637952   ;;  %s6089_s13 = smov (!%p238_p2), 28  }
   0x8   : > { %vm1773_vm7 = vcmask (!%p238_p2), 367616   ;;  %s6090_s14 = smov (!%p238_p2), 56   ;;  %s6091_s15 = smov (!%p238_p2), 112   ;;  %vm1841_vm8 = vcmask (!%p238_p2), 228352   ;;  %vm2171_vm9 = vcmask (!%p238_p2), 97280   ;;  %vm7581_vm10 = vcmask (!%p238_p2), 326656  }
   0x9   : > { %s6092_s16 = smov (!%p238_p2), 84   ;;  %s6093_s17 = smov (!%p238_p2), 12   ;;  %vm1747_vm11 = vcmask (!%p238_p2), 1022976   ;;  %vm2590_vm12 = vcmask (!%p238_p2), 195584   ;;  %vm1825_vm13 = vcmask (!%p238_p2), 187392   ;;  %vm2922_vm14 = vcmask (!%p238_p2), 64512  }
   0xa   : > { %s7577_s18 = smov (!%p238_p2), 40   ;;  %s6095_s19 = smov (!%p238_p2), 68   ;;  %vm3009_vm15 = vcmask (!%p238_p2), 293888   ;;  %vm7582_vm0 = vcmask (!%p238_p2), 162816   ;;  %vm1912_vm1 = vcmask (!%p238_p2), 375992  }
   0xb   : > { %s6096_s21 = smov (!%p238_p2), 96   ;;  %s6098_s22 = smov (!%p238_p2), 24  }
   0xc   : > { %s6099_s23 = smov (!%p238_p2), 52   ;;  %s6108_s27 = smov (!%p238_p2), 48  }
   0xd   : > { %s7593_s25 = smov (!%p269_p3, %s5118_s25), 1  ;;  %s6109_s28 = smov 23  }
   0xe   : > { %s5813_s26 = smul.u32 680, %s7593_s25  ;;  %s6111_s30 = smov 69  }
   0xf   : > { %s6112_s8 = smov 115   ;;  %s6113_s10 = smov 10  }
  0x10   : > { %s6203_s29 = scalar_lea.vmem %s7569_s0, %s5813_s26  ;;  %s6100_s26 = smov 80  }
  0x11   : > { %v5883_v3 = vld [vmem:[%s6203_s29 + $0x4] ss:$68 sps:$4 sm:$0xff]   ;;  %v5885_v4 = vld [vmem:[%s6203_s29 + $0xc] ss:$68 sps:$4 sm:$0xff]   ;;  %v5891_v8 = vld [vmem:[%s6203_s29 + $0x94] ss:$68 sps:$4 sm:$0xff]  }
  0x12   : > { %849 = vmatprep.subr.bf16.mxu0 %v5883_v3  ;;  %v5887_v5 = vld [vmem:[%s6203_s29] ss:$68 sps:$4 sm:$0xff]   ;;  %v5888_v6 = vld [vmem:[%s6203_s29 + $0x8] ss:$68 sps:$4 sm:$0xff]   ;;  %892 = vmatprep.subr.bf16.mxu1 %v5885_v4  ;;  %v5894_v10 = vld [vmem:[%s6203_s29 + $0x90] ss:$68 sps:$4 sm:$0xff]  }
  0x13   : > { %v5889_v7 = vld [vmem:[%s6203_s29 + $0x8c] ss:$68 sps:$4 sm:$0xff]   ;;  %850 = vmatpush1.bf16.msra.mxu0 %v5887_v5  ;;  %893 = vmatpush1.bf16.msra.mxu1 %v5888_v6  ;;  %v5895_v11 = vld [vmem:[%s6203_s29 + $0x114] ss:$68 sps:$4 sm:$0xff]   ;;  %v5897_v13 = vld [vmem:[%s6203_s29 + $0x11c] ss:$68 sps:$4 sm:$0xff]  }
  0x14   : > { %v5893_v9 = vld [vmem:[%s6203_s29 + $0x88] ss:$68 sps:$4 sm:$0xff]   ;;  %851 = vmatprep.subr.bf16.mxu0 %v5889_v7  ;;  %894 = vmatprep.subr.bf16.mxu1 %v5891_v8  ;;  %v5899_v14 = vld [vmem:[%s6203_s29 + $0x110] ss:$68 sps:$4 sm:$0xff]   ;;  %v5900_v15 = vld [vmem:[%s6203_s29 + $0x118] ss:$68 sps:$4 sm:$0xff]  }
  0x15   : > { %v5901_v16 = vld [vmem:[%s6203_s29 + $0x19c] ss:$68 sps:$4 sm:$0xff]   ;;  %v5903_v17 = vld [vmem:[%s6203_s29 + $0x1a4] ss:$68 sps:$4 sm:$0xff]   ;;  %v5916_v29 = vld [vmem:[%s6203_s29 + $0x14] ss:$68 sps:$4 sm:$0xff]  }
  0x16   : > { %v5905_v18 = vld [vmem:[%s6203_s29 + $0x198] ss:$68 sps:$4 sm:$0xff]   ;;  %v5906_v19 = vld [vmem:[%s6203_s29 + $0x1a0] ss:$68 sps:$4 sm:$0xff]   ;;  %v5914_v32 = vld [vmem:[%s6203_s29 + $0x10] ss:$68 sps:$4 sm:$0xff]  }
  0x17   : > { %852 = vmatpush1.bf16.msra.mxu0 %v5893_v9  ;;  %895 = vmatpush1.bf16.msra.mxu1 %v5894_v10  ;;  %v5907_v21 = vld [vmem:[%s6203_s29 + $0x224] ss:$68 sps:$4 sm:$0x3f]   ;;  %v5909_v22 = vld [vmem:[%s6203_s29 + $0x22c] ss:$68 sps:$4 sm:$0x3f]  }
  0x18   : > { %853 = vmatprep.subr.bf16.mxu0 %v5895_v11  ;;  %896 = vmatprep.subr.bf16.mxu1 %v5897_v13  ;;  %v802_v23 = vand.u32 %v5907_v21, %v6222_v20  ;;  %v5911_v24 = vld [vmem:[%s6203_s29 + $0x220] ss:$68 sps:$4 sm:$0x3f]   ;;  %v5912_v25 = vld [vmem:[%s6203_s29 + $0x228] ss:$68 sps:$4 sm:$0x3f]   ;;  %v808_v26 = vand.u32 %v5909_v22, %v6222_v20 }
  0x19   : > { %v799_v27 = vand.u32 %v5911_v24, %v6222_v20  ;;  %v805_v28 = vand.u32 %v5912_v25, %v6222_v20  ;;  %v5925_v31 = vld [vmem:[%s6203_s29 + $0x1c] ss:$68 sps:$4 sm:$0xff]   ;;  %v5931_v35 = vld [vmem:[%s6203_s29 + $0xa4] ss:$68 sps:$4 sm:$0xff]   ;;  %v5937_v39 = vld [vmem:[%s6203_s29 + $0x12c] ss:$68 sps:$4 sm:$0xff]  }
  0x1a   : > { %v5923_v33 = vld [vmem:[%s6203_s29 + $0x18] ss:$68 sps:$4 sm:$0xff]   ;;  %v5929_v37 = vld [vmem:[%s6203_s29 + $0xa0] ss:$68 sps:$4 sm:$0xff]   ;;  %v5928_v41 = vld [vmem:[%s6203_s29 + $0x1ac] ss:$68 sps:$4 sm:$0xff]  }
  0x1b   : > { %854 = vmatpush1.bf16.msra.mxu0 %v5899_v14  ;;  %897 = vmatpush1.bf16.msra.mxu1 %v5900_v15  ;;  %v5919_v34 = vld [vmem:[%s6203_s29 + $0x9c] ss:$68 sps:$4 sm:$0xff]   ;;  %v5922_v38 = vld [vmem:[%s6203_s29 + $0x124] ss:$68 sps:$4 sm:$0xff]   ;;  %v5940_v44 = vld [vmem:[%s6203_s29 + $0x1b4] ss:$68 sps:$4 sm:$0xff]  }
  0x1c   : > { %855 = vmatprep.subr.bf16.mxu0 %v5901_v16  ;;  %898 = vmatprep.subr.bf16.mxu1 %v5903_v17  ;;  %v5917_v36 = vld [vmem:[%s6203_s29 + $0x98] ss:$68 sps:$4 sm:$0xff]   ;;  %v5920_v40 = vld [vmem:[%s6203_s29 + $0x120] ss:$68 sps:$4 sm:$0xff]   ;;  %v5935_v43 = vld [vmem:[%s6203_s29 + $0x128] ss:$68 sps:$4 sm:$0xff]  }
  0x1d   : > { %v5934_v42 = vld [vmem:[%s6203_s29 + $0x234] ss:$68 sps:$4 sm:$0x3f]   ;;  %v5943_v45 = vld [vmem:[%s6203_s29 + $0x23c] ss:$68 sps:$4 sm:$0x3f]  }
  0x1e   : > { %v5926_v46 = vld [vmem:[%s6203_s29 + $0x1a8] ss:$68 sps:$4 sm:$0xff]   ;;  %v5932_v47 = vld [vmem:[%s6203_s29 + $0x230] ss:$68 sps:$4 sm:$0x3f]   ;;  %v814_v50 = vand.u32 %v5934_v42, %v6222_v20  ;;  %v820_v51 = vand.u32 %v5943_v45, %v6222_v20  ;;  %s6115_s11 = smov 79  }
  0x1f   : > { %856 = vmatpush1.bf16.msra.mxu0 %v5905_v18  ;;  %899 = vmatpush1.bf16.msra.mxu1 %v5906_v19  ;;  %v5938_v48 = vld [vmem:[%s6203_s29 + $0x1b0] ss:$68 sps:$4 sm:$0xff]   ;;  %v5941_v49 = vld [vmem:[%s6203_s29 + $0x238] ss:$68 sps:$4 sm:$0x3f]   ;;  %v811_v52 = vand.u32 %v5932_v47, %v6222_v20  ;;  %s6116_s12 = smov 102  }
  0x20   : > { %857 = vmatprep.subr.bf16.mxu0 %v802_v23  ;;  %900 = vmatprep.subr.bf16.mxu1 %v808_v26  ;;  %v817_v53 = vand.u32 %v5941_v49, %v6222_v20  ;;  %v5946_v54 = vld [vmem:[%s6203_s29 + $0x24] ss:$68 sps:$4 sm:$0xff]   ;;  %v5949_v55 = vld [vmem:[%s6203_s29 + $0x2c] ss:$68 sps:$4 sm:$0xff]   ;;  %v5955_v59 = vld [vmem:[%s6203_s29 + $0xb4] ss:$68 sps:$4 sm:$0xff]  }
  0x21   : > { %v5944_v56 = vld [vmem:[%s6203_s29 + $0x20] ss:$68 sps:$4 sm:$0xff]   ;;  %v5947_v57 = vld [vmem:[%s6203_s29 + $0x28] ss:$68 sps:$4 sm:$0xff]   ;;  %v5953_v61 = vld [vmem:[%s6203_s29 + $0xb0] ss:$68 sps:$4 sm:$0xff]  }
  0x22   : > { %v5952_v58 = vld [vmem:[%s6203_s29 + $0xac] ss:$68 sps:$4 sm:$0xff]   ;;  %v5958_v62 = vld [vmem:[%s6203_s29 + $0x134] ss:$68 sps:$4 sm:$0xff]   ;;  %v5961_v63 = vld [vmem:[%s6203_s29 + $0x13c] ss:$68 sps:$4 sm:$0xff]  }
  0x23   : > { %858 = vmatpush1.bf16.msra.mxu0 %v799_v27  ;;  %901 = vmatpush1.bf16.msra.mxu1 %v805_v28  ;;  %v5950_v60 = vld [vmem:[%s6203_s29 + $0xa8] ss:$68 sps:$4 sm:$0xff]   ;;  %v5956_v0 = vld [vmem:[%s6203_s29 + $0x130] ss:$68 sps:$4 sm:$0xff]   ;;  %v5959_v3 = vld [vmem:[%s6203_s29 + $0x138] ss:$68 sps:$4 sm:$0xff]  }
  0x24   : > { %935 = vmatprep.subr.bf16.mxu0 %v5916_v29  ;;  %978 = vmatprep.subr.bf16.mxu1 %v5925_v31  ;;  %v5964_v4 = vld [vmem:[%s6203_s29 + $0x1bc] ss:$68 sps:$4 sm:$0xff]   ;;  %v5970_v5 = vld [vmem:[%s6203_s29 + $0x244] ss:$68 sps:$4 sm:$0x3f]  }
  0x25   : > { %v5967_v6 = vld [vmem:[%s6203_s29 + $0x1c4] ss:$68 sps:$4 sm:$0xff]   ;;  %v5973_v7 = vld [vmem:[%s6203_s29 + $0x24c] ss:$68 sps:$4 sm:$0x3f]   ;;  %v826_v12 = vand.u32 %v5970_v5, %v6222_v20 }
  0x26   : > { %5212 = vmatmul.mubr.msk.bf16.vlgmr.msra.gmra.mrb[0].mxu0 %vm790_vm2, %v6236_v30  ;;  %5213 = vmatmul.mubr.msk.bf16.vlgmr.msra.gmra.mrb[0].mxu1 %vm790_vm2, %v6236_v30  ;;  %v5962_v8 = vld [vmem:[%s6203_s29 + $0x1b8] ss:$68 sps:$4 sm:$0xff]   ;;  %v5968_v9 = vld [vmem:[%s6203_s29 + $0x240] ss:$68 sps:$4 sm:$0x3f]   ;;  %v832_v13 = vand.u32 %v5973_v7, %v6222_v20 }
  0x27   : > { %936 = vmatpush1.bf16.msra.mxu0 %v5914_v32  ;;  %979 = vmatpush1.bf16.msra.mxu1 %v5923_v33  ;;  %v5965_v10 = vld [vmem:[%s6203_s29 + $0x1c0] ss:$68 sps:$4 sm:$0xff]   ;;  %v5971_v11 = vld [vmem:[%s6203_s29 + $0x248] ss:$68 sps:$4 sm:$0x3f]   ;;  %v823_v14 = vand.u32 %v5968_v9, %v6222_v20 }
  0x28   : > { %937 = vmatprep.subr.bf16.mxu0 %v5919_v34  ;;  %980 = vmatprep.subr.bf16.mxu1 %v5931_v35  ;;  %v829_v15 = vand.u32 %v5971_v11, %v6222_v20  ;;  %v5976_v16 = vld [vmem:[%s6203_s29 + $0x34] ss:$68 sps:$4 sm:$0xff]   ;;  %v5991_v17 = vld [vmem:[%s6203_s29 + $0x3c] ss:$68 sps:$4 sm:$0xff]   ;;  %v5994_v23 = vld [vmem:[%s6203_s29 + $0xc4] ss:$68 sps:$4 sm:$0xff]  }
  0x29   : > { %967 = vmatprep.mubr.bf16.mxu0 %v6084_v2  ;;  %1010 = vmatprep.mubr.bf16.mxu1 %v6084_v2  ;;  %v5974_v18 = vld [vmem:[%s6203_s29 + $0x30] ss:$68 sps:$4 sm:$0xff]   ;;  %v5989_v19 = vld [vmem:[%s6203_s29 + $0x38] ss:$68 sps:$4 sm:$0xff]   ;;  %v5992_v26 = vld [vmem:[%s6203_s29 + $0xc0] ss:$68 sps:$4 sm:$0xff]  }
  0x2a   : > { %v5979_v21 = vld [vmem:[%s6203_s29 + $0xbc] ss:$68 sps:$4 sm:$0xff]   ;;  %v5982_v27 = vld [vmem:[%s6203_s29 + $0x144] ss:$68 sps:$4 sm:$0xff]   ;;  %v5997_v28 = vld [vmem:[%s6203_s29 + $0x14c] ss:$68 sps:$4 sm:$0xff]  }
  0x2b   : > { %938 = vmatpush1.bf16.msra.mxu0 %v5917_v36  ;;  %981 = vmatpush1.bf16.msra.mxu1 %v5929_v37  ;;  %v6303_v22 = vld [vmem:[%s6203_s29 + $0x260] ss:$68 sps:$4 sm:$0x3f]   ;;  %v5977_v25 = vld [vmem:[%s6203_s29 + $0xb8] ss:$68 sps:$4 sm:$0xff]  }
  0x2c   : > { %939 = vmatprep.subr.bf16.mxu0 %v5922_v38  ;;  %982 = vmatprep.subr.bf16.mxu1 %v5937_v39  ;;  %v847_v24 = vand.u32 %v6303_v22, %v6222_v20  ;;  %v5980_v29 = vld [vmem:[%s6203_s29 + $0x140] ss:$68 sps:$4 sm:$0xff]   ;;  %v5995_v31 = vld [vmem:[%s6203_s29 + $0x148] ss:$68 sps:$4 sm:$0xff]   ;;  %v6000_v34 = vld [vmem:[%s6203_s29 + $0x1d4] ss:$68 sps:$4 sm:$0xff]  }
  0x2d   : > { %v5985_v32 = vld [vmem:[%s6203_s29 + $0x1cc] ss:$68 sps:$4 sm:$0xff]   ;;  %v5988_v33 = vld [vmem:[%s6203_s29 + $0x254] ss:$68 sps:$4 sm:$0x3f]  }
  0x2e   : > { %v6003_v35 = vld [vmem:[%s6203_s29 + $0x25c] ss:$68 sps:$4 sm:$0x3f]   ;;  %v5983_v36 = vld [vmem:[%s6203_s29 + $0x1c8] ss:$68 sps:$4 sm:$0xff]  }
  0x2f   : > { %940 = vmatpush1.bf16.msra.mxu0 %v5920_v40  ;;  %983 = vmatpush1.bf16.msra.mxu1 %v5935_v43  ;;  %v5986_v37 = vld [vmem:[%s6203_s29 + $0x250] ss:$68 sps:$4 sm:$0x3f]   ;;  %v6001_v39 = vld [vmem:[%s6203_s29 + $0x258] ss:$68 sps:$4 sm:$0x3f]   ;;  %v838_v40 = vand.u32 %v5988_v33, %v6222_v20 }
  0x30   : > { %941 = vmatprep.subr.bf16.mxu0 %v5928_v41  ;;  %984 = vmatprep.subr.bf16.mxu1 %v5940_v44  ;;  %v5998_v38 = vld [vmem:[%s6203_s29 + $0x1d0] ss:$68 sps:$4 sm:$0xff]   ;;  %v835_v41 = vand.u32 %v5986_v37, %v6222_v20  ;;  %v841_v42 = vand.u32 %v6001_v39, %v6222_v20  ;;  %v6004_v43 = vld [vmem:[%s6203_s29 + $0x40] ss:$68 sps:$4 sm:$0xff]   ;;  %v6085_v44 = vmov 0.0  }
  0x31   : > { %v6005_v45 = vld [vmem:[%s6203_s29 + $0xc8] ss:$68 sps:$4 sm:$0xff]   ;;  %v6011_v33 = vld [vmem:[%s7574_s5 + $0x10] sm:$0x7f]  }
  0x33   : > { %942 = vmatpush1.bf16.msra.mxu0 %v5926_v46  ;;  %985 = vmatpush1.bf16.msra.mxu1 %v5938_v48  ;;  %v6007_v46 = vld [vmem:[%s6203_s29 + $0x1d8] ss:$68 sps:$4 sm:$0xff]  }
  0x34   : > { %943 = vmatprep.subr.bf16.mxu0 %v814_v50  ;;  %986 = vmatprep.subr.bf16.mxu1 %v820_v51 }
  0x37   : > { %944 = vmatpush1.bf16.msra.mxu0 %v811_v52  ;;  %987 = vmatpush1.bf16.msra.mxu1 %v817_v53 }
  0x38   : > { %1021 = vmatprep.subr.bf16.mxu0 %v5946_v54  ;;  %1064 = vmatprep.subr.bf16.mxu1 %v5949_v55 }
  0x3a   : > { %5214 = vmatmul.mubr.msk.bf16.vlgmr.msra.gmra.mrb[4].mxu0 %vm790_vm2, %v6236_v30  ;;  %5215 = vmatmul.mubr.msk.bf16.vlgmr.msra.gmra.mrb[4].mxu1 %vm790_vm2, %v6236_v30 }
  0x3b   : > { %1022 = vmatpush1.bf16.msra.mxu0 %v5944_v56  ;;  %1065 = vmatpush1.bf16.msra.mxu1 %v5947_v57 }
  0x3c   : > { %1023 = vmatprep.subr.bf16.mxu0 %v5952_v58  ;;  %1066 = vmatprep.subr.bf16.mxu1 %v5955_v59 }
  0x3d   : > { %1053 = vmatprep.mubr.bf16.mxu0 %v6084_v2  ;;  %1096 = vmatprep.mubr.bf16.mxu1 %v6084_v2 }
  0x3f   : > { %1024 = vmatpush1.bf16.msra.mxu0 %v5950_v60  ;;  %1067 = vmatpush1.bf16.msra.mxu1 %v5953_v61 }
  0x40   : > { %1025 = vmatprep.subr.bf16.mxu0 %v5958_v62  ;;  %1068 = vmatprep.subr.bf16.mxu1 %v5961_v63  ;;  %v1640_v62 = vld [vmem:[%s7571_s2] sm:$0xff]  ;;  %v1641_v63 = vld [vmem:[%s7571_s2 + $0x8] sm:$0xff] }
  0x43   : > { %1026 = vmatpush1.bf16.msra.mxu0 %v5956_v0  ;;  %1069 = vmatpush1.bf16.msra.mxu1 %v5959_v3 }
  0x44   : > { %1027 = vmatprep.subr.bf16.mxu0 %v5964_v4  ;;  %1070 = vmatprep.subr.bf16.mxu1 %v5967_v6 }
  0x47   : > { %1028 = vmatpush1.bf16.msra.mxu0 %v5962_v8  ;;  %1071 = vmatpush1.bf16.msra.mxu1 %v5965_v10 }
  0x48   : > { %1029 = vmatprep.subr.bf16.mxu0 %v826_v12  ;;  %1072 = vmatprep.subr.bf16.mxu1 %v832_v13 }
  0x4b   : > { %1030 = vmatpush1.bf16.msra.mxu0 %v823_v14  ;;  %1073 = vmatpush1.bf16.msra.mxu1 %v829_v15 }
  0x4c   : > { %1107 = vmatprep.subr.bf16.mxu0 %v5976_v16  ;;  %1150 = vmatprep.subr.bf16.mxu1 %v5991_v17 }
  0x4e   : > { %5216 = vmatmul.mubr.msk.bf16.vlgmr.msra.gmra.mrb[8].mxu0 %vm790_vm2, %v6236_v30  ;;  %5217 = vmatmul.mubr.msk.bf16.vlgmr.msra.gmra.mrb[8].mxu1 %vm790_vm2, %v6236_v30 }
  0x4f   : > { %1108 = vmatpush1.bf16.msra.mxu0 %v5974_v18  ;;  %1151 = vmatpush1.bf16.msra.mxu1 %v5989_v19 }
  0x50   : > { %1109 = vmatprep.subr.bf16.mxu0 %v5979_v21  ;;  %1139 = vmatprep.mubr.bf16.mxu0 %v6084_v2 }
  0x51   : > { %1152 = vmatprep.subr.bf16.mxu1 %v5994_v23  ;;  %1182 = vmatprep.mubr.bf16.mxu1 %v6084_v2  ;;  %v844_v2 = vand.u32 %v6003_v35, %v6222_v20  ;;  %v6006_v20 = vld [vmem:[%s6203_s29 + $0x150] ss:$68 sps:$4 sm:$0xff]   ;;  %v6009_v23 = vld [vmem:[%s7574_s5] sm:$0xff]   ;;  %s6110_s29 = smov 46  }
  0x53   : > { %1110 = vmatpush1.bf16.msra.mxu0 %v5977_v25  ;;  %1153 = vmatpush1.bf16.msra.mxu1 %v5992_v26  ;;  %v6010_v26 = vld [vmem:[%s7574_s5 + $0x8] sm:$0xff]  }
  0x54   : > { %1111 = vmatprep.subr.bf16.mxu0 %v5982_v27  ;;  %1154 = vmatprep.subr.bf16.mxu1 %v5997_v28  ;;  %v6485_v27 = vsel %vm1777_vm4, %v6191_v1, 0  ;;  %vm2155_vm4 = vcmask 941792  }
  0x57   : > { %1112 = vmatpush1.bf16.msra.mxu0 %v5980_v29  ;;  %1155 = vmatpush1.bf16.msra.mxu1 %v5995_v31 }
  0x58   : > { %1113 = vmatprep.subr.bf16.mxu0 %v5985_v32  ;;  %1156 = vmatprep.subr.bf16.mxu1 %v6000_v34 }
  0x5b   : > { %1114 = vmatpush1.bf16.msra.mxu0 %v5983_v36  ;;  %1157 = vmatpush1.bf16.msra.mxu1 %v5998_v38  ;;  %v1781_v36 = vand.u32 %v6011_v33, %v6485_v27 }
  0x5c   : > { %1115 = vmatprep.subr.bf16.mxu0 %v838_v40  ;;  %1158 = vmatprep.subr.bf16.mxu1 %v844_v2 }
  0x5f   : > { %1116 = vmatpush1.bf16.msra.mxu0 %v835_v41  ;;  %1159 = vmatpush1.bf16.msra.mxu1 %v841_v42 }
  0x60   : > { %5472 = vmatprep.subr.bf16.mxu0 %v6085_v44  ;;  %5486 = vmatprep.subr.bf16.mxu1 %v6085_v44 }
  0x62   : > { %5218 = vmatmul.mubr.msk.bf16.vlgmr.msra.gmra.mrb[12].mxu0 %vm790_vm2, %v6236_v30  ;;  %5219 = vmatmul.mubr.msk.bf16.vlgmr.msra.gmra.mrb[12].mxu1 %vm790_vm2, %v6236_v30 }
  0x63   : > { %5473 = vmatpush3.bf16.msra.mxu0 %v6004_v43  ;;  %5482 = vmatprep.mubr.msk.bf16.mxu0 %vm6086_vm3, %v6085_v44 }
  0x64   : > { %5474 = vmatprep.subr.bf16.mxu0 %v6085_v44  ;;  %5492 = vmatprep.mubr.msk.bf16.mxu1 %vm6086_vm3, %v6085_v44 }
  0x65   : > { %5487 = vmatpush3.bf16.msra.mxu1 %v6009_v23 }
  0x66   : > { %5488 = vmatprep.subr.bf16.mxu1 %v6085_v44 }
  0x67   : > { %5475 = vmatpush3.bf16.msra.mxu0 %v6005_v45 }
  0x68   : > { %5476 = vmatprep.subr.bf16.mxu0 %v6085_v44 }
  0x69   : > { %5489 = vmatpush3.bf16.msra.mxu1 %v6010_v26 }
  0x6a   : > { %5490 = vmatprep.subr.bf16.mxu1 %v6085_v44 }
  0x6b   : > { %5477 = vmatpush3.bf16.msra.mxu0 %v6006_v20 }
  0x6c   : > { %5478 = vmatprep.subr.bf16.mxu0 %v6085_v44 }
  0x6d   : > { %5491 = vmatpush3.bf16.msra.mxu1 %v1781_v36 }
  0x6e   : > { %5496 = vmatprep.subr.bf16.mxu1 %v6085_v44 }
  0x6f   : > { %5479 = vmatpush3.bf16.msra.mxu0 %v6007_v46 }
  0x70   : > { %5480 = vmatprep.subr.bf16.mxu0 %v6085_v44 }
  0x73   : > { %5481 = vmatpush3.bf16.msra.mxu0 %v847_v24 }
  0x74   : > { %5506 = vmatprep.subr.bf16.mxu0 %v6085_v44 }
  0x76   : > { %5483 = vmatmul.mubr.msk.bf16.vlgmr.msra.gmra.mrb[16].mxu0 %vm790_vm2, %v6236_v30  ;;  %vm1993_vm2 = vcmask 564592  }
  0x77   : > { %5512 = vmatprep.mubr.msk.bf16.mxu0 %vm6086_vm3, %v6085_v44 }
  0xf9   : > { %v6355_v47 = vpop.f32.mrb[0].mxu0  ;;  %v6357_v48 = vpop.f32.mrb[0].mxu1 }
  0xfa   : > { %1270 = vrot.lane.b32.xlu1 %v6357_v48, %s6087_s9  ;;  %v6361_v49 = vpop.f32.mrb[1].mxu1  ;;  %1266 = vrot.lane.b32.xlu0 %v6355_v47, %s6087_s9  ;;  %v6365_v50 = vpop.f32.mrb[1].mxu0 }
  0xfb   : > { %v6367_v51 = vpop.f32.mrb[2].mxu0  ;;  %v6369_v30 = vpop.f32.mrb[2].mxu1 }
  0xfc   : > { %v6371_v52 = vpop.f32.mrb[3].mxu0  ;;  %v6373_v53 = vpop.f32.mrb[3].mxu1 }
  0xfe   : > { %1272 = vrot.lane.b32.xlu1 %v6361_v49, %s6087_s9  ;;  %1268 = vrot.lane.b32.xlu0 %v6365_v50, %s6087_s9 }
 0x102   : > { %1298 = vrot.lane.b32.xlu0 %v6367_v51, %s6087_s9  ;;  %1300 = vrot.lane.b32.xlu1 %v6371_v52, %s6087_s9 }
 0x106   : > { %1302 = vrot.lane.b32.xlu0 %v6369_v30, %s6087_s9  ;;  %1304 = vrot.lane.b32.xlu1 %v6373_v53, %s6087_s9 }
 0x10d   : > { %v6387_v54 = vpop.f32.mrb[4].mxu0  ;;  %v6389_v55 = vpop.f32.mrb[4].mxu1 }
 0x10e   : > { %1274 = vrot.lane.b32.xlu0 %v6387_v54, %s6087_s9  ;;  %v6393_v56 = vpop.f32.mrb[5].mxu0  ;;  %v6395_v57 = vpop.f32.mrb[5].mxu1 }
 0x10f   : > { %v6397_v58 = vpop.f32.mrb[6].mxu0  ;;  %v6399_v59 = vpop.f32.mrb[6].mxu1 }
 0x110   : > { %1306 = vrot.lane.b32.xlu1 %v6397_v58, %s6087_s9  ;;  %v6403_v60 = vpop.f32.mrb[7].mxu0  ;;  %v6405_v61 = vpop.f32.mrb[7].mxu1 }
 0x112   : > { %1276 = vrot.lane.b32.xlu0 %v6393_v56, %s6087_s9 }
 0x114   : > { %1308 = vrot.lane.b32.xlu1 %v6403_v60, %s6087_s9 }
 0x116   : > { %1278 = vrot.lane.b32.xlu0 %v6389_v55, %s6087_s9 }
 0x118   : > { %1310 = vrot.lane.b32.xlu1 %v6399_v59, %s6087_s9 }
 0x11a   : > { %1280 = vrot.lane.b32.xlu0 %v6395_v57, %s6087_s9 }
 0x11c   : > { %1312 = vrot.lane.b32.xlu1 %v6405_v61, %s6087_s9 }
 0x11e   : > { %1644 = vperm.xlu0 %5881, %v1640_v62  }
 0x120   : > { %1649 = vperm.xlu1 %5882, %v1641_v63  }
 0x121   : > { %v6425_v0 = vpop.f32.mrb[8].mxu0  ;;  %v6427_v3 = vpop.f32.mrb[8].mxu1 }
 0x122   : > { %1282 = vrot.lane.b32.xlu0 %v6425_v0, %s6087_s9  ;;  %v6431_v4 = vpop.f32.mrb[9].mxu0  ;;  %v6433_v5 = vpop.f32.mrb[9].mxu1 }
 0x123   : > { %v6435_v6 = vpop.f32.mrb[10].mxu0  ;;  %v6437_v7 = vpop.f32.mrb[10].mxu1 }
 0x124   : > { %1286 = vrot.lane.b32.xlu1 %v6427_v3, %s6087_s9  ;;  %v6441_v8 = vpop.f32.mrb[11].mxu0  ;;  %v6443_v9 = vpop.f32.mrb[11].mxu1 }
 0x126   : > { %1284 = vrot.lane.b32.xlu0 %v6431_v4, %s6087_s9 }
 0x128   : > { %1314 = vrot.lane.b32.xlu1 %v6435_v6, %s6087_s9 }
 0x12a   : > { %1316 = vrot.lane.b32.xlu0 %v6441_v8, %s6087_s9 }
 0x12c   : > { %1288 = vrot.lane.b32.xlu1 %v6433_v5, %s6087_s9 }
 0x12e   : > { %1320 = vrot.lane.b32.xlu0 %v6443_v9, %s6087_s9 }
 0x130   : > { %1318 = vrot.lane.b32.xlu1 %v6437_v7, %s6087_s9 }
 0x135   : > { %v6457_v10 = vpop.f32.mrb[12].mxu0  ;;  %v6459_v11 = vpop.f32.mrb[12].mxu1 }
 0x136   : > { %v6461_v12 = vpop.f32.mrb[13].mxu0  ;;  %v6463_v13 = vpop.f32.mrb[13].mxu1 }
 0x137   : > { %v6465_v14 = vpop.f32.mrb[14].mxu0  ;;  %v6467_v15 = vpop.f32.mrb[14].mxu1 }
 0x138   : > { %v6469_v16 = vpop.f32.mrb[15].mxu0  ;;  %v6471_v17 = vpop.f32.mrb[15].mxu1 }
 0x149   : > { %v6473_v18 = vpop.f32.mrb[16].mxu0 }
 0x14a   : > { %v5484_v19 = vpop.f32.mrb[17].mxu0 }
 0x14b   : > { %v6475_v21 = vpop.f32.mrb[18].mxu0 }
 0x14c   : > { %v5485_v22 = vpop.f32.mrb[19].mxu0 }
 0x16c   : > { %v1271_v24 = vpop.permute.xlu1 %1270  ;;  %v1267_v25 = vpop.permute.xlu0 %1266 }
 0x170   : > { %v1273_v28 = vpop.permute.xlu1 %1272  ;;  %v1269_v29 = vpop.permute.xlu0 %1268 }
 0x171   : > { %v1331_v31 = vsel %vm1330_vm5, %v1267_v25, %v1269_v29  ;;  %v1332_v32 = vsel %vm1330_vm5, %v1269_v29, %v1271_v24  ;;  %v1333_v1 = vsel %vm1330_vm5, %v1271_v24, %v1273_v28 }
 0x172   : > { %v6493_v34 = vmax.f32 %v6355_v47, %v1331_v31  ;;  %v6496_v35 = vmax.f32 %v6365_v50, %v1332_v32  ;;  %v6507_v40 = vmax.f32 %v6357_v48, %v1333_v1 }
 0x174   : > { %v1299_v37 = vpop.permute.xlu0 %1298  ;;  %v1301_v38 = vpop.permute.xlu1 %1300  ;;  %1475 = vrot.lane.b32.xlu1 %v6493_v34, %s6088_s20  ;;  %1477 = vrot.lane.b32.xlu0 %v6496_v35, %s6088_s20 }
 0x175   : > { %v1346_v39 = vsel %vm1330_vm5, %v1299_v37, %v1301_v38 }
 0x176   : > { %v6510_v2 = vmax.f32 %v6367_v51, %v1346_v39 }
 0x178   : > { %v1303_v41 = vpop.permute.xlu0 %1302  ;;  %v1305_v42 = vpop.permute.xlu1 %1304  ;;  %1479 = vrot.lane.b32.xlu1 %v6507_v40, %s6088_s20  ;;  %1509 = vrot.lane.b32.xlu0 %v6510_v2, %s6088_s20 }
 0x179   : > { %v1347_v43 = vsel %vm1330_vm5, %v1301_v38, %v1303_v41  ;;  %v1348_v45 = vsel %vm1330_vm5, %v1303_v41, %v1305_v42 }
 0x17a   : > { %v6520_v20 = vmax.f32 %v6371_v52, %v1347_v43  ;;  %v6523_v46 = vmax.f32 %v6369_v30, %v1348_v45 }
 0x17c   : > { %1511 = vrot.lane.b32.xlu1 %v6520_v20, %s6088_s20  ;;  %1513 = vrot.lane.b32.xlu0 %v6523_v46, %s6088_s20 }
 0x180   : > { %v1275_v47 = vpop.permute.xlu0 %1274  ;;  %1290 = vrot.lane.b32.xlu1 %v6457_v10, %s6087_s9  ;;  %1292 = vrot.lane.b32.xlu0 %v6461_v12, %s6087_s9 }
 0x181   : > { %v1334_v50 = vsel %vm1330_vm5, %v1273_v28, %v1275_v47 }
 0x182   : > { %v1307_v48 = vpop.permute.xlu1 %1306  ;;  %v6540_v62 = vmax.f32 %v6361_v49, %v1334_v50 }
 0x183   : > { %v1349_v51 = vsel %vm1330_vm5, %v1305_v42, %v1307_v48 }
 0x184   : > { %v1277_v30 = vpop.permute.xlu0 %1276  ;;  %1322 = vrot.lane.b32.xlu1 %v6465_v14, %s6087_s9  ;;  %1324 = vrot.lane.b32.xlu0 %v6469_v16, %s6087_s9  ;;  %v6543_v63 = vmax.f32 %v6373_v53, %v1349_v51 }
 0x185   : > { %v1335_v19 = vsel %vm1330_vm5, %v1275_v47, %v1277_v30 }
 0x186   : > { %v1309_v52 = vpop.permute.xlu1 %1308  ;;  %v6552_v25 = vmax.f32 %v6387_v54, %v1335_v19 }
 0x187   : > { %v1350_v22 = vsel %vm1330_vm5, %v1307_v48, %v1309_v52 }
 0x188   : > { %1481 = vrot.lane.b32.xlu1 %v6540_v62, %s6088_s20  ;;  %1515 = vrot.lane.b32.xlu0 %v6543_v63, %s6088_s20  ;;  %v1279_v23 = vpop.permute.xlu0 %1278  ;;  %v6555_v49 = vmax.f32 %v6397_v58, %v1350_v22 }
 0x189   : > { %v1336_v53 = vsel %vm1330_vm5, %v1277_v30, %v1279_v23 }
 0x18a   : > { %v1311_v24 = vpop.permute.xlu1 %1310  ;;  %v6568_v54 = vmax.f32 %v6393_v56, %v1336_v53 }
 0x18b   : > { %v1351_v26 = vsel %vm1330_vm5, %v1309_v52, %v1311_v24 }
 0x18c   : > { %1483 = vrot.lane.b32.xlu1 %v6552_v25, %s6088_s20  ;;  %1517 = vrot.lane.b32.xlu0 %v6555_v49, %s6088_s20  ;;  %v1281_v28 = vpop.permute.xlu0 %1280  ;;  %v6571_v58 = vmax.f32 %v6403_v60, %v1351_v26 }
 0x18d   : > { %v1337_v31 = vsel %vm1330_vm5, %v1279_v23, %v1281_v28 }
 0x18e   : > { %v1313_v29 = vpop.permute.xlu1 %1312  ;;  %v6580_v33 = vmax.f32 %v6389_v55, %v1337_v31 }
 0x18f   : > { %v1352_v32 = vsel %vm1330_vm5, %v1311_v24, %v1313_v29 }
 0x190   : > { %1294 = vrot.lane.b32.xlu1 %v6459_v11, %s6087_s9  ;;  %1326 = vrot.lane.b32.xlu0 %v6467_v15, %s6087_s9  ;;  %v6583_v1 = vmax.f32 %v6399_v59, %v1352_v32  ;;  %v6015_v32 = vld [vmem:[%s7574_s5 + $0x8] sm:$0xff]  }
 0x194   : > { %1485 = vrot.lane.b32.xlu1 %v6568_v54, %s6088_s20  ;;  %1519 = vrot.lane.b32.xlu0 %v6571_v58, %s6088_s20 }
 0x198   : > { %1487 = vrot.lane.b32.xlu1 %v6580_v33, %s6088_s20  ;;  %1521 = vrot.lane.b32.xlu0 %v6583_v1, %s6088_s20 }
 0x19c   : > { %1296 = vrot.lane.b32.xlu1 %v6463_v13, %s6087_s9  ;;  %1328 = vrot.lane.b32.xlu0 %v6471_v17, %s6087_s9 }
 0x19d   : > { %v6593_v56 = vpop.permute.xlu0 %1644 }
 0x19f   : > { %v6595_v60 = vpop.permute.xlu1 %1649 }
 0x1a0   : > { %1427 = vrot.lane.b32.xlu1 %v6473_v18, %s6087_s9  ;;  %1429 = vrot.lane.b32.xlu0 %v6475_v21, %s6087_s9 }
 0x1a1   : > { %v1283_v55 = vpop.permute.xlu0 %1282 }
 0x1a2   : > { %v1338_v59 = vsel %vm1330_vm5, %v1281_v28, %v1283_v55 }
 0x1a3   : > { %v1287_v36 = vpop.permute.xlu1 %1286  ;;  %v6603_v37 = vmax.f32 %v6395_v57, %v1338_v59 }
 0x1a5   : > { %v1285_v38 = vpop.permute.xlu0 %1284  ;;  %1489 = vrot.lane.b32.xlu1 %v6603_v37, %s6088_s20 }
 0x1a6   : > { %v1339_v39 = vsel %vm1330_vm5, %v1283_v55, %v1285_v38  ;;  %v1340_v57 = vsel %vm1330_vm5, %v1285_v38, %v1287_v36 }
 0x1a7   : > { %v1315_v41 = vpop.permute.xlu1 %1314  ;;  %v6609_v42 = vmax.f32 %v6425_v0, %v1339_v39  ;;  %v6628_v30 = vmax.f32 %v6431_v4, %v1340_v57 }
 0x1a8   : > { %v1353_v43 = vsel %vm1330_vm5, %v1313_v29, %v1315_v41 }
 0x1a9   : > { %v1317_v45 = vpop.permute.xlu0 %1316  ;;  %1491 = vrot.lane.b32.xlu1 %v6609_v42, %s6088_s20  ;;  %v6615_v47 = vmax.f32 %v6405_v61, %v1353_v43 }
 0x1aa   : > { %v1354_v48 = vsel %vm1330_vm5, %v1315_v41, %v1317_v45 }
 0x1ab   : > { %v1289_v50 = vpop.permute.xlu1 %1288  ;;  %1523 = vrot.lane.b32.xlu0 %v6615_v47, %s6088_s20  ;;  %v6622_v0 = vmax.f32 %v6435_v6, %v1354_v48 }
 0x1ac   : > { %v1341_v51 = vsel %vm1330_vm5, %v1287_v36, %v1289_v50  ;;  %v6017_v36 = vld [vmem:[%s7574_s5 + $0x10] sm:$0x7f]  }
 0x1ad   : > { %1525 = vrot.lane.b32.xlu1 %v6622_v0, %s6088_s20  ;;  %v1321_v52 = vpop.permute.xlu0 %1320  ;;  %v6633_v19 = vmax.f32 %v6427_v3, %v1341_v51 }
 0x1af   : > { %v1319_v61 = vpop.permute.xlu1 %1318  ;;  %1493 = vrot.lane.b32.xlu0 %v6628_v30, %s6088_s20 }
 0x1b0   : > { %v1355_v22 = vsel %vm1330_vm5, %v1317_v45, %v1319_v61  ;;  %v1356_v23 = vsel %vm1330_vm5, %v1319_v61, %v1321_v52  ;;  %v1945_v45 = vand.u32 %v6017_v36, %v6485_v27  ;;  %v6014_v36 = vld [vmem:[%s7574_s5 + $0x8] sm:$0xff]  }
 0x1b1   : > { %1495 = vrot.lane.b32.xlu1 %v6633_v19, %s6088_s20  ;;  %v6639_v6 = vmax.f32 %v6441_v8, %v1355_v22  ;;  %v6645_v4 = vmax.f32 %v6437_v7, %v1356_v23  ;;  %v6013_v8 = vld [vmem:[%s7574_s5] sm:$0xff]  }
 0x1b2   : > { %5507 = vmatpush3.bf16.msra.mxu0 %v6013_v8 }
 0x1b3   : > { %1527 = vrot.lane.b32.xlu0 %v6639_v6, %s6088_s20  ;;  %5508 = vmatprep.subr.bf16.mxu0 %v6085_v44 }
 0x1b6   : > { %5509 = vmatpush3.bf16.msra.mxu0 %v6015_v32 }
 0x1b7   : > { %1529 = vrot.lane.b32.xlu0 %v6645_v4, %s6088_s20  ;;  %5510 = vmatprep.subr.bf16.mxu0 %v6085_v44 }
 0x1ba   : > { %5511 = vmatpush3.bf16.msra.mxu0 %v1945_v45 }
 0x1bb   : > { %5526 = vmatprep.subr.bf16.mxu0 %v6085_v44 }
 0x1e6   : > { %v1476_v3 = vpop.permute.xlu1 %1475  ;;  %v1478_v24 = vpop.permute.xlu0 %1477 }
 0x1e7   : > { %v1544_v53 = vsel %vm1543_vm6, %v1476_v3, %v1478_v24 }
 0x1e8   : > { %v1608_v29 = vmax.f32 %v6493_v34, %v1544_v53 }
 0x1ea   : > { %v1480_v26 = vpop.permute.xlu1 %1479  ;;  %v1510_v28 = vpop.permute.xlu0 %1509  ;;  %v1652_v38 = vadd.f32 %v6593_v56, %v1608_v29 }
 0x1eb   : > { %v1545_v7 = vsel %vm1543_vm6, %v1478_v24, %v1480_v26 }
 0x1ec   : > { %v1609_v31 = vmax.f32 %v6496_v35, %v1545_v7  ;;  %v1684_v22 = vmax.f32 %v1652_v38, 0.0  ;;  %v6016_v38 = vld [vmem:[%s7574_s5 + $0x10] sm:$0x7f]  }
 0x1ee   : > { %v1512_v55 = vpop.permute.xlu1 %1511  ;;  %v1514_v59 = vpop.permute.xlu0 %1513  ;;  %v1653_v34 = vadd.f32 %v6593_v56, %v1609_v31 }
 0x1ef   : > { %v1560_v39 = vsel %vm1543_vm6, %v1510_v28, %v1512_v55  ;;  %v1561_v41 = vsel %vm1543_vm6, %v1512_v55, %v1514_v59  ;;  %v6012_v28 = vld [vmem:[%s7574_s5] sm:$0xff]  }
 0x1f0   : > { %v1624_v35 = vmax.f32 %v6510_v2, %v1560_v39  ;;  %v1625_v43 = vmax.f32 %v6520_v20, %v1561_v41  ;;  %v1685_v23 = vmax.f32 %v1653_v34, 0.0 }
 0x1f2   : > { %v1668_v57 = vadd.f32 %v6595_v60, %v1624_v35  ;;  %v1669_v48 = vadd.f32 %v6595_v60, %v1625_v43  ;;  %v1291_v51 = vpop.permute.xlu1 %1290  ;;  %v6673_v61 = vpop.permute.xlu0 %1292  ;;  %v1864_v35 = vand.u32 %v6016_v38, %v6485_v27 }
 0x1f3   : > { %v1342_v3 = vsel %vm1330_vm5, %v1289_v50, %v1291_v51  ;;  %v1343_v24 = vsel %vm1330_vm5, %v1291_v51, %v6673_v61 }
 0x1f4   : > { %v1700_v2 = vmax.f32 %v1668_v57, 0.0  ;;  %v1701_v53 = vmax.f32 %v1669_v48, 0.0  ;;  %v6679_v20 = vmax.f32 %v6433_v5, %v1342_v3  ;;  %v6682_v8 = vmax.f32 %v6457_v10, %v1343_v24 }
 0x1f6   : > { %v1716_v50 = vpack.c.bf16 %v1700_v2, %v1684_v22  ;;  %v1717_v29 = vpack.c.bf16 %v1701_v53, %v1685_v23  ;;  %v1323_v7 = vpop.permute.xlu1 %1322  ;;  %v1325_v31 = vpop.permute.xlu0 %1324  ;;  %1497 = vrot.lane.b32.xlu1 %v6679_v20, %s6088_s20  ;;  %1499 = vrot.lane.b32.xlu0 %v6682_v8, %s6088_s20 }
 0x1f7   : > { %v1357_v5 = vsel %vm1330_vm5, %v1321_v52, %v1323_v7  ;;  %v1358_v10 = vsel %vm1330_vm5, %v1323_v7, %v1325_v31 }
 0x1f8   : > { %v6695_v32 = vmax.f32 %v6443_v9, %v1357_v5  ;;  %v6698_v55 = vmax.f32 %v6465_v14, %v1358_v10  ;;  %5493 = vmatmul.mubr.msk.bf16.vlgmr.msra.gmra.mrb[16].mxu1 %vm1773_vm7, %v1716_v50 }
 0x1f9   : > { %5497 = vmatpush3.bf16.msra.mxu1 %v6012_v28  ;;  %5502 = vmatprep.mubr.msk.bf16.mxu1 %vm6086_vm3, %v6085_v44 }
 0x1fa   : > { %v1482_v52 = vpop.permute.xlu1 %1481  ;;  %v1516_v9 = vpop.permute.xlu0 %1515  ;;  %1531 = vrot.lane.b32.xlu1 %v6695_v32, %s6088_s20  ;;  %1533 = vrot.lane.b32.xlu0 %v6698_v55, %s6088_s20 }
 0x1fb   : > { %v1546_v14 = vsel %vm1543_vm6, %v1480_v26, %v1482_v52  ;;  %v1562_v34 = vsel %vm1543_vm6, %v1514_v59, %v1516_v9  ;;  %5498 = vmatprep.subr.bf16.mxu1 %v6085_v44 }
 0x1fc   : > { %v1610_v39 = vmax.f32 %v6507_v40, %v1546_v14  ;;  %v1626_v41 = vmax.f32 %v6523_v46, %v1562_v34 }
 0x1fd   : > { %5499 = vmatpush3.bf16.msra.mxu1 %v6014_v36 }
 0x1fe   : > { %v1654_v43 = vadd.f32 %v6593_v56, %v1610_v39  ;;  %v1670_v45 = vadd.f32 %v6595_v60, %v1626_v41  ;;  %v1484_v57 = vpop.permute.xlu1 %1483  ;;  %v1518_v48 = vpop.permute.xlu0 %1517  ;;  %1837 = vrot.lane.b32.xlu1 %v1716_v50, %s6089_s13  ;;  %1839 = vrot.lane.b32.xlu0 %v1717_v29, %s6089_s13  ;;  %s6101_s13 = smov 108  }
 0x1ff   : > { %v1547_v26 = vsel %vm1543_vm6, %v1482_v52, %v1484_v57  ;;  %v1563_v59 = vsel %vm1543_vm6, %v1516_v9, %v1518_v48  ;;  %5500 = vmatprep.subr.bf16.mxu1 %v6085_v44 }
 0x200   : > { %v1686_v40 = vmax.f32 %v1654_v43, 0.0  ;;  %v1702_v46 = vmax.f32 %v1670_v45, 0.0  ;;  %v1611_v51 = vmax.f32 %v6540_v62, %v1547_v26  ;;  %v1627_v22 = vmax.f32 %v6543_v63, %v1563_v59 }
 0x201   : > { %5501 = vmatpush3.bf16.msra.mxu1 %v1864_v35 }
 0x202   : > { %v1718_v23 = vpack.c.bf16 %v1702_v46, %v1686_v40  ;;  %v1655_v3 = vadd.f32 %v6593_v56, %v1611_v51  ;;  %v1671_v24 = vadd.f32 %v6595_v60, %v1627_v22  ;;  %v1295_v2 = vpop.permute.xlu1 %1294  ;;  %v1327_v53 = vpop.permute.xlu0 %1326  ;;  %1922 = vrot.lane.b32.xlu1 %v1717_v29, %s6090_s14  ;;  %5516 = vmatprep.subr.bf16.mxu1 %v6085_v44 }
 0x203   : > { %v1344_v28 = vsel %vm1330_vm5, %v6673_v61, %v1295_v2  ;;  %v1359_v62 = vsel %vm1330_vm5, %v1325_v31, %v1327_v53 }
 0x204   : > { %v1687_v50 = vmax.f32 %v1655_v3, 0.0  ;;  %v1703_v63 = vmax.f32 %v1671_v24, 0.0  ;;  %v6734_v7 = vmax.f32 %v6461_v12, %v1344_v28  ;;  %v6737_v5 = vmax.f32 %v6469_v16, %v1359_v62 }
 0x206   : > { %v1719_v10 = vpack.c.bf16 %v1703_v63, %v1687_v50  ;;  %v1486_v36 = vpop.permute.xlu1 %1485  ;;  %v1520_v38 = vpop.permute.xlu0 %1519  ;;  %1501 = vrot.lane.b32.xlu0 %v6734_v7, %s6088_s20  ;;  %1535 = vrot.lane.b32.xlu1 %v6737_v5, %s6088_s20 }
 0x207   : > { %v1548_v61 = vsel %vm1543_vm6, %v1484_v57, %v1486_v36  ;;  %v1564_v29 = vsel %vm1543_vm6, %v1518_v48, %v1520_v38 }
 0x208   : > { %v1612_v31 = vmax.f32 %v6552_v25, %v1548_v61  ;;  %v1628_v12 = vmax.f32 %v6555_v49, %v1564_v29 }
 0x20a   : > { %v1656_v16 = vadd.f32 %v6593_v56, %v1612_v31  ;;  %v1672_v52 = vadd.f32 %v6595_v60, %v1628_v12  ;;  %v1488_v9 = vpop.permute.xlu1 %1487  ;;  %v1522_v14 = vpop.permute.xlu0 %1521 }
 0x20b   : > { %v1549_v34 = vsel %vm1543_vm6, %v1486_v36, %v1488_v9  ;;  %v1565_v39 = vsel %vm1543_vm6, %v1520_v38, %v1522_v14 }
 0x20c   : > { %v1688_v41 = vmax.f32 %v1656_v16, 0.0  ;;  %v1704_v35 = vmax.f32 %v1672_v52, 0.0  ;;  %v1613_v43 = vmax.f32 %v6568_v54, %v1549_v34  ;;  %v1629_v45 = vmax.f32 %v6571_v58, %v1565_v39 }
 0x20e   : > { %v1720_v57 = vpack.c.bf16 %v1704_v35, %v1688_v41  ;;  %v1657_v25 = vadd.f32 %v6593_v56, %v1613_v43  ;;  %v1673_v49 = vadd.f32 %v6595_v60, %v1629_v45  ;;  %v6755_v48 = vpop.permute.xlu1 %1296  ;;  %v6757_v26 = vpop.permute.xlu0 %1328 }
 0x20f   : > { %v1360_v59 = vsel %vm1330_vm5, %v1327_v53, %v6757_v26  ;;  %v1345_v40 = vsel %vm1330_vm5, %v1295_v2, %v6755_v48 }
 0x210   : > { %v1689_v46 = vmax.f32 %v1657_v25, 0.0  ;;  %v1705_v51 = vmax.f32 %v1673_v49, 0.0  ;;  %v6764_v54 = vmax.f32 %v6467_v15, %v1360_v59  ;;  %v6767_v58 = vmax.f32 %v6459_v11, %v1345_v40 }
 0x212   : > { %v1721_v22 = vpack.c.bf16 %v1705_v51, %v1689_v46  ;;  %1537 = vrot.lane.b32.xlu1 %v6764_v54, %s6088_s20  ;;  %v1428_v3 = vpop.permute.xlu1 %1427  ;;  %1503 = vrot.lane.b32.xlu0 %v6767_v58, %s6088_s20  ;;  %v1430_v24 = vpop.permute.xlu0 %1429 }
 0x213   : > { %v1431_v2 = vsel %vm1330_vm5, %v6755_v48, %v1428_v3  ;;  %v1432_v53 = vsel %vm1330_vm5, %v6757_v26, %v1430_v24  ;;  %v1438_v35 = vmax.f32 %v6473_v18, %v1428_v3  ;;  %v1440_v43 = vmax.f32 %v6475_v21, %v1430_v24 }
 0x214   : > { %v1437_v28 = vmax.f32 %v6463_v13, %v1431_v2  ;;  %v1439_v62 = vmax.f32 %v6471_v17, %v1432_v53 }
 0x216   : > { %2084 = vrot.lane.b32.xlu1 %v1719_v10, %s6091_s15  ;;  %2003 = vrot.lane.b32.xlu0 %v1718_v23, %s6092_s16  ;;  %s6117_s16 = smov 125  }
 0x217   : > { %v1490_v11 = vpop.permute.xlu1 %1489 }
 0x218   : > { %v1550_v15 = vsel %vm1543_vm6, %v1488_v9, %v1490_v11 }
 0x219   : > { %v1614_v50 = vmax.f32 %v6580_v33, %v1550_v15 }
 0x21a   : > { %1505 = vrot.lane.b32.xlu0 %v1437_v28, %s6088_s20  ;;  %1539 = vrot.lane.b32.xlu1 %v1439_v62, %s6088_s20 }
 0x21b   : > { %v1492_v63 = vpop.permute.xlu1 %1491  ;;  %v1658_v29 = vadd.f32 %v6593_v56, %v1614_v50 }
 0x21c   : > { %v1551_v36 = vsel %vm1543_vm6, %v1490_v11, %v1492_v63 }
 0x21d   : > { %v1615_v38 = vmax.f32 %v6603_v37, %v1551_v36  ;;  %v1524_v61 = vpop.permute.xlu0 %1523 }
 0x21e   : > { %v1566_v23 = vsel %vm1543_vm6, %v1522_v14, %v1524_v61  ;;  %2167 = vrot.lane.b32.xlu0 %v1719_v10, %s6093_s17  ;;  %2169 = vrot.lane.b32.xlu1 %v1720_v57, %s6093_s17  ;;  %v1690_v10 = vmax.f32 %v1658_v29, 0.0  ;;  %s6118_s17 = smov 43  }
 0x21f   : > { %v1630_v31 = vmax.f32 %v6583_v1, %v1566_v23  ;;  %v1526_v12 = vpop.permute.xlu1 %1525  ;;  %v1659_v33 = vadd.f32 %v6593_v56, %v1615_v38 }
 0x220   : > { %v1567_v16 = vsel %vm1543_vm6, %v1524_v61, %v1526_v12 }
 0x221   : > { %v1674_v52 = vadd.f32 %v6595_v60, %v1630_v31  ;;  %v1631_v9 = vmax.f32 %v6615_v47, %v1567_v16  ;;  %v1494_v37 = vpop.permute.xlu0 %1493  ;;  %v1691_v45 = vmax.f32 %v1659_v33, 0.0 }
 0x222   : > { %v1552_v34 = vsel %vm1543_vm6, %v1492_v63, %v1494_v37  ;;  %2256 = vrot.lane.b32.xlu0 %v1720_v57, %s7577_s18  ;;  %2258 = vrot.lane.b32.xlu1 %v1721_v22, %s7577_s18  ;;  %s6140_s18 = smov 60  }
 0x223   : > { %v1706_v14 = vmax.f32 %v1674_v52, 0.0  ;;  %v1675_v1 = vadd.f32 %v6595_v60, %v1631_v9  ;;  %v1616_v39 = vmax.f32 %v6609_v42, %v1552_v34  ;;  %v1496_v41 = vpop.permute.xlu1 %1495 }
 0x224   : > { %v1553_v47 = vsel %vm1543_vm6, %v1494_v37, %v1496_v41 }
 0x225   : > { %v1722_v25 = vpack.c.bf16 %v1706_v14, %v1690_v10  ;;  %v1707_v49 = vmax.f32 %v1675_v1, 0.0  ;;  %v1528_v59 = vpop.permute.xlu0 %1527  ;;  %v1660_v42 = vadd.f32 %v6593_v56, %v1616_v39  ;;  %v1617_v46 = vmax.f32 %v6628_v30, %v1553_v47 }
 0x226   : > { %v1568_v57 = vsel %vm1543_vm6, %v1526_v12, %v1528_v59  ;;  %1507 = vrot.lane.b32.xlu0 %v1438_v35, %s6088_s20  ;;  %1541 = vrot.lane.b32.xlu1 %v1440_v43, %s6088_s20  ;;  %s6097_s20 = smov 124   ;;  %v6022_v35 = vld [vmem:[%s7574_s5 + $0x10] sm:$0x7f]  }
 0x227   : > { %v1723_v40 = vpack.c.bf16 %v1707_v49, %v1691_v45  ;;  %v1632_v18 = vmax.f32 %v6622_v0, %v1568_v57  ;;  %v1692_v24 = vmax.f32 %v1660_v42, 0.0  ;;  %v1661_v2 = vadd.f32 %v6593_v56, %v1617_v46  ;;  %v6023_v49 = vld [vmem:[%s7574_s5 + $0x10] sm:$0x7f]  }
 0x229   : > { %v1676_v21 = vadd.f32 %v6595_v60, %v1632_v18  ;;  %v1530_v51 = vpop.permute.xlu0 %1529  ;;  %v1693_v0 = vmax.f32 %v1661_v2, 0.0 }
 0x22a   : > { %v1569_v3 = vsel %vm1543_vm6, %v1528_v59, %v1530_v51  ;;  %2341 = vrot.lane.b32.xlu0 %v1721_v22, %s6095_s19  ;;  %2422 = vrot.lane.b32.xlu1 %v1722_v25, %s6096_s21  ;;  %v6021_v25 = vld [vmem:[%s7574_s5 + $0x8] sm:$0xff]   ;;  %v2026_v59 = vand.u32 %v6022_v35, %v6485_v27  ;;  %s6106_s21 = smov 20   ;;  %s6119_s19 = smov 66  }
 0x22b   : > { %v1708_v53 = vmax.f32 %v1676_v21, 0.0  ;;  %v1633_v11 = vmax.f32 %v6639_v6, %v1569_v3 }
 0x22d   : > { %v1724_v15 = vpack.c.bf16 %v1708_v53, %v1692_v24  ;;  %v1677_v30 = vadd.f32 %v6595_v60, %v1633_v11 }
 0x22e   : > { %2503 = vrot.lane.b32.xlu0 %v1723_v40, %s6097_s20  ;;  %2586 = vrot.lane.b32.xlu1 %v1723_v40, %s6098_s22  ;;  %s6102_s20 = smov 8  }
 0x22f   : > { %v1709_v28 = vmax.f32 %v1677_v30, 0.0 }
 0x231   : > { %v1725_v62 = vpack.c.bf16 %v1709_v28, %v1693_v0 }
 0x232   : > { %2671 = vrot.lane.b32.xlu1 %v1724_v15, %s6099_s23  ;;  %2588 = vrot.lane.b32.xlu0 %v1724_v15, %s6098_s22  ;;  %s6103_s22 = smov 36   ;;  %s6104_s23 = smov 64  }
 0x236   : > { %2754 = vrot.lane.b32.xlu0 %v1725_v62, %s6100_s26  ;;  %v6024_v62 = vld [vmem:[%s7574_s5] sm:$0xff]  }
 0x268   : > { %v1498_v22 = vpop.permute.xlu1 %1497  ;;  %v1500_v50 = vpop.permute.xlu0 %1499 }
 0x269   : > { %v1554_v6 = vsel %vm1543_vm6, %v1496_v41, %v1498_v22  ;;  %v1555_v63 = vsel %vm1543_vm6, %v1498_v22, %v1500_v50  ;;  %v6025_v22 = vld [vmem:[%s7574_s5] sm:$0xff]  }
 0x26a   : > { %v1618_v36 = vmax.f32 %v6633_v19, %v1554_v6  ;;  %v1619_v38 = vmax.f32 %v6679_v20, %v1555_v63  ;;  %v6018_v19 = vld [vmem:[%s7574_s5] sm:$0xff]  }
 0x26c   : > { %v1532_v61 = vpop.permute.xlu1 %1531  ;;  %v1534_v23 = vpop.permute.xlu0 %1533  ;;  %v1662_v12 = vadd.f32 %v6593_v56, %v1618_v36  ;;  %v1663_v16 = vadd.f32 %v6593_v56, %v1619_v38 }
 0x26d   : > { %v1570_v29 = vsel %vm1543_vm6, %v1530_v51, %v1532_v61  ;;  %v1571_v31 = vsel %vm1543_vm6, %v1532_v61, %v1534_v23  ;;  %v2107_v51 = vand.u32 %v6023_v49, %v6485_v27  ;;  %v6026_v61 = vld [vmem:[%s7574_s5 + $0x8] sm:$0xff]  }
 0x26e   : > { %v1634_v33 = vmax.f32 %v6645_v4, %v1570_v29  ;;  %v1635_v52 = vmax.f32 %v6695_v32, %v1571_v31  ;;  %v1694_v14 = vmax.f32 %v1662_v12, 0.0  ;;  %v1695_v1 = vmax.f32 %v1663_v16, 0.0  ;;  %v6019_v4 = vld [vmem:[%s7574_s5] sm:$0xff]   ;;  %v6020_v32 = vld [vmem:[%s7574_s5 + $0x8] sm:$0xff]   ;;  %v6029_v29 = vld [vmem:[%s7574_s5 + $0x10] sm:$0x7f]  }
 0x26f   : > { %v6033_v49 = vld [vmem:[%s7574_s5 + $0x8] sm:$0xff]  }
 0x270   : > { %v1678_v20 = vadd.f32 %v6595_v60, %v1634_v33  ;;  %v1679_v9 = vadd.f32 %v6595_v60, %v1635_v52  ;;  %v1838_v37 = vpop.permute.xlu1 %1837  ;;  %v1840_v34 = vpop.permute.xlu0 %1839 }
 0x271   : > { %v1842_v10 = vsel %vm1841_vm8, %v1838_v37, %v1840_v34  ;;  %v2283_v37 = vand.u32 %v6029_v29, %v6485_v27  ;;  %v6047_v29 = vld [vmem:[%s7574_s5 + $0x10] sm:$0x7f]   ;;  %vm2331_vm8 = vcmask 269392  }
 0x272   : > { %v1710_v39 = vmax.f32 %v1678_v20, 0.0  ;;  %v1711_v41 = vmax.f32 %v1679_v9, 0.0  ;;  %5503 = vmatmul.mubr.msk.bf16.vlgmr.msra.gmra.mrb[20].mxu1 %vm1773_vm7, %v1842_v10 }
 0x273   : > { %5517 = vmatpush3.bf16.msra.mxu1 %v6018_v19  ;;  %5522 = vmatprep.mubr.msk.bf16.mxu1 %vm6086_vm3, %v6085_v44 }
 0x274   : > { %v1726_v43 = vpack.c.bf16 %v1710_v39, %v1694_v14  ;;  %v1727_v47 = vpack.c.bf16 %v1711_v41, %v1695_v1  ;;  %v1923_v45 = vpop.permute.xlu1 %1922  ;;  %5518 = vmatprep.subr.bf16.mxu1 %v6085_v44  ;;  %v6030_v39 = vld [vmem:[%s7574_s5] sm:$0xff]  }
 0x275   : > { %5513 = vmatmul.mubr.msk.bf16.vlgmr.msra.gmra.mrb[20].mxu0 %vm1773_vm7, %v1923_v45  ;;  %v6031_v41 = vld [vmem:[%s7574_s5] sm:$0xff]   ;;  %v6032_v45 = vld [vmem:[%s7574_s5 + $0x8] sm:$0xff]  }
 0x276   : > { %5527 = vmatpush3.bf16.msra.mxu0 %v6019_v4  ;;  %2835 = vrot.lane.b32.xlu1 %v1726_v43, %s6101_s13 }
 0x277   : > { %2918 = vrot.lane.b32.xlu0 %v1726_v43, %s6102_s20  ;;  %5519 = vmatpush3.bf16.msra.mxu1 %v6020_v32 }
 0x278   : > { %v1502_v57 = vpop.permute.xlu0 %1501  ;;  %v1536_v40 = vpop.permute.xlu1 %1535  ;;  %5528 = vmatprep.subr.bf16.mxu0 %v6085_v44  ;;  %5520 = vmatprep.subr.bf16.mxu1 %v6085_v44 }
 0x279   : > { %v1556_v42 = vsel %vm1543_vm6, %v1500_v50, %v1502_v57  ;;  %v1572_v46 = vsel %vm1543_vm6, %v1534_v23, %v1536_v40  ;;  %5532 = vmatprep.mubr.msk.bf16.mxu0 %vm6086_vm3, %v6085_v44  ;;  %v6027_v23 = vld [vmem:[%s7574_s5 + $0x8] sm:$0xff]  }
 0x27a   : > { %v1620_v18 = vmax.f32 %v6682_v8, %v1556_v42  ;;  %v1636_v21 = vmax.f32 %v6698_v55, %v1572_v46  ;;  %5529 = vmatpush3.bf16.msra.mxu0 %v6021_v25  ;;  %2920 = vrot.lane.b32.xlu1 %v1727_v47, %s6102_s20  ;;  %s6105_s20 = smov 92   ;;  %v6034_v25 = vld [vmem:[%s7574_s5 + $0x10] sm:$0x7f]   ;;  %v1408_v42 = vmax.f32 %v6463_v13, %v6755_v48 }
 0x27b   : > { %3005 = vrot.lane.b32.xlu0 %v1727_v47, %s6103_s22  ;;  %5521 = vmatpush3.bf16.msra.mxu1 %v2026_v59  ;;  %v6035_v59 = vld [vmem:[%s7574_s5 + $0x10] sm:$0x7f]   ;;  %v2364_v13 = vand.u32 %v6034_v25, %v6485_v27 }
 0x27c   : > { %v1664_v3 = vadd.f32 %v6593_v56, %v1620_v18  ;;  %v1680_v24 = vadd.f32 %v6595_v60, %v1636_v21  ;;  %5530 = vmatprep.subr.bf16.mxu0 %v6085_v44  ;;  %5536 = vmatprep.subr.bf16.mxu1 %v6085_v44  ;;  %v2445_v48 = vand.u32 %v6035_v59, %v6485_v27 }
 0x27e   : > { %v1696_v2 = vmax.f32 %v1664_v3, 0.0  ;;  %v1712_v8 = vmax.f32 %v1680_v24, 0.0  ;;  %5531 = vmatpush3.bf16.msra.mxu0 %v2107_v51 }
 0x27f   : > { %5546 = vmatprep.subr.bf16.mxu0 %v6085_v44 }
 0x280   : > { %v1728_v55 = vpack.c.bf16 %v1712_v8, %v1696_v2 }
 0x282   : > { %3090 = vrot.lane.b32.xlu0 %v1728_v55, %s6104_s23  ;;  %3007 = vrot.lane.b32.xlu1 %v1728_v55, %s6103_s22  ;;  %s6107_s23 = smov 120   ;;  %v6036_v55 = vld [vmem:[%s7574_s5] sm:$0xff]  }
 0x284   : > { %v1538_v53 = vpop.permute.xlu1 %1537  ;;  %v1504_v11 = vpop.permute.xlu0 %1503 }
 0x285   : > { %v1573_v15 = vsel %vm1543_vm6, %v1536_v40, %v1538_v53  ;;  %v1557_v30 = vsel %vm1543_vm6, %v1502_v57, %v1504_v11  ;;  %v1424_v57 = vmax.f32 %v6471_v17, %v6757_v26 }
 0x286   : > { %v1637_v0 = vmax.f32 %v6737_v5, %v1573_v15  ;;  %v1621_v28 = vmax.f32 %v6734_v7, %v1557_v30  ;;  %v6028_v7 = vld [vmem:[%s7574_s5 + $0x10] sm:$0x7f]   ;;  %v6039_v30 = vld [vmem:[%s7574_s5 + $0x8] sm:$0xff]  }
 0x287   : > { %v2194_v19 = vand.u32 %v6028_v7, %v6485_v27  ;;  %v6040_v15 = vld [vmem:[%s7574_s5 + $0x10] sm:$0x7f]  }
 0x288   : > { %v1681_v50 = vadd.f32 %v6595_v60, %v1637_v0  ;;  %v1665_v6 = vadd.f32 %v6593_v56, %v1621_v28  ;;  %v2085_v63 = vpop.permute.xlu1 %2084  ;;  %v2004_v36 = vpop.permute.xlu0 %2003  ;;  %v6041_v0 = vld [vmem:[%s7574_s5 + $0x10] sm:$0x7f]  }
 0x289   : > { %5523 = vmatmul.mubr.msk.bf16.vlgmr.msra.gmra.mrb[24].mxu1 %vm1773_vm7, %v2004_v36  ;;  %5533 = vmatmul.mubr.msk.bf16.vlgmr.msra.gmra.mrb[24].mxu0 %vm1773_vm7, %v2085_v63  ;;  %v6042_v63 = vld [vmem:[%s7574_s5] sm:$0xff]  }
 0x28a   : > { %v1713_v5 = vmax.f32 %v1681_v50, 0.0  ;;  %v1697_v38 = vmax.f32 %v1665_v6, 0.0  ;;  %5537 = vmatpush3.bf16.msra.mxu1 %v6024_v62  ;;  %5547 = vmatpush3.bf16.msra.mxu0 %v6025_v22  ;;  %v2526_v62 = vand.u32 %v6040_v15, %v6485_v27  ;;  %v2613_v22 = vand.u32 %v6041_v0, %v6485_v27  ;;  %v6043_v36 = vld [vmem:[%s7574_s5] sm:$0xff]   ;;  %v6068_v0 = vld [vmem:[%s7574_s5 + $0x8] sm:$0xff]  }
 0x28b   : > { %5538 = vmatprep.subr.bf16.mxu1 %v6085_v44  ;;  %5548 = vmatprep.subr.bf16.mxu0 %v6085_v44  ;;  %v6066_v15 = vld [vmem:[%s7574_s5] sm:$0xff]  }
 0x28c   : > { %v1729_v31 = vpack.c.bf16 %v1713_v5, %v1697_v38  ;;  %v1540_v12 = vpop.permute.xlu1 %1539  ;;  %v1506_v16 = vpop.permute.xlu0 %1505  ;;  %5542 = vmatprep.mubr.msk.bf16.mxu1 %vm6086_vm3, %v6085_v44  ;;  %5552 = vmatprep.mubr.msk.bf16.mxu0 %vm6086_vm3, %v6085_v44  ;;  %v6044_v38 = vld [vmem:[%s7574_s5 + $0x8] sm:$0xff]  }
 0x28d   : > { %v1574_v33 = vsel %vm1543_vm6, %v1538_v53, %v1540_v12  ;;  %v1558_v52 = vsel %vm1543_vm6, %v1504_v11, %v1506_v16  ;;  %v6038_v11 = vld [vmem:[%s7574_s5 + $0x8] sm:$0xff]  }
 0x28e   : > { %v1638_v20 = vmax.f32 %v6764_v54, %v1574_v33  ;;  %v1622_v9 = vmax.f32 %v6767_v58, %v1558_v52  ;;  %5539 = vmatpush3.bf16.msra.mxu1 %v6026_v61  ;;  %5549 = vmatpush3.bf16.msra.mxu0 %v6027_v23  ;;  %v6046_v61 = vld [vmem:[%s7574_s5 + $0x10] sm:$0x7f]   ;;  %v6045_v23 = vld [vmem:[%s7574_s5 + $0x8] sm:$0xff]   ;;  %v6050_v33 = vld [vmem:[%s7574_s5] sm:$0xff]  }
 0x28f   : > { %5540 = vmatprep.subr.bf16.mxu1 %v6085_v44  ;;  %5550 = vmatprep.subr.bf16.mxu0 %v6085_v44 }
 0x290   : > { %v1682_v34 = vadd.f32 %v6595_v60, %v1638_v20  ;;  %v1666_v10 = vadd.f32 %v6593_v56, %v1622_v9  ;;  %v2170_v14 = vpop.permute.xlu1 %2169  ;;  %v2168_v1 = vpop.permute.xlu0 %2167  ;;  %3173 = vrot.lane.b32.xlu1 %v1729_v31, %s6105_s20  ;;  %v2694_v31 = vand.u32 %v6046_v61, %v6485_v27  ;;  %v6049_v20 = vld [vmem:[%s7574_s5 + $0x8] sm:$0xff]   ;;  %v6051_v9 = vld [vmem:[%s7574_s5 + $0x10] sm:$0x7f]  }
 0x291   : > { %v2172_v32 = vsel %vm2171_vm9, %v2168_v1, %v2170_v14  ;;  %vm2412_vm9 = vcmask 457992  }
 0x292   : > { %v1714_v54 = vmax.f32 %v1682_v34, 0.0  ;;  %v1698_v58 = vmax.f32 %v1666_v10, 0.0  ;;  %5541 = vmatpush3.bf16.msra.mxu1 %v2194_v19  ;;  %5551 = vmatpush3.bf16.msra.mxu0 %v2283_v37  ;;  %v6052_v37 = vld [vmem:[%s7574_s5 + $0x8] sm:$0xff]   ;;  %v6053_v34 = vld [vmem:[%s7574_s5 + $0x10] sm:$0x7f]   ;;  %v2858_v10 = vand.u32 %v6051_v9, %v6485_v27 }
 0x293   : > { %5556 = vmatprep.subr.bf16.mxu1 %v6085_v44  ;;  %5566 = vmatprep.subr.bf16.mxu0 %v6085_v44  ;;  %v2945_v14 = vand.u32 %v6053_v34, %v6485_v27 }
 0x294   : > { %v1730_v4 = vpack.c.bf16 %v1714_v54, %v1698_v58  ;;  %v2259_v35 = vpop.permute.xlu1 %2258  ;;  %v2257_v43 = vpop.permute.xlu0 %2256 }
 0x295   : > { %5543 = vmatmul.mubr.msk.bf16.vlgmr.msra.gmra.mrb[28].mxu1 %vm1773_vm7, %v2172_v32  ;;  %v2261_v47 = vsel %vm7581_vm10, %v2257_v43, %v2259_v35  ;;  %v6056_v35 = vld [vmem:[%s7574_s5 + $0x8] sm:$0xff]   ;;  %v6058_v43 = vld [vmem:[%s7574_s5 + $0x10] sm:$0x7f]   ;;  %vm3856_vm10 = vcmask 474112  }
 0x296   : > { %5557 = vmatpush3.bf16.msra.mxu1 %v6030_v39  ;;  %5553 = vmatmul.mubr.msk.bf16.vlgmr.msra.gmra.mrb[28].mxu0 %vm1773_vm7, %v2261_v47  ;;  %v6055_v47 = vld [vmem:[%s7574_s5] sm:$0xff]   ;;  %v3032_v59 = vand.u32 %v6058_v43, %v6485_v27 }
 0x297   : > { %5567 = vmatpush3.bf16.msra.mxu0 %v6031_v41  ;;  %5558 = vmatprep.subr.bf16.mxu1 %v6085_v44 }
 0x298   : > { %v1542_v40 = vpop.permute.xlu1 %1541  ;;  %v1508_v46 = vpop.permute.xlu0 %1507  ;;  %5568 = vmatprep.subr.bf16.mxu0 %v6085_v44  ;;  %3337 = vrot.lane.b32.xlu1 %v1730_v4, %s6106_s21 }
 0x299   : > { %v1575_v18 = vsel %vm1543_vm6, %v1540_v12, %v1542_v40  ;;  %v1559_v21 = vsel %vm1543_vm6, %v1506_v16, %v1508_v46  ;;  %3254 = vrot.lane.b32.xlu0 %v1730_v4, %s6107_s23  ;;  %5562 = vmatprep.mubr.msk.bf16.mxu1 %vm6086_vm3, %v6085_v44  ;;  %v2777_v12 = vand.u32 %v6047_v29, %v6485_v27  ;;  %v6048_v16 = vld [vmem:[%s7574_s5] sm:$0xff]   ;;  %v6059_v40 = vld [vmem:[%s7574_s5 + $0x10] sm:$0x7f]   ;;  %s6120_s23 = smov 89   ;;  %vm2242_vm6 = vcmask 1048472  }
 0x29a   : > { %v1639_v17 = vmax.f32 %v1424_v57, %v1575_v18  ;;  %v1623_v26 = vmax.f32 %v1408_v42, %v1559_v21  ;;  %5559 = vmatpush3.bf16.msra.mxu1 %v6032_v45  ;;  %5572 = vmatprep.mubr.msk.bf16.mxu0 %vm6086_vm3, %v6085_v44  ;;  %v6054_v4 = vld [vmem:[%s7574_s5] sm:$0xff]   ;;  %v6057_v57 = vld [vmem:[%s7574_s5 + $0x8] sm:$0xff]   ;;  %v3113_v42 = vand.u32 %v6059_v40, %v6485_v27 }
 0x29b   : > { %5569 = vmatpush3.bf16.msra.mxu0 %v6033_v49  ;;  %5560 = vmatprep.subr.bf16.mxu1 %v6085_v44  ;;  %v6060_v46 = vld [vmem:[%s7574_s5] sm:$0xff]  }
 0x29c   : > { %v1683_v51 = vadd.f32 %v6595_v60, %v1639_v17  ;;  %v1667_v3 = vadd.f32 %v6593_v56, %v1623_v26  ;;  %5570 = vmatprep.subr.bf16.mxu0 %v6085_v44  ;;  %v2342_v8 = vpop.permute.xlu0 %2341  ;;  %v6037_v60 = vld [vmem:[%s7574_s5] sm:$0xff]   ;;  %v2423_v56 = vpop.permute.xlu1 %2422  ;;  %v6061_v26 = vld [vmem:[%s7574_s5 + $0x8] sm:$0xff]  }
 0x29e   : > { %v1715_v24 = vmax.f32 %v1683_v51, 0.0  ;;  %v1699_v2 = vmax.f32 %v1667_v3, 0.0  ;;  %5561 = vmatpush3.bf16.msra.mxu1 %v2364_v13  ;;  %v6062_v13 = vld [vmem:[%s7574_s5] sm:$0xff]  }
 0x29f   : > { %5571 = vmatpush3.bf16.msra.mxu0 %v2445_v48  ;;  %5576 = vmatprep.subr.bf16.mxu1 %v6085_v44  ;;  %v6063_v48 = vld [vmem:[%s7574_s5 + $0x10] sm:$0x7f]  }
 0x2a0   : > { %v1731_v53 = vpack.c.bf16 %v1715_v24, %v1699_v2  ;;  %5586 = vmatprep.subr.bf16.mxu0 %v6085_v44  ;;  %v2504_v28 = vpop.permute.xlu0 %2503  ;;  %v2587_v7 = vpop.permute.xlu1 %2586  ;;  %v3196_v3 = vand.u32 %v6063_v48, %v6485_v27  ;;  %v6064_v24 = vld [vmem:[%s7574_s5 + $0x8] sm:$0xff]   ;;  %v6065_v2 = vld [vmem:[%s7574_s5 + $0x10] sm:$0x7f]  }
 0x2a1   : > { %5563 = vmatmul.mubr.msk.bf16.vlgmr.msra.gmra.mrb[32].mxu1 %vm1773_vm7, %v2342_v8  ;;  %v3277_v8 = vand.u32 %v6065_v2, %v6485_v27 }
 0x2a2   : > { %1748 = vst.msk [vmem:[#allocation2 + $0x78] sm:$0xff] %vm1747_vm11, %v1731_v53  ;;  %5577 = vmatpush3.bf16.msra.mxu1 %v6036_v55  ;;  %5573 = vmatmul.mubr.msk.bf16.vlgmr.msra.gmra.mrb[32].mxu0 %vm1773_vm7, %v2423_v56  ;;  %v6067_v55 = vld [vmem:[%s7574_s5] sm:$0xff]   ;;  %v6069_v53 = vld [vmem:[%s7574_s5 + $0x8] sm:$0xff]   ;;  %v6071_v56 = vld [vmem:[%s7574_s5 + $0x10] sm:$0x7f]  }
 0x2a3   : > { %5587 = vmatpush3.bf16.msra.mxu0 %v6037_v60  ;;  %5578 = vmatprep.subr.bf16.mxu1 %v6085_v44 }
 0x2a4   : > { %5588 = vmatprep.subr.bf16.mxu0 %v6085_v44  ;;  %5582 = vmatprep.mubr.msk.bf16.mxu1 %vm6086_vm3, %v6085_v44  ;;  %v2589_v6 = vpop.permute.xlu0 %2588  ;;  %v2672_v52 = vpop.permute.xlu1 %2671 }
 0x2a5   : > { %5592 = vmatprep.mubr.msk.bf16.mxu0 %vm6086_vm3, %v6085_v44  ;;  %v2591_v5 = vsel %vm2590_vm12, %v2587_v7, %v2589_v6  ;;  %vm2493_vm12 = vcmask 646592  }
 0x2a6   : > { %5579 = vmatpush3.bf16.msra.mxu1 %v6038_v11  ;;  %v3364_v11 = vand.u32 %v6071_v56, %v6485_v27 }
 0x2a7   : > { %5589 = vmatpush3.bf16.msra.mxu0 %v6039_v30  ;;  %5580 = vmatprep.subr.bf16.mxu1 %v6085_v44 }
 0x2a8   : > { %5590 = vmatprep.subr.bf16.mxu0 %v6085_v44  ;;  %v2755_v19 = vpop.permute.xlu0 %2754 }
 0x2a9   : > { %v3414_v50 = vld [vmem:[#allocation2 + $0x78] sm:$0xff] }
 0x2aa   : > { %5581 = vmatpush3.bf16.msra.mxu1 %v2526_v62  ;;  %3422 = vrot.lane.b32.xlu1 %v3414_v50, %s6108_s27  ;;  %s6121_s27 = smov 7  }
 0x2ab   : > { %5591 = vmatpush3.bf16.msra.mxu0 %v2613_v22  ;;  %3339 = vrot.lane.b32.xlu0 %v3414_v50, %s6106_s21 }
 0x2ac   : > { %5596 = vmatprep.subr.bf16.mxu1 %v6085_v44  ;;  %5606 = vmatprep.subr.bf16.mxu0 %v6085_v44 }
 0x2ad   : > { %5583 = vmatmul.mubr.msk.bf16.vlgmr.msra.gmra.mrb[36].mxu1 %vm1773_vm7, %v2504_v28  ;;  %v6070_v28 = vld [vmem:[%s7574_s5 + $0x10] sm:$0x7f]  }
 0x2ae   : > { %5593 = vmatmul.mubr.msk.bf16.vlgmr.msra.gmra.mrb[36].mxu0 %vm1773_vm7, %v2591_v5  ;;  %5597 = vmatpush3.bf16.msra.mxu1 %v6042_v63  ;;  %v3445_v62 = vand.u32 %v6070_v28, %v6485_v27 }
 0x2af   : > { %5607 = vmatpush3.bf16.msra.mxu0 %v6043_v36  ;;  %5598 = vmatprep.subr.bf16.mxu1 %v6085_v44 }
 0x2b0   : > { %5608 = vmatprep.subr.bf16.mxu0 %v6085_v44  ;;  %5602 = vmatprep.mubr.msk.bf16.mxu1 %vm6086_vm3, %v6085_v44 }
 0x2b1   : > { %5612 = vmatprep.mubr.msk.bf16.mxu0 %vm6086_vm3, %v6085_v44 }
 0x2b2   : > { %5599 = vmatpush3.bf16.msra.mxu1 %v6044_v38 }
 0x2b3   : > { %5609 = vmatpush3.bf16.msra.mxu0 %v6045_v23  ;;  %5600 = vmatprep.subr.bf16.mxu1 %v6085_v44 }
 0x2b4   : > { %5610 = vmatprep.subr.bf16.mxu0 %v6085_v44 }
 0x2b6   : > { %5601 = vmatpush3.bf16.msra.mxu1 %v2694_v31 }
 0x2b7   : > { %5611 = vmatpush3.bf16.msra.mxu0 %v2777_v12  ;;  %5616 = vmatprep.subr.bf16.mxu1 %v6085_v44 }
 0x2b8   : > { %5626 = vmatprep.subr.bf16.mxu0 %v6085_v44 }
 0x2b9   : > { %5603 = vmatmul.mubr.msk.bf16.vlgmr.msra.gmra.mrb[40].mxu1 %vm1773_vm7, %v2672_v52 }
 0x2ba   : > { %5613 = vmatmul.mubr.msk.bf16.vlgmr.msra.gmra.mrb[40].mxu0 %vm1773_vm7, %v2755_v19  ;;  %5617 = vmatpush3.bf16.msra.mxu1 %v6048_v16 }
 0x2bb   : > { %5618 = vmatprep.subr.bf16.mxu1 %v6085_v44  ;;  %5627 = vmatpush3.bf16.msra.mxu0 %v6050_v33 }
 0x2bc   : > { %5628 = vmatprep.subr.bf16.mxu0 %v6085_v44  ;;  %5622 = vmatprep.mubr.msk.bf16.mxu1 %vm6086_vm3, %v6085_v44 }
 0x2bd   : > { %5632 = vmatprep.mubr.msk.bf16.mxu0 %vm6086_vm3, %v6085_v44 }
 0x2be   : > { %5619 = vmatpush3.bf16.msra.mxu1 %v6049_v20 }
 0x2bf   : > { %5620 = vmatprep.subr.bf16.mxu1 %v6085_v44  ;;  %5629 = vmatpush3.bf16.msra.mxu0 %v6052_v37 }
 0x2c0   : > { %5630 = vmatprep.subr.bf16.mxu0 %v6085_v44 }
 0x2c2   : > { %5621 = vmatpush3.bf16.msra.mxu1 %v2858_v10 }
 0x2c3   : > { %5631 = vmatpush3.bf16.msra.mxu0 %v2945_v14  ;;  %5636 = vmatprep.subr.bf16.mxu1 %v6085_v44 }
 0x2c4   : > { %5646 = vmatprep.subr.bf16.mxu0 %v6085_v44 }
 0x2cb   : > { %v1817_v1 = vpop.f32.mrb[16].mxu1 }
 0x2cc   : > { %v5494_v54 = vpop.f32.mrb[17].mxu1 }
 0x2cd   : > { %v1820_v58 = vpop.f32.mrb[18].mxu1 }
 0x2ce   : > { %v1824_v39 = vpack.c.bf16 %v1820_v58, %v1817_v1  ;;  %v5495_v41 = vpop.f32.mrb[19].mxu1 }
 0x2d0   : > { %1826 = vst.msk [vmem:[#allocation3] sm:$0xff] %vm1825_vm13, %v1824_v39  ;;  %vm2574_vm13 = vcmask 835192  }
 0x2e8   : > { %v2836_v32 = vpop.permute.xlu1 %2835 }
 0x2e9   : > { %5623 = vmatmul.mubr.msk.bf16.vlgmr.msra.gmra.mrb[44].mxu1 %vm1773_vm7, %v2836_v32  ;;  %v2919_v45 = vpop.permute.xlu0 %2918 }
 0x2ea   : > { %5637 = vmatpush3.bf16.msra.mxu1 %v6054_v4  ;;  %5642 = vmatprep.mubr.msk.bf16.mxu1 %vm6086_vm3, %v6085_v44 }
 0x2eb   : > { %5638 = vmatprep.subr.bf16.mxu1 %v6085_v44 }
 0x2ec   : > { %v2921_v25 = vpop.permute.xlu1 %2920 }
 0x2ed   : > { %v2923_v49 = vsel %vm2922_vm14, %v2919_v45, %v2921_v25  ;;  %v3006_v18 = vpop.permute.xlu0 %3005  ;;  %vm2661_vm14 = vcmask 1023792  }
 0x2ee   : > { %5633 = vmatmul.mubr.msk.bf16.vlgmr.msra.gmra.mrb[44].mxu0 %vm1773_vm7, %v2923_v49  ;;  %5639 = vmatpush3.bf16.msra.mxu1 %v6056_v35 }
 0x2ef   : > { %5647 = vmatpush3.bf16.msra.mxu0 %v6055_v47  ;;  %5640 = vmatprep.subr.bf16.mxu1 %v6085_v44 }
 0x2f0   : > { %5648 = vmatprep.subr.bf16.mxu0 %v6085_v44  ;;  %5652 = vmatprep.mubr.msk.bf16.mxu0 %vm6086_vm3, %v6085_v44 }
 0x2f2   : > { %5641 = vmatpush3.bf16.msra.mxu1 %v3032_v59 }
 0x2f3   : > { %5649 = vmatpush3.bf16.msra.mxu0 %v6057_v57  ;;  %5656 = vmatprep.subr.bf16.mxu1 %v6085_v44 }
 0x2f4   : > { %5650 = vmatprep.subr.bf16.mxu0 %v6085_v44  ;;  %v3008_v21 = vpop.permute.xlu1 %3007  ;;  %v3091_v51 = vpop.permute.xlu0 %3090 }
 0x2f5   : > { %v3010_v17 = vsel %vm3009_vm15, %v3006_v18, %v3008_v21  ;;  %vm2742_vm15 = vcmask 1048552  }
 0x2f6   : > { %5643 = vmatmul.mubr.msk.bf16.vlgmr.msra.gmra.mrb[48].mxu1 %vm1773_vm7, %v3010_v17 }
 0x2f7   : > { %5651 = vmatpush3.bf16.msra.mxu0 %v3113_v42  ;;  %5657 = vmatpush3.bf16.msra.mxu1 %v6060_v46 }
 0x2f8   : > { %5658 = vmatprep.subr.bf16.mxu1 %v6085_v44  ;;  %5666 = vmatprep.subr.bf16.mxu0 %v6085_v44 }
 0x2f9   : > { %5662 = vmatprep.mubr.msk.bf16.mxu1 %vm6086_vm3, %v6085_v44 }
 0x2fa   : > { %5653 = vmatmul.mubr.msk.bf16.vlgmr.msra.gmra.mrb[48].mxu0 %vm1773_vm7, %v3091_v51 }
 0x2fb   : > { %5659 = vmatpush3.bf16.msra.mxu1 %v6061_v26  ;;  %5667 = vmatpush3.bf16.msra.mxu0 %v6062_v13 }
 0x2fc   : > { %5660 = vmatprep.subr.bf16.mxu1 %v6085_v44  ;;  %5668 = vmatprep.subr.bf16.mxu0 %v6085_v44 }
 0x2fd   : > { %5672 = vmatprep.mubr.msk.bf16.mxu0 %vm6086_vm3, %v6085_v44 }
 0x2ff   : > { %5661 = vmatpush3.bf16.msra.mxu1 %v3196_v3  ;;  %5669 = vmatpush3.bf16.msra.mxu0 %v6064_v24 }
 0x300   : > { %5670 = vmatprep.subr.bf16.mxu0 %v6085_v44  ;;  %5676 = vmatprep.subr.bf16.mxu1 %v6085_v44 }
 0x302   : > { %v3174_v60 = vpop.permute.xlu1 %3173 }
 0x303   : > { %5663 = vmatmul.mubr.msk.bf16.vlgmr.msra.gmra.mrb[52].mxu1 %vm1773_vm7, %v3174_v60  ;;  %5671 = vmatpush3.bf16.msra.mxu0 %v3277_v8 }
 0x304   : > { %5686 = vmatprep.subr.bf16.mxu0 %v6085_v44  ;;  %5677 = vmatpush3.bf16.msra.mxu1 %v6067_v55 }
 0x305   : > { %5678 = vmatprep.subr.bf16.mxu1 %v6085_v44  ;;  %5682 = vmatprep.mubr.msk.bf16.mxu1 %vm6086_vm3, %v6085_v44 }
 0x308   : > { %5679 = vmatpush3.bf16.msra.mxu1 %v6069_v53 }
 0x309   : > { %5680 = vmatprep.subr.bf16.mxu1 %v6085_v44 }
 0x30a   : > { %v3338_v22 = vpop.permute.xlu1 %3337 }
 0x30b   : > { %v3255_v30 = vpop.permute.xlu0 %3254 }
 0x30c   : > { %5673 = vmatmul.mubr.msk.bf16.vlgmr.msra.gmra.mrb[52].mxu0 %vm1773_vm7, %v3255_v30  ;;  %5681 = vmatpush3.bf16.msra.mxu1 %v3364_v11 }
 0x30d   : > { %5687 = vmatpush3.bf16.msra.mxu0 %v6066_v15  ;;  %5692 = vmatprep.mubr.msk.bf16.mxu0 %vm6086_vm3, %v6085_v44  ;;  %vm2074_vm3 = vcmask 753192  }
 0x30e   : > { %5688 = vmatprep.subr.bf16.mxu0 %v6085_v44 }
 0x311   : > { %5689 = vmatpush3.bf16.msra.mxu0 %v6068_v0 }
 0x312   : > { %5690 = vmatprep.subr.bf16.mxu0 %v6085_v44 }
 0x315   : > { %5691 = vmatpush3.bf16.msra.mxu0 %v3445_v62 }
 0x31c   : > { %v3423_v50 = vpop.permute.xlu1 %3422 }
 0x31d   : > { %v3340_v6 = vpop.permute.xlu0 %3339  ;;  %5693 = vmatmul.mubr.msk.bf16.vlgmr.msra.gmra.mrb[56].mxu0 %vm1773_vm7, %v3423_v50 }
 0x31e   : > { %v3342_v63 = vsel %vm7582_vm0, %v3338_v22, %v3340_v6 }
 0x31f   : > { %5683 = vmatmul.mubr.msk.bf16.vlgmr.msra.gmra.mrb[56].mxu1 %vm1773_vm7, %v3342_v63  ;;  %vm7583_vm7 = vcmask 80896  }
 0x345   : > { %v1900_v36 = vpop.f32.mrb[20].mxu1 }
 0x346   : > { %v5504_v7 = vpop.f32.mrb[21].mxu1 }
 0x347   : > { %v1903_v5 = vpop.f32.mrb[22].mxu1 }
 0x348   : > { %v1907_v38 = vpack.c.bf16 %v1903_v5, %v1900_v36  ;;  %v5505_v61 = vpop.f32.mrb[23].mxu1  ;;  %v1981_v23 = vpop.f32.mrb[20].mxu0 }
 0x349   : > { %v5514_v27 = vpop.f32.mrb[21].mxu0 }
 0x34a   : > { %1909 = vrot.lane.b32.xlu1 %v1907_v38, %s6109_s28  ;;  %v1984_v44 = vpop.f32.mrb[22].mxu0  ;;  %s6123_s28 = smov 76  }
 0x34b   : > { %v1988_v29 = vpack.c.bf16 %v1984_v44, %v1981_v23  ;;  %v5515_v31 = vpop.f32.mrb[23].mxu0 }
 0x34d   : > { %1990 = vrot.lane.b32.xlu0 %v1988_v29, %s6110_s29  ;;  %s6124_s29 = smov 53  }
 0x35c   : > { %v2062_v12 = vpop.f32.mrb[24].mxu1  ;;  %v2143_v16 = vpop.f32.mrb[24].mxu0 }
 0x35d   : > { %v5524_v33 = vpop.f32.mrb[25].mxu1  ;;  %v5534_v52 = vpop.f32.mrb[25].mxu0 }
 0x35e   : > { %v2065_v19 = vpop.f32.mrb[26].mxu1  ;;  %v2146_v20 = vpop.f32.mrb[26].mxu0 }
 0x35f   : > { %v2069_v9 = vpack.c.bf16 %v2065_v19, %v2062_v12  ;;  %v2150_v37 = vpack.c.bf16 %v2146_v20, %v2143_v16  ;;  %v5525_v34 = vpop.f32.mrb[27].mxu1  ;;  %v5535_v10 = vpop.f32.mrb[27].mxu0 }
 0x361   : > { %2071 = vrot.lane.b32.xlu0 %v2069_v9, %s6111_s30  ;;  %s6125_s30 = smov 126  }
 0x365   : > { %2152 = vrot.lane.b32.xlu0 %v2150_v37, %s6105_s20  ;;  %s6114_s20 = smov 33  }
 0x368   : > { %v2230_v14 = vpop.f32.mrb[28].mxu1 }
 0x369   : > { %v5544_v1 = vpop.f32.mrb[29].mxu1  ;;  %v2319_v54 = vpop.f32.mrb[28].mxu0 }
 0x36a   : > { %v2233_v58 = vpop.f32.mrb[30].mxu1  ;;  %v5554_v39 = vpop.f32.mrb[29].mxu0 }
 0x36b   : > { %v2237_v41 = vpack.c.bf16 %v2233_v58, %v2230_v14  ;;  %v5545_v4 = vpop.f32.mrb[31].mxu1  ;;  %v2322_v32 = vpop.f32.mrb[30].mxu0 }
 0x36c   : > { %v2326_v35 = vpack.c.bf16 %v2322_v32, %v2319_v54  ;;  %v5555_v43 = vpop.f32.mrb[31].mxu0 }
 0x36d   : > { %2239 = vrot.lane.b32.xlu0 %v2237_v41, %s6112_s8  ;;  %s6126_s8 = smov 105  }
 0x36e   : > { %2328 = vrot.lane.b32.xlu1 %v2326_v35, %s6113_s10 }
 0x374   : > { %v2400_v47 = vpop.f32.mrb[32].mxu1 }
 0x375   : > { %v5564_v45 = vpop.f32.mrb[33].mxu1  ;;  %v2481_v25 = vpop.f32.mrb[32].mxu0 }
 0x376   : > { %v2403_v49 = vpop.f32.mrb[34].mxu1  ;;  %v5574_v59 = vpop.f32.mrb[33].mxu0 }
 0x377   : > { %v2407_v57 = vpack.c.bf16 %v2403_v49, %v2400_v47  ;;  %v5565_v40 = vpop.f32.mrb[35].mxu1  ;;  %v2484_v42 = vpop.f32.mrb[34].mxu0 }
 0x378   : > { %v2488_v46 = vpack.c.bf16 %v2484_v42, %v2481_v25  ;;  %v5575_v18 = vpop.f32.mrb[35].mxu0 }
 0x379   : > { %2409 = vrot.lane.b32.xlu1 %v2407_v57, %s6114_s20  ;;  %s6127_s20 = smov 104  }
 0x37a   : > { %2490 = vrot.lane.b32.xlu0 %v2488_v46, %s6090_s14 }
 0x380   : > { %v2562_v21 = vpop.f32.mrb[36].mxu1 }
 0x381   : > { %v5584_v17 = vpop.f32.mrb[37].mxu1  ;;  %v2649_v26 = vpop.f32.mrb[36].mxu0 }
 0x382   : > { %v2565_v13 = vpop.f32.mrb[38].mxu1  ;;  %v5594_v48 = vpop.f32.mrb[37].mxu0 }
 0x383   : > { %v2569_v51 = vpack.c.bf16 %v2565_v13, %v2562_v21  ;;  %v5585_v3 = vpop.f32.mrb[39].mxu1  ;;  %v2652_v24 = vpop.f32.mrb[38].mxu0 }
 0x384   : > { %v2656_v2 = vpack.c.bf16 %v2652_v24, %v2649_v26  ;;  %v5595_v8 = vpop.f32.mrb[39].mxu0 }
 0x385   : > { %2571 = vrot.lane.b32.xlu1 %v2569_v51, %s6115_s11 }
 0x389   : > { %2658 = vrot.lane.b32.xlu1 %v2656_v2, %s6116_s12 }
 0x38c   : > { %v2730_v55 = vpop.f32.mrb[40].mxu1 }
 0x38d   : > { %v5604_v60 = vpop.f32.mrb[41].mxu1  ;;  %v2813_v53 = vpop.f32.mrb[40].mxu0 }
 0x38e   : > { %v2733_v56 = vpop.f32.mrb[42].mxu1  ;;  %v5614_v11 = vpop.f32.mrb[41].mxu0 }
 0x38f   : > { %v2737_v15 = vpack.c.bf16 %v2733_v56, %v2730_v55  ;;  %v5605_v30 = vpop.f32.mrb[43].mxu1  ;;  %v2816_v0 = vpop.f32.mrb[42].mxu0 }
 0x390   : > { %v2820_v28 = vpack.c.bf16 %v2816_v0, %v2813_v53  ;;  %v5615_v62 = vpop.f32.mrb[43].mxu0 }
 0x391   : > { %2739 = vrot.lane.b32.xlu0 %v2737_v15, %s6117_s16 }
 0x395   : > { %2822 = vrot.lane.b32.xlu0 %v2820_v28, %s6106_s21 }
 0x3bc   : > { %v1910_v22 = vpop.permute.xlu1 %1909  ;;  %v2894_v50 = vpop.f32.mrb[44].mxu1 }
 0x3bd   : > { %1913 = vst.msk [vmem:[#allocation3] sm:$0xff] %vm1912_vm1, %v1910_v22  ;;  %v5624_v6 = vpop.f32.mrb[45].mxu1  ;;  %vm2825_vm1 = vcmask 351392  }
 0x3be   : > { %v2897_v63 = vpop.f32.mrb[46].mxu1 }
 0x3bf   : > { %v1991_v36 = vpop.permute.xlu0 %1990  ;;  %v2901_v7 = vpack.c.bf16 %v2897_v63, %v2894_v50  ;;  %v5625_v5 = vpop.f32.mrb[47].mxu1 }
 0x3c0   : > { %1994 = vst.msk [vmem:[#allocation3] sm:$0xff] %vm1993_vm2, %v1991_v36  ;;  %vm2906_vm2 = vcmask 539992  }
 0x3c1   : > { %2903 = vrot.lane.b32.xlu1 %v2901_v7, %s6118_s17  ;;  %v2981_v38 = vpop.f32.mrb[44].mxu0  ;;  %s6128_s17 = smov 103   ;;  %v6074_v7 = vld [vmem:[%s7572_s3 + $0x4] ss:$8 sps:$4 sm:$0xff]  }
 0x3c2   : > { %v5634_v61 = vpop.f32.mrb[45].mxu0  ;;  %4032 = vmatprep.mubr.bf16.mxu1 %v6074_v7  ;;  %4075 = vmatprep.mubr.bf16.mxu0 %v6074_v7 }
 0x3c3   : > { %v2984_v23 = vpop.f32.mrb[46].mxu0 }
 0x3c4   : > { %v2988_v27 = vpack.c.bf16 %v2984_v23, %v2981_v38  ;;  %v5635_v44 = vpop.f32.mrb[47].mxu0 }
 0x3c6   : > { %2990 = vrot.lane.b32.xlu0 %v2988_v27, %s6119_s19  ;;  %s6129_s19 = smov 82  }
 0x3c9   : > { %v3068_v29 = vpop.f32.mrb[48].mxu1 }
 0x3ca   : > { %v5644_v31 = vpop.f32.mrb[49].mxu1 }
 0x3cb   : > { %v3071_v12 = vpop.f32.mrb[50].mxu1 }
 0x3cc   : > { %v3075_v16 = vpack.c.bf16 %v3071_v12, %v3068_v29  ;;  %v5645_v33 = vpop.f32.mrb[51].mxu1 }
 0x3cd   : > { %v3149_v52 = vpop.f32.mrb[48].mxu0 }
 0x3ce   : > { %v5654_v19 = vpop.f32.mrb[49].mxu0  ;;  %3077 = vrot.lane.b32.xlu0 %v3075_v16, %s6120_s23  ;;  %s6130_s23 = smov 81  }
 0x3cf   : > { %v3152_v20 = vpop.f32.mrb[50].mxu0 }
 0x3d0   : > { %v3156_v9 = vpack.c.bf16 %v3152_v20, %v3149_v52  ;;  %v5655_v37 = vpop.f32.mrb[51].mxu0 }
 0x3d2   : > { %3158 = vrot.lane.b32.xlu1 %v3156_v9, %s6091_s15  ;;  %s7579_s15 = smov 30  }
 0x3d3   : > { %v2072_v34 = vpop.permute.xlu0 %2071 }
 0x3d4   : > { %2075 = vst.msk [vmem:[#allocation3] sm:$0xff] %vm2074_vm3, %v2072_v34  ;;  %vm2993_vm3 = vcmask 728592  }
 0x3d6   : > { %v3232_v10 = vpop.f32.mrb[52].mxu1 }
 0x3d7   : > { %v2153_v14 = vpop.permute.xlu0 %2152  ;;  %v5664_v1 = vpop.f32.mrb[53].mxu1 }
 0x3d8   : > { %2156 = vst.msk [vmem:[#allocation3] sm:$0xff] %vm2155_vm4, %v2153_v14  ;;  %v3235_v54 = vpop.f32.mrb[54].mxu1  ;;  %vm3080_vm4 = vcmask 917192  }
 0x3d9   : > { %v3239_v58 = vpack.c.bf16 %v3235_v54, %v3232_v10  ;;  %v5665_v39 = vpop.f32.mrb[55].mxu1 }
 0x3db   : > { %3241 = vrot.lane.b32.xlu1 %v3239_v58, %s6121_s27  ;;  %s6131_s27 = smov 59  }
 0x3df   : > { %v2240_v41 = vpop.permute.xlu0 %2239  ;;  %v3313_v4 = vpop.f32.mrb[52].mxu0 }
 0x3e0   : > { %2243 = vst.msk [vmem:[#allocation3] sm:$0xff] %vm2242_vm6, %v2240_v41  ;;  %v2329_v32 = vpop.permute.xlu1 %2328  ;;  %v5674_v35 = vpop.f32.mrb[53].mxu0  ;;  %vm3161_vm6 = vcmask 1048448  }
 0x3e1   : > { %2245 = vst.msk [vmem:[#allocation3 + $0x8] sm:$0xff] %vm7583_vm7, %v2240_v41  ;;  %v3316_v43 = vpop.f32.mrb[54].mxu0  ;;  %vm3912_vm7 = vcmask 457728  }
 0x3e2   : > { %2332 = vst.msk [vmem:[#allocation3 + $0x8] sm:$0xff] %vm2331_vm8, %v2329_v32  ;;  %v3320_v47 = vpack.c.bf16 %v3316_v43, %v3313_v4  ;;  %v5675_v45 = vpop.f32.mrb[55].mxu0  ;;  %vm3163_vm8 = vcmask 56320  }
 0x3e4   : > { %3322 = vrot.lane.b32.xlu1 %v3320_v47, %s7579_s15 }
 0x3e7   : > { %v7158_v25 = vld [vmem:[#allocation3] sm:$0xff] }
 0x3eb   : > { %v2410_v49 = vpop.permute.xlu1 %2409 }
 0x3ec   : > { %2413 = vst.msk [vmem:[#allocation3 + $0x8] sm:$0xff] %vm2412_vm9, %v2410_v49  ;;  %v2491_v59 = vpop.permute.xlu0 %2490  ;;  %vm3244_vm9 = vcmask 244792  }
 0x3ed   : > { %2494 = vst.msk [vmem:[#allocation3 + $0x8] sm:$0xff] %vm2493_vm12, %v2491_v59  ;;  %vm3325_vm12 = vcmask 433392  }
 0x3f0   : > { %v3481_v57 = vpop.f32.mrb[56].mxu0 }
 0x3f1   : > { %v5694_v40 = vpop.f32.mrb[57].mxu0 }
 0x3f2   : > { %v3400_v42 = vpop.f32.mrb[56].mxu1  ;;  %v3484_v46 = vpop.f32.mrb[58].mxu0 }
 0x3f3   : > { %v5684_v18 = vpop.f32.mrb[57].mxu1  ;;  %v3488_v21 = vpack.c.bf16 %v3484_v46, %v3481_v57  ;;  %v5695_v17 = vpop.f32.mrb[59].mxu0 }
 0x3f4   : > { %v3403_v26 = vpop.f32.mrb[58].mxu1 }
 0x3f5   : > { %v3407_v13 = vpack.c.bf16 %v3403_v26, %v3400_v42  ;;  %v5685_v48 = vpop.f32.mrb[59].mxu1  ;;  %3490 = vrot.lane.b32.xlu1 %v3488_v21, %s6123_s28  ;;  %s6132_s28 = smov 58  }
 0x3f7   : > { %v2572_v51 = vpop.permute.xlu1 %2571  ;;  %3409 = vrot.lane.b32.xlu0 %v3407_v13, %s6124_s29  ;;  %s6133_s29 = smov 57  }
 0x3f8   : > { %2575 = vst.msk [vmem:[#allocation3 + $0x8] sm:$0xff] %vm2574_vm13, %v2572_v51  ;;  %vm3412_vm13 = vcmask 621992  }
 0x3fb   : > { %v2659_v3 = vpop.permute.xlu1 %2658  ;;  %3512 = vrot.lane.b32.xlu0 %v7158_v25, %s6087_s9 }
 0x3fc   : > { %2662 = vst.msk [vmem:[#allocation3 + $0x8] sm:$0xff] %vm2661_vm14, %v2659_v3  ;;  %vm3493_vm14 = vcmask 810592  }
 0x3ff   : > { %3540 = vrot.lane.b32.xlu0 %v7158_v25, %s6125_s30 }
 0x403   : > { %v2740_v24 = vpop.permute.xlu0 %2739  ;;  %3568 = vrot.lane.b32.xlu0 %v7158_v25, %s6117_s16 }
 0x404   : > { %2743 = vst.msk [vmem:[#allocation3 + $0x8] sm:$0xff] %vm2742_vm15, %v2740_v24  ;;  %vm3502_vm15 = vcmask 220160  }
 0x405   : > { %2745 = vst.msk [vmem:[#allocation3 + $0x10] sm:$0xff] %vm7582_vm0, %v2740_v24  ;;  %vm3884_vm0 = vcmask 465920  }
 0x407   : > { %v2823_v2 = vpop.permute.xlu0 %2822  ;;  %3596 = vrot.lane.b32.xlu0 %v7158_v25, %s6126_s8 }
 0x408   : > { %2826 = vst.msk [vmem:[#allocation3 + $0x10] sm:$0xff] %vm2825_vm1, %v2823_v2  ;;  %vm3548_vm1 = vcmask 1031168  }
 0x40b   : > { %3624 = vrot.lane.b32.xlu0 %v7158_v25, %s6127_s20  ;;  %v7171_v8 = vld [vmem:[#allocation3 + $0x8] sm:$0xff] }
 0x40c   : > { %4000 = vmatprep.subr.bf16.mxu1 %v7171_v8 }
 0x40d   : > { %4001 = vmatpush1.bf16.msra.mxu1 %v7158_v25 }
 0x40f   : > { %3652 = vrot.lane.b32.xlu0 %v7158_v25, %s6128_s17 }
 0x413   : > { %3680 = vrot.lane.b32.xlu0 %v7158_v25, %s6116_s12 }
 0x417   : > { %3708 = vrot.lane.b32.xlu0 %v7158_v25, %s6129_s19 }
 0x41b   : > { %3736 = vrot.lane.b32.xlu0 %v7158_v25, %s6130_s23 }
 0x41f   : > { %3764 = vrot.lane.b32.xlu0 %v7158_v25, %s6100_s26 }
 0x423   : > { %3792 = vrot.lane.b32.xlu0 %v7158_v25, %s6115_s11 }
 0x427   : > { %3820 = vrot.lane.b32.xlu0 %v7158_v25, %s6131_s27 }
 0x42b   : > { %3848 = vrot.lane.b32.xlu0 %v7158_v25, %s6132_s28 }
 0x42f   : > { %3876 = vrot.lane.b32.xlu0 %v7158_v25, %s6133_s29 }
 0x433   : > { %3514 = vrot.lane.b32.xlu0 %v7171_v8, %s6087_s9  ;;  %v2904_v55 = vpop.permute.xlu1 %2903 }
 0x434   : > { %2907 = vst.msk [vmem:[#allocation3 + $0x10] sm:$0xff] %vm2906_vm2, %v2904_v55  ;;  %vm3604_vm2 = vcmask 859136  }
 0x437   : > { %3542 = vrot.lane.b32.xlu0 %v7171_v8, %s6125_s30 }
 0x438   : > { %v2991_v60 = vpop.permute.xlu0 %2990 }
 0x439   : > { %2994 = vst.msk [vmem:[#allocation3 + $0x10] sm:$0xff] %vm2993_vm3, %v2991_v60  ;;  %vm3632_vm3 = vcmask 850944  }
 0x43b   : > { %3570 = vrot.lane.b32.xlu0 %v7171_v8, %s6117_s16 }
 0x43f   : > { %3598 = vrot.lane.b32.xlu0 %v7171_v8, %s6126_s8 }
 0x440   : > { %v3078_v53 = vpop.permute.xlu0 %3077 }
 0x441   : > { %3081 = vst.msk [vmem:[#allocation3 + $0x10] sm:$0xff] %vm3080_vm4, %v3078_v53  ;;  %vm3660_vm4 = vcmask 842752  }
 0x443   : > { %3626 = vrot.lane.b32.xlu0 %v7171_v8, %s6127_s20 }
 0x444   : > { %v3159_v56 = vpop.permute.xlu1 %3158 }
 0x445   : > { %3162 = vst.msk [vmem:[#allocation3 + $0x10] sm:$0xff] %vm3161_vm6, %v3159_v56  ;;  %vm3688_vm6 = vcmask 834560  }
 0x446   : > { %3164 = vst.msk [vmem:[#allocation3 + $0x18] sm:$0xff] %vm3163_vm8, %v3159_v56  ;;  %vm3716_vm8 = vcmask 670720  }
 0x447   : > { %3654 = vrot.lane.b32.xlu0 %v7171_v8, %s6128_s17 }
 0x44b   : > { %3682 = vrot.lane.b32.xlu0 %v7171_v8, %s6116_s12 }
 0x44c   : > { %v3497_v11 = vld [vmem:[#allocation3 + $0x10] sm:$0xff] }
 0x44d   : > { %3516 = vrot.lane.b32.xlu1 %v3497_v11, %s6087_s9  ;;  %v3242_v15 = vpop.permute.xlu1 %3241 }
 0x44e   : > { %3245 = vst.msk [vmem:[#allocation3 + $0x18] sm:$0xff] %vm3244_vm9, %v3242_v15  ;;  %vm3744_vm9 = vcmask 662528  }
 0x44f   : > { %3710 = vrot.lane.b32.xlu0 %v7171_v8, %s6129_s19 }
 0x451   : > { %3544 = vrot.lane.b32.xlu1 %v3497_v11, %s6125_s30 }
 0x453   : > { %3738 = vrot.lane.b32.xlu0 %v7171_v8, %s6130_s23 }
 0x455   : > { %3572 = vrot.lane.b32.xlu1 %v3497_v11, %s6117_s16 }
 0x456   : > { %v3323_v30 = vpop.permute.xlu1 %3322 }
 0x457   : > { %3766 = vrot.lane.b32.xlu0 %v7171_v8, %s6100_s26  ;;  %3326 = vst.msk [vmem:[#allocation3 + $0x18] sm:$0xff] %vm3325_vm12, %v3323_v30  ;;  %vm3772_vm12 = vcmask 654336  }
 0x459   : > { %3600 = vrot.lane.b32.xlu1 %v3497_v11, %s6126_s8 }
 0x45b   : > { %3794 = vrot.lane.b32.xlu0 %v7171_v8, %s6115_s11 }
 0x45d   : > { %3628 = vrot.lane.b32.xlu1 %v3497_v11, %s6127_s20 }
 0x45f   : > { %3822 = vrot.lane.b32.xlu0 %v7171_v8, %s6131_s27 }
 0x461   : > { %3656 = vrot.lane.b32.xlu1 %v3497_v11, %s6128_s17 }
 0x463   : > { %3850 = vrot.lane.b32.xlu0 %v7171_v8, %s6132_s28 }
 0x465   : > { %3684 = vrot.lane.b32.xlu1 %v3497_v11, %s6116_s12 }
 0x467   : > { %3878 = vrot.lane.b32.xlu0 %v7171_v8, %s6133_s29  ;;  %v3491_v28 = vpop.permute.xlu1 %3490 }
 0x469   : > { %v3410_v0 = vpop.permute.xlu0 %3409  ;;  %3712 = vrot.lane.b32.xlu1 %v3497_v11, %s6129_s19 }
 0x46a   : > { %3413 = vst.msk [vmem:[#allocation3 + $0x18] sm:$0xff] %vm3412_vm13, %v3410_v0  ;;  %vm3800_vm13 = vcmask 646144  }
 0x46b   : > { %3494 = vst.msk [vmem:[#allocation3 + $0x18] sm:$0xff] %vm3493_vm14, %v3491_v28  ;;  %3906 = vrot.lane.b32.xlu0 %v7171_v8, %s6090_s14  ;;  %vm3828_vm14 = vcmask 482304  }
 0x46d   : > { %v3513_v62 = vpop.permute.xlu0 %3512  ;;  %3740 = vrot.lane.b32.xlu1 %v3497_v11, %s6130_s23 }
 0x46f   : > { %3904 = vrot.lane.b32.xlu0 %v7158_v25, %s6090_s14 }
 0x471   : > { %v3541_v22 = vpop.permute.xlu0 %3540  ;;  %3768 = vrot.lane.b32.xlu1 %v3497_v11, %s6100_s26 }
 0x472   : > { %v3498_v50 = vld [vmem:[#allocation3 + $0x18] sm:$0xff] }
 0x473   : > { %3503 = vst.msk [vmem:[#allocation4 + $0x18] sm:$0xff] %vm3502_vm15, %v3498_v50 }
 0x475   : > { %v3569_v6 = vpop.permute.xlu0 %3568  ;;  %3796 = vrot.lane.b32.xlu1 %v3497_v11, %s6115_s11 }
 0x479   : > { %v3597_v63 = vpop.permute.xlu0 %3596  ;;  %3824 = vrot.lane.b32.xlu1 %v3497_v11, %s6131_s27 }
 0x47a   : > { %v3929_v36 = vld [vmem:[#allocation4 + $0x18] sm:$0xff] }
 0x47b   : > { %4043 = vmatprep.subr.bf16.mxu0 %v3929_v36 }
 0x47c   : > { %4044 = vmatpush1.bf16.msra.mxu0 %v3497_v11 }
 0x47d   : > { %v3625_v5 = vpop.permute.xlu0 %3624  ;;  %3852 = vrot.lane.b32.xlu1 %v3497_v11, %s6132_s28 }
 0x481   : > { %v3653_v38 = vpop.permute.xlu0 %3652  ;;  %3880 = vrot.lane.b32.xlu1 %v3497_v11, %s6133_s29 }
 0x485   : > { %v3681_v61 = vpop.permute.xlu0 %3680  ;;  %3908 = vrot.lane.b32.xlu1 %v3497_v11, %s6090_s14 }
 0x489   : > { %v3709_v23 = vpop.permute.xlu0 %3708  ;;  %3518 = vrot.lane.b32.xlu1 %v3498_v50, %s6087_s9 }
 0x48d   : > { %v3737_v27 = vpop.permute.xlu0 %3736  ;;  %3546 = vrot.lane.b32.xlu1 %v3498_v50, %s6125_s30 }
 0x491   : > { %v3765_v44 = vpop.permute.xlu0 %3764  ;;  %3574 = vrot.lane.b32.xlu1 %v3498_v50, %s6117_s16 }
 0x495   : > { %v3793_v29 = vpop.permute.xlu0 %3792  ;;  %3602 = vrot.lane.b32.xlu1 %v3498_v50, %s6126_s8 }
 0x499   : > { %v7248_v31 = vpop.permute.xlu0 %3820  ;;  %3630 = vrot.lane.b32.xlu1 %v3498_v50, %s6127_s20 }
 0x49d   : > { %v7251_v12 = vpop.permute.xlu0 %3848  ;;  %3658 = vrot.lane.b32.xlu1 %v3498_v50, %s6128_s17 }
 0x4a1   : > { %v7254_v16 = vpop.permute.xlu0 %3876  ;;  %3686 = vrot.lane.b32.xlu1 %v3498_v50, %s6116_s12 }
 0x4a5   : > { %v3515_v33 = vpop.permute.xlu0 %3514  ;;  %3714 = vrot.lane.b32.xlu1 %v3498_v50, %s6129_s19 }
 0x4a6   : > { %v3521_v52 = vsel %vm1330_vm5, %v3513_v62, %v3515_v33 }
 0x4a9   : > { %v3543_v19 = vpop.permute.xlu0 %3542  ;;  %3742 = vrot.lane.b32.xlu1 %v3498_v50, %s6130_s23 }
 0x4aa   : > { %v3549_v20 = vsel %vm3548_vm1, %v3541_v22, %v3543_v19 }
 0x4ad   : > { %v3571_v9 = vpop.permute.xlu0 %3570  ;;  %3770 = vrot.lane.b32.xlu1 %v3498_v50, %s6100_s26 }
 0x4ae   : > { %v3577_v37 = vsel %vm1747_vm11, %v3569_v6, %v3571_v9 }
 0x4b1   : > { %v3599_v34 = vpop.permute.xlu0 %3598  ;;  %3798 = vrot.lane.b32.xlu1 %v3498_v50, %s6115_s11 }
 0x4b2   : > { %v3605_v10 = vsel %vm3604_vm2, %v3597_v63, %v3599_v34 }
 0x4b5   : > { %v3627_v14 = vpop.permute.xlu0 %3626  ;;  %3826 = vrot.lane.b32.xlu1 %v3498_v50, %s6131_s27 }
 0x4b6   : > { %v3633_v1 = vsel %vm3632_vm3, %v3625_v5, %v3627_v14 }
 0x4b9   : > { %v3655_v54 = vpop.permute.xlu0 %3654  ;;  %3854 = vrot.lane.b32.xlu1 %v3498_v50, %s6132_s28  ;;  %s6135_s28 = smov 118  }
 0x4ba   : > { %v3661_v58 = vsel %vm3660_vm4, %v3653_v38, %v3655_v54 }
 0x4bd   : > { %v3683_v39 = vpop.permute.xlu0 %3682  ;;  %3882 = vrot.lane.b32.xlu1 %v3498_v50, %s6133_s29  ;;  %s6136_s29 = smov 72  }
 0x4be   : > { %v3689_v41 = vsel %vm3688_vm6, %v3681_v61, %v3683_v39 }
 0x4bf   : > { %v7271_v4 = vpop.permute.xlu1 %3516 }
 0x4c0   : > { %v3522_v32 = vsel %vm1330_vm5, %v3515_v33, %v7271_v4 }
 0x4c1   : > { %v3711_v35 = vpop.permute.xlu0 %3710  ;;  %3910 = vrot.lane.b32.xlu1 %v3498_v50, %s6090_s14  ;;  %4002 = vmatprep.subr.bf16.mxu1 %v3522_v32  ;;  %s7585_s14 = smov 40  }
 0x4c2   : > { %v3717_v43 = vsel %vm3716_vm8, %v3709_v23, %v3711_v35  ;;  %4003 = vmatpush1.bf16.msra.mxu1 %v3521_v52 }
 0x4c3   : > { %v7277_v47 = vpop.permute.xlu1 %3544 }
 0x4c4   : > { %v3550_v45 = vsel %vm3548_vm1, %v3543_v19, %v7277_v47 }
 0x4c5   : > { %v3739_v25 = vpop.permute.xlu0 %3738  ;;  %4004 = vmatprep.subr.bf16.mxu1 %v3550_v45 }
 0x4c6   : > { %v3745_v49 = vsel %vm3744_vm9, %v3737_v27, %v3739_v25  ;;  %4005 = vmatpush1.bf16.msra.mxu1 %v3549_v20 }
 0x4c7   : > { %v7282_v59 = vpop.permute.xlu1 %3572 }
 0x4c8   : > { %v3578_v57 = vsel %vm1747_vm11, %v3571_v9, %v7282_v59 }
 0x4c9   : > { %v3767_v40 = vpop.permute.xlu0 %3766  ;;  %4006 = vmatprep.subr.bf16.mxu1 %v3578_v57 }
 0x4ca   : > { %v3773_v42 = vsel %vm3772_vm12, %v3765_v44, %v3767_v40  ;;  %4007 = vmatpush1.bf16.msra.mxu1 %v3577_v37 }
 0x4cb   : > { %v7287_v46 = vpop.permute.xlu1 %3600 }
 0x4cc   : > { %v3606_v18 = vsel %vm3604_vm2, %v3599_v34, %v7287_v46 }
 0x4cd   : > { %v3795_v21 = vpop.permute.xlu0 %3794  ;;  %4008 = vmatprep.subr.bf16.mxu1 %v3606_v18 }
 0x4ce   : > { %v3801_v17 = vsel %vm3800_vm13, %v3793_v29, %v3795_v21  ;;  %4009 = vmatpush1.bf16.msra.mxu1 %v3605_v10 }
 0x4cf   : > { %v7292_v26 = vpop.permute.xlu1 %3628 }
 0x4d0   : > { %v3634_v13 = vsel %vm3632_vm3, %v3627_v14, %v7292_v26 }
 0x4d1   : > { %v3823_v48 = vpop.permute.xlu0 %3822  ;;  %4010 = vmatprep.subr.bf16.mxu1 %v3634_v13 }
 0x4d2   : > { %v3829_v51 = vsel %vm3828_vm14, %v7248_v31, %v3823_v48  ;;  %4011 = vmatpush1.bf16.msra.mxu1 %v3633_v1  ;;  %v7346_v31 = vld [vmem:[%s7572_s3] ss:$8 sps:$4 sm:$0xff]  }
 0x4d3   : > { %v7298_v3 = vpop.permute.xlu1 %3656 }
 0x4d4   : > { %v3662_v24 = vsel %vm3660_vm4, %v3655_v54, %v7298_v3 }
 0x4d5   : > { %v3851_v2 = vpop.permute.xlu0 %3850  ;;  %4012 = vmatprep.subr.bf16.mxu1 %v3662_v24 }
 0x4d6   : > { %v3857_v8 = vsel %vm3856_vm10, %v7251_v12, %v3851_v2  ;;  %4013 = vmatpush1.bf16.msra.mxu1 %v3661_v58 }
 0x4d7   : > { %v7304_v55 = vpop.permute.xlu1 %3684 }
 0x4d8   : > { %v3690_v60 = vsel %vm3688_vm6, %v3683_v39, %v7304_v55 }
 0x4d9   : > { %v3879_v53 = vpop.permute.xlu0 %3878  ;;  %4014 = vmatprep.subr.bf16.mxu1 %v3690_v60 }
 0x4da   : > { %v3885_v56 = vsel %vm3884_vm0, %v7254_v16, %v3879_v53  ;;  %4015 = vmatpush1.bf16.msra.mxu1 %v3689_v41 }
 0x4db   : > { %v7310_v11 = vpop.permute.xlu1 %3712 }
 0x4dc   : > { %v3718_v15 = vsel %vm3716_vm8, %v3711_v35, %v7310_v11 }
 0x4dd   : > { %v3907_v30 = vpop.permute.xlu0 %3906  ;;  %4016 = vmatprep.subr.bf16.mxu1 %v3718_v15 }
 0x4de   : > { %4017 = vmatpush1.bf16.msra.mxu1 %v3717_v43 }
 0x4df   : > { %v7314_v0 = vpop.permute.xlu1 %3740 }
 0x4e0   : > { %v3746_v28 = vsel %vm3744_vm9, %v3739_v25, %v7314_v0 }
 0x4e1   : > { %v3905_v62 = vpop.permute.xlu0 %3904  ;;  %4018 = vmatprep.subr.bf16.mxu1 %v3746_v28 }
 0x4e2   : > { %v3913_v22 = vsel %vm3912_vm7, %v3905_v62, %v3907_v30  ;;  %4019 = vmatpush1.bf16.msra.mxu1 %v3745_v49 }
 0x4e3   : > { %v7319_v50 = vpop.permute.xlu1 %3768 }
 0x4e4   : > { %v3774_v6 = vsel %vm3772_vm12, %v3767_v40, %v7319_v50 }
 0x4e5   : > { %4020 = vmatprep.subr.bf16.mxu1 %v3774_v6 }
 0x4e6   : > { %4021 = vmatpush1.bf16.msra.mxu1 %v3773_v42 }
 0x4e7   : > { %v7323_v63 = vpop.permute.xlu1 %3796 }
 0x4e8   : > { %v3802_v36 = vsel %vm3800_vm13, %v3795_v21, %v7323_v63 }
 0x4e9   : > { %4022 = vmatprep.subr.bf16.mxu1 %v3802_v36  ;;  %v4179_v36 = vld [vmem:[%s7573_s4] sm:$0xff] }
 0x4ea   : > { %4023 = vmatpush1.bf16.msra.mxu1 %v3801_v17 }
 0x4eb   : > { %v7327_v7 = vpop.permute.xlu1 %3824 }
 0x4ec   : > { %v3830_v5 = vsel %vm3828_vm14, %v3823_v48, %v7327_v7 }
 0x4ed   : > { %4024 = vmatprep.subr.bf16.mxu1 %v3830_v5 }
 0x4ee   : > { %4025 = vmatpush1.bf16.msra.mxu1 %v3829_v51 }
 0x4ef   : > { %v7331_v38 = vpop.permute.xlu1 %3852 }
 0x4f0   : > { %v3858_v61 = vsel %vm3856_vm10, %v3851_v2, %v7331_v38 }
 0x4f1   : > { %4026 = vmatprep.subr.bf16.mxu1 %v3858_v61 }
 0x4f2   : > { %4027 = vmatpush1.bf16.msra.mxu1 %v3857_v8 }
 0x4f3   : > { %v7335_v23 = vpop.permute.xlu1 %3880 }
 0x4f4   : > { %v3886_v27 = vsel %vm3884_vm0, %v3879_v53, %v7335_v23 }
 0x4f5   : > { %4028 = vmatprep.subr.bf16.mxu1 %v3886_v27  ;;  %v4208_v27 = vld [vmem:[%s7575_s6 + $0x8] sm:$0xff] }
 0x4f6   : > { %4029 = vmatpush1.bf16.msra.mxu1 %v3885_v56 }
 0x4f7   : > { %v7339_v44 = vpop.permute.xlu1 %3908 }
 0x4f8   : > { %v3914_v29 = vsel %vm3912_vm7, %v3907_v30, %v7339_v44 }
 0x4f9   : > { %4030 = vmatprep.subr.bf16.mxu1 %v3914_v29 }
 0x4fa   : > { %4031 = vmatpush1.bf16.msra.mxu1 %v3913_v22 }
 0x4fb   : > { %v3519_v12 = vpop.permute.xlu1 %3518 }
 0x4fc   : > { %v3523_v16 = vsel %vm1330_vm5, %v7271_v4, %v3519_v12  ;;  %3531 = vst.msk [vmem:[#allocation4 + $0x38] sm:$0xff] %vm3502_vm15, %v3519_v12 }
 0x4fd   : > { %4033 = vmatmul.mubr.bf16.vlgmr.msra.gmra.mrb[60].mxu1 %v7346_v31 }
 0x4ff   : > { %v3547_v33 = vpop.permute.xlu1 %3546 }
 0x500   : > { %v3551_v52 = vsel %vm3548_vm1, %v7277_v47, %v3547_v33  ;;  %3559 = vst.msk [vmem:[#allocation4 + $0x58] sm:$0xff] %vm3502_vm15, %v3547_v33  ;;  %vm7588_vm1 = vcmask 162816  }
 0x503   : > { %v3575_v19 = vpop.permute.xlu1 %3574  ;;  %v3933_v20 = vld [vmem:[#allocation4 + $0x38] sm:$0xff] }
 0x504   : > { %v3579_v9 = vsel %vm1747_vm11, %v7282_v59, %v3575_v19  ;;  %3587 = vst.msk [vmem:[#allocation4 + $0x78] sm:$0xff] %vm3502_vm15, %v3575_v19  ;;  %4045 = vmatprep.subr.bf16.mxu0 %v3933_v20  ;;  %vm4891_vm11 = vcmask 130048  }
 0x505   : > { %4046 = vmatpush1.bf16.msra.mxu0 %v3523_v16  ;;  %v7427_v16 = vld [vmem:[%s7575_s6 + $0x10] sm:$0x7] }
 0x507   : > { %v3603_v37 = vpop.permute.xlu1 %3602  ;;  %v3937_v34 = vld [vmem:[#allocation4 + $0x58] sm:$0xff] }
 0x508   : > { %v3607_v10 = vsel %vm3604_vm2, %v7287_v46, %v3603_v37  ;;  %3615 = vst.msk [vmem:[#allocation4 + $0x98] sm:$0xff] %vm3502_vm15, %v3603_v37  ;;  %4047 = vmatprep.subr.bf16.mxu0 %v3937_v34 }
 0x509   : > { %4048 = vmatpush1.bf16.msra.mxu0 %v3551_v52 }
 0x50b   : > { %v3631_v14 = vpop.permute.xlu1 %3630  ;;  %v3941_v1 = vld [vmem:[#allocation4 + $0x78] sm:$0xff] }
 0x50c   : > { %v3635_v54 = vsel %vm3632_vm3, %v7292_v26, %v3631_v14  ;;  %3643 = vst.msk [vmem:[#allocation4 + $0xb8] sm:$0xff] %vm3502_vm15, %v3631_v14  ;;  %4049 = vmatprep.subr.bf16.mxu0 %v3941_v1  ;;  %vm7589_vm3 = vmmov %vm7588_vm1 }
 0x50d   : > { %4050 = vmatpush1.bf16.msra.mxu0 %v3579_v9 }
 0x50f   : > { %v3659_v58 = vpop.permute.xlu1 %3658  ;;  %v3945_v39 = vld [vmem:[#allocation4 + $0x98] sm:$0xff] }
 0x510   : > { %v3663_v41 = vsel %vm3660_vm4, %v7298_v3, %v3659_v58  ;;  %3671 = vst.msk [vmem:[#allocation4 + $0xd8] sm:$0xff] %vm3502_vm15, %v3659_v58  ;;  %4051 = vmatprep.subr.bf16.mxu0 %v3945_v39  ;;  %vm5050_vm4 = vcmask 490496  }
 0x511   : > { %4052 = vmatpush1.bf16.msra.mxu0 %v3607_v10 }
 0x513   : > { %v3687_v4 = vpop.permute.xlu1 %3686  ;;  %v3949_v32 = vld [vmem:[#allocation4 + $0xb8] sm:$0xff] }
 0x514   : > { %v3691_v35 = vsel %vm3688_vm6, %v7304_v55, %v3687_v4  ;;  %3699 = vst.msk [vmem:[#allocation4 + $0xf8] sm:$0xff] %vm3502_vm15, %v3687_v4  ;;  %4053 = vmatprep.subr.bf16.mxu0 %v3949_v32  ;;  %vm7590_vm6 = vcmask 326656  }
 0x515   : > { %4054 = vmatpush1.bf16.msra.mxu0 %v3635_v54 }
 0x517   : > { %v3715_v43 = vpop.permute.xlu1 %3714  ;;  %v3953_v47 = vld [vmem:[#allocation4 + $0xd8] sm:$0xff] }
 0x518   : > { %v3719_v45 = vsel %vm3716_vm8, %v7310_v11, %v3715_v43  ;;  %3727 = vst.msk [vmem:[#allocation4 + $0x118] sm:$0xff] %vm3502_vm15, %v3715_v43  ;;  %4055 = vmatprep.subr.bf16.mxu0 %v3953_v47  ;;  %vm5053_vm8 = vcmask 572416  }
 0x519   : > { %4056 = vmatpush1.bf16.msra.mxu0 %v3663_v41 }
 0x51b   : > { %v3743_v25 = vpop.permute.xlu1 %3742  ;;  %v3957_v49 = vld [vmem:[#allocation4 + $0xf8] sm:$0xff] }
 0x51c   : > { %v3747_v59 = vsel %vm3744_vm9, %v7314_v0, %v3743_v25  ;;  %3755 = vst.msk [vmem:[#allocation4 + $0x138] sm:$0xff] %vm3502_vm15, %v3743_v25  ;;  %4057 = vmatprep.subr.bf16.mxu0 %v3957_v49  ;;  %vm7591_vm9 = vmmov %vm7590_vm6 }
 0x51d   : > { %4058 = vmatpush1.bf16.msra.mxu0 %v3691_v35 }
 0x51f   : > { %v3771_v57 = vpop.permute.xlu1 %3770  ;;  %v3961_v40 = vld [vmem:[#allocation4 + $0x118] sm:$0xff] }
 0x520   : > { %v3775_v42 = vsel %vm3772_vm12, %v7319_v50, %v3771_v57  ;;  %3783 = vst.msk [vmem:[#allocation4 + $0x158] sm:$0xff] %vm3502_vm15, %v3771_v57  ;;  %4059 = vmatprep.subr.bf16.mxu0 %v3961_v40 }
 0x521   : > { %4060 = vmatpush1.bf16.msra.mxu0 %v3719_v45 }
 0x523   : > { %v3799_v46 = vpop.permute.xlu1 %3798  ;;  %v3965_v18 = vld [vmem:[#allocation4 + $0x138] sm:$0xff] }
 0x524   : > { %v3803_v21 = vsel %vm3800_vm13, %v7323_v63, %v3799_v46  ;;  %3811 = vst.msk [vmem:[#allocation4 + $0x178] sm:$0xff] %vm3502_vm15, %v3799_v46  ;;  %4061 = vmatprep.subr.bf16.mxu0 %v3965_v18  ;;  %v4180_v63 = vld [vmem:[%s7573_s4 + $0x8] sm:$0x7f]  ;;  %vm5061_vm13 = vcmask 735232  }
 0x525   : > { %4062 = vmatpush1.bf16.msra.mxu0 %v3747_v59 }
 0x527   : > { %v3827_v17 = vpop.permute.xlu1 %3826  ;;  %v3969_v26 = vld [vmem:[#allocation4 + $0x158] sm:$0xff] }
 0x528   : > { %v3831_v13 = vsel %vm3828_vm14, %v7327_v7, %v3827_v17  ;;  %3839 = vst.msk [vmem:[#allocation4 + $0x198] sm:$0xff] %vm3502_vm15, %v3827_v17  ;;  %4063 = vmatprep.subr.bf16.mxu0 %v3969_v26  ;;  %vm5059_vm14 = vcmask 736256  }
 0x529   : > { %4064 = vmatpush1.bf16.msra.mxu0 %v3775_v42 }
 0x52b   : > { %v3855_v48 = vpop.permute.xlu1 %3854  ;;  %v3973_v51 = vld [vmem:[#allocation4 + $0x178] sm:$0xff] }
 0x52c   : > { %v3859_v3 = vsel %vm3856_vm10, %v7331_v38, %v3855_v48  ;;  %3867 = vst.msk [vmem:[#allocation4 + $0x1b8] sm:$0xff] %vm3502_vm15, %v3855_v48  ;;  %4065 = vmatprep.subr.bf16.mxu0 %v3973_v51  ;;  %vm4217_vm10 = vcmask 1042432  }
 0x52d   : > { %4066 = vmatpush1.bf16.msra.mxu0 %v3803_v21 }
 0x52f   : > { %v3883_v24 = vpop.permute.xlu1 %3882  ;;  %v3977_v2 = vld [vmem:[#allocation4 + $0x198] sm:$0xff] }
 0x530   : > { %v3887_v8 = vsel %vm3884_vm0, %v7335_v23, %v3883_v24  ;;  %3895 = vst.msk [vmem:[#allocation4 + $0x1d8] sm:$0xff] %vm3502_vm15, %v3883_v24  ;;  %4067 = vmatprep.subr.bf16.mxu0 %v3977_v2  ;;  %v4207_v23 = vld [vmem:[%s7575_s6] sm:$0xff]  ;;  %vm5041_vm0 = vcmask 244736  }
 0x531   : > { %4068 = vmatpush1.bf16.msra.mxu0 %v3831_v13 }
 0x533   : > { %v3911_v55 = vpop.permute.xlu1 %3910  ;;  %v3981_v60 = vld [vmem:[#allocation4 + $0x1b8] sm:$0xff] }
 0x534   : > { %v3915_v53 = vsel %vm3912_vm7, %v7339_v44, %v3911_v55  ;;  %3923 = vst.msk [vmem:[#allocation4 + $0x1f8] sm:$0xff] %vm3502_vm15, %v3911_v55  ;;  %4069 = vmatprep.subr.bf16.mxu0 %v3981_v60  ;;  %v7417_v44 = vpack.c.bf16 %v4208_v27, %v4207_v23  ;;  %vm7586_vm7 = vcmask 80896  }
 0x535   : > { %4070 = vmatpush1.bf16.msra.mxu0 %v3859_v3  ;;  %vm7587_vm15 = vmmov %vm7586_vm7 }
 0x536   : > { %5778 = vmatprep.subr.bf16.mxu1 %v7417_v44 }
 0x537   : > { %v3985_v56 = vld [vmem:[#allocation4 + $0x1d8] sm:$0xff]  ;;  %5780 = vmatpush3.bf16.msra.mxu1 %v7417_v44 }
 0x538   : > { %4071 = vmatprep.subr.bf16.mxu0 %v3985_v56  ;;  %5700 = vmatprep.subr.msk.mxu1 %vm4217_vm10, %v7427_v16 }
 0x539   : > { %4072 = vmatpush1.bf16.msra.mxu0 %v3887_v8 }
 0x53b   : > { %v3989_v11 = vld [vmem:[#allocation4 + $0x1f8] sm:$0xff]  ;;  %5701 = vmatpush3.msk.msra.mxu1 %vm4217_vm10, %v7427_v16 }
 0x53c   : > { %4073 = vmatprep.subr.bf16.mxu0 %v3989_v11  ;;  %5782 = vmatprep.subr.bf16.mxu1 %v7417_v44 }
 0x53d   : > { %4074 = vmatpush1.bf16.msra.mxu0 %v3915_v53 }
 0x53e   : > { %5786 = vmatprep.subr.bf16.mxu0 %v7417_v44 }
 0x540   : > { %4076 = vmatmul.mubr.bf16.vlgmr.msra.gmra.mrb[60].mxu0 %v7346_v31 }
 0x541   : > { %5788 = vmatpush3.bf16.msra.mxu0 %v7417_v44 }
 0x542   : > { %5718 = vmatprep.subr.msk.mxu0 %vm4217_vm10, %v7427_v16 }
 0x545   : > { %5719 = vmatpush3.msk.msra.mxu0 %vm4217_vm10, %v7427_v16 }
 0x546   : > { %5794 = vmatprep.subr.bf16.mxu0 %v7417_v44 }
 0x5d0   : > { %v4034_v15 = vpop.f32.mrb[60].mxu1 }
 0x5d1   : > { %v4036_v30 = vpop.f32.mrb[61].mxu1  ;;  %4094 = vrot.lane.b32.xlu0 %v4034_v15, %s6087_s9 }
 0x5d2   : > { %4096 = vrot.lane.b32.xlu1 %v4036_v30, %s6087_s9  ;;  %v4038_v0 = vpop.f32.mrb[62].mxu1 }
 0x5d3   : > { %v4040_v28 = vpop.f32.mrb[63].mxu1 }
 0x5d6   : > { %4102 = vrot.lane.b32.xlu1 %v4038_v0, %s6087_s9 }
 0x613   : > { %v4077_v62 = vpop.f32.mrb[60].mxu0 }
 0x614   : > { %4098 = vrot.lane.b32.xlu0 %v4077_v62, %s6087_s9  ;;  %v4079_v22 = vpop.f32.mrb[61].mxu0 }
 0x615   : > { %v4081_v50 = vpop.f32.mrb[62].mxu0 }
 0x616   : > { %4106 = vrot.lane.b32.xlu1 %v4081_v50, %s6087_s9  ;;  %v4083_v6 = vpop.f32.mrb[63].mxu0 }
 0x618   : > { %4104 = vrot.lane.b32.xlu0 %v4040_v28, %s6087_s9 }
 0x61a   : > { %4108 = vrot.lane.b32.xlu1 %v4083_v6, %s6087_s9 }
 0x61c   : > { %4100 = vrot.lane.b32.xlu0 %v4079_v22, %s6087_s9 }
 0x61e   : > { %4188 = vperm.xlu1 %5882, %v4180_v63  }
 0x620   : > { %4183 = vperm.xlu0 %5881, %v4179_v36  }
 0x643   : > { %v4095_v7 = vpop.permute.xlu0 %4094 }
 0x644   : > { %v4097_v5 = vpop.permute.xlu1 %4096 }
 0x645   : > { %v4110_v38 = vsel %vm1330_vm5, %v4095_v7, %v4097_v5 }
 0x646   : > { %v4124_v61 = vmax.f32 %v4034_v15, %v4110_v38 }
 0x648   : > { %4140 = vrot.lane.b32.xlu0 %v4124_v61, %s6126_s8  ;;  %v4103_v29 = vpop.permute.xlu1 %4102 }
 0x686   : > { %v4099_v31 = vpop.permute.xlu0 %4098 }
 0x687   : > { %v4111_v12 = vsel %vm1330_vm5, %v4097_v5, %v4099_v31 }
 0x688   : > { %v7429_v33 = vmax.f32 %v4036_v30, %v4111_v12  ;;  %v4107_v52 = vpop.permute.xlu1 %4106 }
 0x68a   : > { %v4105_v19 = vpop.permute.xlu0 %4104  ;;  %4142 = vrot.lane.b32.xlu1 %v7429_v33, %s6126_s8 }
 0x68b   : > { %v4113_v20 = vsel %vm1330_vm5, %v4103_v29, %v4105_v19  ;;  %v4114_v9 = vsel %vm1330_vm5, %v4105_v19, %v4107_v52 }
 0x68c   : > { %v4128_v37 = vmax.f32 %v4038_v0, %v4113_v20  ;;  %v4129_v34 = vmax.f32 %v4040_v28, %v4114_v9  ;;  %v4109_v10 = vpop.permute.xlu1 %4108 }
 0x68d   : > { %v4115_v14 = vsel %vm1330_vm5, %v4107_v52, %v4109_v10  ;;  %v7454_v41 = vmax.f32 %v4083_v6, %v4109_v10 }
 0x68e   : > { %4148 = vrot.lane.b32.xlu0 %v4128_v37, %s6126_s8  ;;  %v4101_v1 = vpop.permute.xlu0 %4100  ;;  %4150 = vrot.lane.b32.xlu1 %v4129_v34, %s6126_s8  ;;  %v7449_v58 = vmax.f32 %v4081_v50, %v4115_v14 }
 0x68f   : > { %v4112_v54 = vsel %vm1330_vm5, %v4099_v31, %v4101_v1  ;;  %v4127_v4 = vmax.f32 %v4079_v22, %v4101_v1  ;;  %vm4210_vm5 = vcmask 154624  }
 0x690   : > { %v4126_v39 = vmax.f32 %v4077_v62, %v4112_v54 }
 0x692   : > { %4144 = vrot.lane.b32.xlu0 %v4126_v39, %s6126_s8  ;;  %4152 = vrot.lane.b32.xlu1 %v7449_v58, %s6126_s8 }
 0x696   : > { %4146 = vrot.lane.b32.xlu0 %v4127_v4, %s6126_s8  ;;  %4154 = vrot.lane.b32.xlu1 %v7454_v41, %s6126_s8  ;;  %s6134_s8 = smov 16  }
 0x69d   : > { %v7459_v32 = vpop.permute.xlu1 %4188 }
 0x69f   : > { %v4184_v35 = vpop.permute.xlu0 %4183 }
 0x6ba   : > { %v4141_v43 = vpop.permute.xlu0 %4140 }
 0x6fc   : > { %v4143_v47 = vpop.permute.xlu1 %4142 }
 0x6fd   : > { %v4157_v45 = vsel %vm3604_vm2, %v4141_v43, %v4143_v47 }
 0x6fe   : > { %v4171_v25 = vmax.f32 %v4124_v61, %v4157_v45 }
 0x700   : > { %v4191_v49 = vadd.f32 %v4184_v35, %v4171_v25  ;;  %v4149_v59 = vpop.permute.xlu0 %4148  ;;  %v4151_v57 = vpop.permute.xlu1 %4150 }
 0x701   : > { %v4160_v40 = vsel %vm3604_vm2, %v4149_v59, %v4151_v57 }
 0x702   : > { %v4199_v42 = vmax.f32 %v4191_v49, 0.0  ;;  %v4175_v46 = vmax.f32 %v4128_v37, %v4160_v40 }
 0x704   : > { %v4195_v18 = vadd.f32 %v7459_v32, %v4175_v46  ;;  %v4145_v21 = vpop.permute.xlu0 %4144  ;;  %5702 = vmatprep.mubr.msk.f32.mxu1 %vm4210_vm5, %v4199_v42  ;;  %v4153_v24 = vpop.permute.xlu1 %4152 }
 0x705   : > { %v4158_v55 = vsel %vm3604_vm2, %v4143_v47, %v4145_v21  ;;  %v4161_v53 = vsel %vm3604_vm2, %v4151_v57, %v4153_v24 }
 0x706   : > { %v4203_v17 = vmax.f32 %v4195_v18, 0.0  ;;  %v4172_v56 = vmax.f32 %v7429_v33, %v4158_v55  ;;  %v4176_v11 = vmax.f32 %v4129_v34, %v4161_v53 }
 0x708   : > { %v4147_v26 = vpop.permute.xlu0 %4146  ;;  %5703 = vmatmul.mubr.msk.f32.vlgmr.msra.gmra.mrb[64].mxu1 %vm4210_vm5, %v4203_v17  ;;  %v4192_v15 = vadd.f32 %v4184_v35, %v4172_v56  ;;  %v4196_v30 = vadd.f32 %v7459_v32, %v4176_v11  ;;  %v4155_v0 = vpop.permute.xlu1 %4154 }
 0x709   : > { %v4159_v13 = vsel %vm3604_vm2, %v4145_v21, %v4147_v26  ;;  %v4174_v48 = vmax.f32 %v4127_v4, %v4147_v26  ;;  %5784 = vmatpush3.bf16.msra.mxu1 %v7417_v44  ;;  %v4162_v22 = vsel %vm3604_vm2, %v4153_v24, %v4155_v0  ;;  %v4178_v63 = vmax.f32 %v7454_v41, %v4155_v0 }
 0x70a   : > { %v4173_v51 = vmax.f32 %v4126_v39, %v4159_v13  ;;  %5709 = vmatprep.subr.msk.mxu1 %vm4217_vm10, %v7427_v16  ;;  %v4200_v28 = vmax.f32 %v4192_v15, 0.0  ;;  %v4204_v62 = vmax.f32 %v4196_v30, 0.0  ;;  %v4177_v50 = vmax.f32 %v7449_v58, %v4162_v22 }
 0x70b   : > { %v4194_v3 = vadd.f32 %v4184_v35, %v4174_v48  ;;  %v4198_v7 = vadd.f32 %v7459_v32, %v4178_v63  ;;  %vm5047_vm2 = vcmask 408576  }
 0x70c   : > { %v4193_v2 = vadd.f32 %v4184_v35, %v4173_v51  ;;  %v4197_v6 = vadd.f32 %v7459_v32, %v4177_v50 }
 0x70d   : > { %v4202_v8 = vmax.f32 %v4194_v3, 0.0  ;;  %5710 = vmatpush3.msk.msra.mxu1 %vm4217_vm10, %v7427_v16  ;;  %v4206_v5 = vmax.f32 %v4198_v7, 0.0 }
 0x70e   : > { %v4201_v60 = vmax.f32 %v4193_v2, 0.0  ;;  %5790 = vmatprep.subr.bf16.mxu1 %v7417_v44  ;;  %v4205_v36 = vmax.f32 %v4197_v6, 0.0 }
 0x70f   : > { %4885 = vrot.lane.b32.xlu0 %v4202_v8, %s6134_s8 }
 0x710   : > { %4883 = vrot.lane.b32.xlu1 %v4201_v60, %s6134_s8 }
 0x713   : > { %4296 = vrot.lane.b32.xlu0 %v4199_v42, %s6129_s19 }
 0x714   : > { %4298 = vrot.lane.b32.xlu1 %v4203_v17, %s6129_s19  ;;  %s6137_s19 = smov 26  }
 0x717   : > { %4379 = vrot.lane.b32.xlu0 %v4199_v42, %s6103_s22 }
 0x718   : > { %4381 = vrot.lane.b32.xlu1 %v4203_v17, %s6103_s22  ;;  %s6138_s22 = smov 62  }
 0x71b   : > { %4464 = vrot.lane.b32.xlu0 %v4200_v28, %s6135_s28 }
 0x71c   : > { %4466 = vrot.lane.b32.xlu1 %v4204_v62, %s6135_s28 }
 0x71f   : > { %4547 = vrot.lane.b32.xlu0 %v4200_v28, %s6136_s29 }
 0x720   : > { %4549 = vrot.lane.b32.xlu1 %v4204_v62, %s6136_s29 }
 0x723   : > { %4630 = vrot.lane.b32.xlu0 %v4200_v28, %s6137_s19 }
 0x724   : > { %4632 = vrot.lane.b32.xlu1 %v4204_v62, %s6137_s19 }
 0x727   : > { %4715 = vrot.lane.b32.xlu0 %v4201_v60, %s6101_s13 }
 0x728   : > { %4717 = vrot.lane.b32.xlu1 %v4205_v36, %s6101_s13  ;;  %s7584_s13 = smov 30  }
 0x72b   : > { %4798 = vrot.lane.b32.xlu0 %v4201_v60, %s6138_s22 }
 0x72c   : > { %4800 = vrot.lane.b32.xlu1 %v4205_v36, %s6138_s22 }
 0x72f   : > { %4887 = vrot.lane.b32.xlu0 %v4205_v36, %s6134_s8 }
 0x730   : > { %4889 = vrot.lane.b32.xlu1 %v4206_v5, %s6134_s8 }
 0x781   : > { %v4886_v38 = vpop.permute.xlu0 %4885 }
 0x782   : > { %v4884_v61 = vpop.permute.xlu1 %4883 }
 0x783   : > { %v4892_v10 = vsel %vm4891_vm11, %v4884_v61, %v4886_v38 }
 0x785   : > { %v4297_v23 = vpop.permute.xlu0 %4296 }
 0x786   : > { %5711 = vmatprep.mubr.msk.f32.mxu1 %vm4210_vm5, %v4297_v23  ;;  %v4299_v27 = vpop.permute.xlu1 %4298 }
 0x787   : > { %5712 = vmatmul.mubr.msk.f32.vlgmr.msra.gmra.mrb[66].mxu1 %vm4210_vm5, %v4299_v27 }
 0x788   : > { %5792 = vmatpush3.bf16.msra.mxu1 %v7417_v44 }
 0x789   : > { %v4380_v29 = vpop.permute.xlu0 %4379  ;;  %5727 = vmatprep.subr.msk.mxu1 %vm4217_vm10, %v7427_v16 }
 0x78a   : > { %5720 = vmatprep.mubr.msk.f32.mxu0 %vm4210_vm5, %v4380_v29  ;;  %v4382_v31 = vpop.permute.xlu1 %4381 }
 0x78b   : > { %5721 = vmatmul.mubr.msk.f32.vlgmr.msra.gmra.mrb[64].mxu0 %vm4210_vm5, %v4382_v31 }
 0x78c   : > { %5728 = vmatpush3.msk.msra.mxu1 %vm4217_vm10, %v7427_v16  ;;  %5796 = vmatpush3.bf16.msra.mxu0 %v7417_v44 }
 0x78d   : > { %v4465_v12 = vpop.permute.xlu0 %4464  ;;  %5736 = vmatprep.subr.msk.mxu0 %vm4217_vm10, %v7427_v16  ;;  %5798 = vmatprep.subr.bf16.mxu1 %v7417_v44 }
 0x78e   : > { %5729 = vmatprep.mubr.msk.f32.mxu1 %vm4210_vm5, %v4465_v12  ;;  %v4467_v33 = vpop.permute.xlu1 %4466 }
 0x78f   : > { %5730 = vmatmul.mubr.msk.f32.vlgmr.msra.gmra.mrb[68].mxu1 %vm4210_vm5, %v4467_v33 }
 0x790   : > { %5737 = vmatpush3.msk.msra.mxu0 %vm4217_vm10, %v7427_v16  ;;  %5800 = vmatpush3.bf16.msra.mxu1 %v7417_v44 }
 0x791   : > { %v4548_v52 = vpop.permute.xlu0 %4547  ;;  %5745 = vmatprep.subr.msk.mxu1 %vm4217_vm10, %v7427_v16  ;;  %5802 = vmatprep.subr.bf16.mxu0 %v7417_v44 }
 0x792   : > { %5738 = vmatprep.mubr.msk.f32.mxu0 %vm4210_vm5, %v4548_v52  ;;  %v4550_v19 = vpop.permute.xlu1 %4549 }
 0x793   : > { %5739 = vmatmul.mubr.msk.f32.vlgmr.msra.gmra.mrb[66].mxu0 %vm4210_vm5, %v4550_v19 }
 0x794   : > { %5746 = vmatpush3.msk.msra.mxu1 %vm4217_vm10, %v7427_v16  ;;  %5804 = vmatpush3.bf16.msra.mxu0 %v7417_v44 }
 0x795   : > { %v4631_v20 = vpop.permute.xlu0 %4630  ;;  %5754 = vmatprep.subr.msk.mxu0 %vm4217_vm10, %v7427_v16  ;;  %5806 = vmatprep.subr.bf16.mxu1 %v7417_v44 }
 0x796   : > { %5747 = vmatprep.mubr.msk.f32.mxu1 %vm4210_vm5, %v4631_v20  ;;  %v4633_v9 = vpop.permute.xlu1 %4632 }
 0x797   : > { %5748 = vmatmul.mubr.msk.f32.vlgmr.msra.gmra.mrb[70].mxu1 %vm4210_vm5, %v4633_v9 }
 0x798   : > { %5755 = vmatpush3.msk.msra.mxu0 %vm4217_vm10, %v7427_v16  ;;  %5808 = vmatpush3.bf16.msra.mxu1 %v7417_v44 }
 0x799   : > { %v4716_v37 = vpop.permute.xlu0 %4715  ;;  %5763 = vmatprep.subr.msk.mxu1 %vm4217_vm10, %v7427_v16  ;;  %5810 = vmatprep.subr.bf16.mxu0 %v7417_v44 }
 0x79a   : > { %5756 = vmatprep.mubr.msk.f32.mxu0 %vm4210_vm5, %v4716_v37  ;;  %v4718_v34 = vpop.permute.xlu1 %4717 }
 0x79b   : > { %5757 = vmatmul.mubr.msk.f32.vlgmr.msra.gmra.mrb[68].mxu0 %vm4210_vm5, %v4718_v34 }
 0x79c   : > { %5774 = vmatprep.mubr.msk.f32.mxu0 %vm4210_vm5, %v4892_v10  ;;  %5764 = vmatpush3.msk.msra.mxu1 %vm4217_vm10, %v7427_v16 }
 0x79d   : > { %v4799_v14 = vpop.permute.xlu0 %4798  ;;  %5812 = vmatpush3.bf16.msra.mxu0 %v7417_v44 }
 0x79e   : > { %5765 = vmatprep.mubr.msk.f32.mxu1 %vm4210_vm5, %v4799_v14  ;;  %v4801_v1 = vpop.permute.xlu1 %4800  ;;  %5772 = vmatprep.subr.msk.mxu0 %vm4217_vm10, %v7427_v16 }
 0x79f   : > { %5766 = vmatmul.mubr.msk.f32.vlgmr.msra.gmra.mrb[72].mxu1 %vm4210_vm5, %v4801_v1 }
 0x7a1   : > { %v4888_v54 = vpop.permute.xlu0 %4887  ;;  %5773 = vmatpush3.msk.msra.mxu0 %vm4217_vm10, %v7427_v16 }
 0x7a2   : > { %v4890_v58 = vpop.permute.xlu1 %4889 }
 0x7a3   : > { %v4893_v39 = vsel %vm4891_vm11, %v4888_v54, %v4890_v58 }
 0x7a4   : > { %5775 = vmatmul.mubr.msk.f32.vlgmr.msra.gmra.mrb[70].mxu0 %vm4210_vm5, %v4893_v39 }
 0x7db   : > { %v5704_v41 = vpop.f32.mrb[64].mxu1 }
 0x7dc   : > { %v4287_v4 = vpop.f32.mrb[65].mxu1 }
 0x85a   : > { %v5713_v44 = vpop.f32.mrb[66].mxu1 }
 0x85b   : > { %4977 = vrot.lane.b32.xlu1 %v5713_v44, %s6113_s10  ;;  %v4370_v32 = vpop.f32.mrb[67].mxu1 }
 0x85c   : > { %4975 = vrot.lane.b32.xlu0 %v4370_v32, %s6113_s10  ;;  %s6139_s10 = smov 50  }
 0x85e   : > { %v5722_v35 = vpop.f32.mrb[64].mxu0 }
 0x85f   : > { %4985 = vrot.lane.b32.xlu1 %v5722_v35, %s6106_s21  ;;  %v4453_v43 = vpop.f32.mrb[65].mxu0 }
 0x860   : > { %4983 = vrot.lane.b32.xlu0 %v4453_v43, %s6106_s21  ;;  %s6141_s21 = smov 70  }
 0x862   : > { %v5731_v16 = vpop.f32.mrb[68].mxu1 }
 0x863   : > { %4993 = vrot.lane.b32.xlu1 %v5731_v16, %s7584_s13  ;;  %v4538_v47 = vpop.f32.mrb[69].mxu1 }
 0x864   : > { %4991 = vrot.lane.b32.xlu0 %v4538_v47, %s7584_s13 }
 0x866   : > { %v5740_v45 = vpop.f32.mrb[66].mxu0 }
 0x867   : > { %5001 = vrot.lane.b32.xlu1 %v5740_v45, %s7585_s14  ;;  %v4621_v25 = vpop.f32.mrb[67].mxu0 }
 0x868   : > { %4999 = vrot.lane.b32.xlu0 %v4621_v25, %s7585_s14 }
 0x86a   : > { %v5749_v49 = vpop.f32.mrb[70].mxu1 }
 0x86b   : > { %5009 = vrot.lane.b32.xlu1 %v5749_v49, %s6139_s10  ;;  %v4704_v59 = vpop.f32.mrb[71].mxu1 }
 0x86c   : > { %5007 = vrot.lane.b32.xlu0 %v4704_v59, %s6139_s10 }
 0x86e   : > { %v5758_v57 = vpop.f32.mrb[68].mxu0 }
 0x86f   : > { %5017 = vrot.lane.b32.xlu1 %v5758_v57, %s6140_s18  ;;  %v4789_v40 = vpop.f32.mrb[69].mxu0 }
 0x870   : > { %5015 = vrot.lane.b32.xlu0 %v4789_v40, %s6140_s18 }
 0x872   : > { %v5767_v42 = vpop.f32.mrb[72].mxu1 }
 0x873   : > { %5025 = vrot.lane.b32.xlu1 %v5767_v42, %s6141_s21  ;;  %v4872_v46 = vpop.f32.mrb[73].mxu1 }
 0x874   : > { %5023 = vrot.lane.b32.xlu0 %v4872_v46, %s6141_s21 }
 0x877   : > { %v5776_v18 = vpop.f32.mrb[70].mxu0 }
 0x878   : > { %5033 = vrot.lane.b32.xlu1 %v5776_v18, %s6100_s26  ;;  %v4964_v21 = vpop.f32.mrb[71].mxu0 }
 0x879   : > { %5031 = vrot.lane.b32.xlu0 %v4964_v21, %s6100_s26  ;;  %s5336_s26 = sshll.u32 %s7593_s25, 4 }
 0x87a   : > { %s278_s16 = scalar_lea.vmem %s7576_s7, %s5336_s26 }
 0x8cd   : > { %v4978_v17 = vpop.permute.xlu1 %4977 }
 0x8ce   : > { %v4976_v26 = vpop.permute.xlu0 %4975  ;;  %v5038_v56 = vsel %vm7586_vm7, %v5704_v41, %v4978_v17 }
 0x8cf   : > { %v5037_v11 = vsel %vm7587_vm15, %v4287_v4, %v4976_v26 }
 0x8d1   : > { %v4986_v13 = vpop.permute.xlu1 %4985 }
 0x8d2   : > { %v4984_v48 = vpop.permute.xlu0 %4983  ;;  %v5040_v15 = vsel %vm7588_vm1, %v5038_v56, %v4986_v13 }
 0x8d3   : > { %v5039_v0 = vsel %vm7589_vm3, %v5037_v11, %v4984_v48 }
 0x8d5   : > { %v4994_v51 = vpop.permute.xlu1 %4993 }
 0x8d6   : > { %v4992_v3 = vpop.permute.xlu0 %4991  ;;  %v5043_v28 = vsel %vm5041_vm0, %v5040_v15, %v4994_v51 }
 0x8d7   : > { %v5042_v22 = vsel %vm5041_vm0, %v5039_v0, %v4992_v3 }
 0x8d9   : > { %v5002_v24 = vpop.permute.xlu1 %5001 }
 0x8da   : > { %v5000_v2 = vpop.permute.xlu0 %4999  ;;  %v5046_v50 = vsel %vm7590_vm6, %v5043_v28, %v5002_v24 }
 0x8db   : > { %v5045_v6 = vsel %vm7591_vm9, %v5042_v22, %v5000_v2 }
 0x8dd   : > { %v5010_v8 = vpop.permute.xlu1 %5009 }
 0x8de   : > { %v5008_v55 = vpop.permute.xlu0 %5007  ;;  %v5049_v63 = vsel %vm5047_vm2, %v5046_v50, %v5010_v8 }
 0x8df   : > { %v5048_v36 = vsel %vm5047_vm2, %v5045_v6, %v5008_v55 }
 0x8e1   : > { %v5018_v60 = vpop.permute.xlu1 %5017 }
 0x8e2   : > { %v5016_v53 = vpop.permute.xlu0 %5015  ;;  %v5052_v7 = vsel %vm5050_vm4, %v5049_v63, %v5018_v60 }
 0x8e3   : > { %v5051_v5 = vsel %vm5050_vm4, %v5048_v36, %v5016_v53 }
 0x8e5   : > { %v5026_v30 = vpop.permute.xlu1 %5025 }
 0x8e6   : > { %v5024_v62 = vpop.permute.xlu0 %5023  ;;  %v5055_v38 = vsel %vm5053_vm8, %v5052_v7, %v5026_v30 }
 0x8e7   : > { %v5054_v23 = vsel %vm5053_vm8, %v5051_v5, %v5024_v62 }
 0x8ea   : > { %v5034_v61 = vpop.permute.xlu1 %5033 }
 0x8eb   : > { %v5058_v27 = vsel %vm3772_vm12, %v5055_v38, %v5034_v61  ;;  %v5032_v29 = vpop.permute.xlu0 %5031 }
 0x8ec   : > { %5062 = vst.msk [vmem:[%s278_s16 + $0x8] sm:$0x7f] %vm5061_vm13, %v5058_v27  ;;  %v5057_v31 = vsel %vm3772_vm12, %v5054_v23, %v5032_v29 }
 0x8ed   : > { %5060 = vst.msk [vmem:[%s278_s16] sm:$0xff] %vm5059_vm14, %v5057_v31 }
 0x8ee PF: > { %s17_s24 = sadd.s32 1, %s6081_s24  }
 0x8ef   : > { %p14_p4 = scmp.ge.s32.totalorder %s17_s24, 4  }
 0x8f1   :  { %16 = sbr.rel (!%p14_p4) target bundleno = 1 (0x1), region = 78 }

</bundles_post_ra>
